<compile_context>
chip_gen: v6e
topology: v6e:2x2x1
jax: 0.10.0
libtpu: 0.0.40
codegen_flags: <defaults>
</compile_context>

<pallas_src>
import jax
import jax.numpy as jnp
from jax.experimental import pallas as pl
from jax.experimental.pallas import tpu as pltpu


D_IN, D_H, D_OUT = 512, 1024, 128


def _mlp_kernel(x_ref, w1_ref, b1_ref, w2_ref, b2_ref, w3_ref, b3_ref, o_ref):
    # Cast the activation tile to the weight dtype in-kernel (VPU op hidden
    # under the MXU); weights arrive already in their compute dtype.
    x = x_ref[...].astype(w1_ref.dtype)

    # Layer 1: Linear(512, 1024) + ReLU   (dropout = identity in eval mode)
    h1 = jnp.dot(x, w1_ref[...], preferred_element_type=jnp.float32)
    h1 = jnp.maximum(h1 + b1_ref[...], 0.0).astype(w2_ref.dtype)

    # Layer 2: Linear(1024, 1024) + ReLU
    h2 = jnp.dot(h1, w2_ref[...], preferred_element_type=jnp.float32)
    h2 = jnp.maximum(h2 + b2_ref[...], 0.0).astype(w3_ref.dtype)

    # Layer 3: Linear(1024, 128) + ReLU
    h3 = jnp.dot(h2, w3_ref[...], preferred_element_type=jnp.float32)
    o_ref[...] = jnp.maximum(h3 + b3_ref[...], 0.0).astype(o_ref.dtype)


def _round_up(n, m):
    return ((n + m - 1) // m) * m


def _device_tiling():
    """(block_b, min_grid_steps) tuned per TPU generation."""
    kind = jax.devices()[0].device_kind.lower()
    if "v5 lite" in kind or "v5e" in kind:
        # v5e: 4x128^2 MXU @ 197 TF/s -> bb=256 already ~4.5 us/tile; bigger
        # tiles only add padding + f32 intermediate footprint.
        return 256, 1
    if "v6" in kind:
        # Single TensorCore; bb=512 cuts per-grid-step overhead to ~12%.
        return 512, 1
    # v7x (and other megacore parts): 2 TensorCores -> force >= 2 grid steps so
    # dimension_semantics=("parallel",) shards the batch across both cores.
    return 512, 2


def _resident_spec(shape):
    # Constant index_map => fetched once and kept resident across grid steps.
    return pl.BlockSpec(shape, lambda i: (0,) * len(shape))


def _build_call(bb, b_pad, weight_dtype):
    grid = (b_pad // bb,)
    flops = 2 * b_pad * (D_IN * D_H + D_H * D_H + D_H * D_OUT)
    w_itemsize = jnp.dtype(weight_dtype).itemsize
    bytes_accessed = (
        (D_IN * D_H + D_H * D_H + D_H * D_OUT) * w_itemsize  # weights
        + (D_H + D_H + D_OUT) * 4                             # biases (f32)
        + b_pad * D_IN * 4                                    # x (f32)
        + b_pad * D_OUT * 4                                   # out (f32)
    )
    return pl.pallas_call(
        _mlp_kernel,
        out_shape=jax.ShapeDtypeStruct((b_pad, D_OUT), jnp.float32),
        grid_spec=pltpu.PrefetchScalarGridSpec(
            num_scalar_prefetch=0,
            grid=grid,
            in_specs=[
                pl.BlockSpec((bb, D_IN), lambda i: (i, 0)),  # x tile
                _resident_spec((D_IN, D_H)),                  # W1
                _resident_spec((1, D_H)),                     # b1
                _resident_spec((D_H, D_H)),                   # W2
                _resident_spec((1, D_H)),                     # b2
                _resident_spec((D_H, D_OUT)),                 # W3
                _resident_spec((1, D_OUT)),                   # b3
            ],
            out_specs=pl.BlockSpec((bb, D_OUT), lambda i: (i, 0)),
        ),
        compiler_params=pltpu.CompilerParams(
            dimension_semantics=("parallel",),   # batch axis -> megacore
            vmem_limit_bytes=24 * 1024 * 1024,   # peak usage ~15 MiB at bb=512
        ),
        cost_estimate=pl.CostEstimate(
            flops=flops, transcendentals=0, bytes_accessed=bytes_accessed),
    )


def prepare_params(params, compute_dtype=jnp.bfloat16):
    """Cast weights ONCE to the matmul compute dtype; biases stay f32.

    Call this once (e.g. after init / checkpoint load) and reuse the result so
    the forward pass does not pay a weight-cast fusion on every call. Pass
    compute_dtype=jnp.float32 for bit-accurate (but ~2x slower MXU) matmuls.
    """
    w1, b1, w2, b2, w3, b3 = params
    return (
        w1.astype(compute_dtype), b1.astype(jnp.float32),
        w2.astype(compute_dtype), b2.astype(jnp.float32),
        w3.astype(compute_dtype), b3.astype(jnp.float32),
    )


def image_model_forward(x, params, *, block_b=None):
    """Fused MLP forward.  x: [B, 512] float32 -> [B, 128] float32.

    `params` should come from prepare_params() (weights already in their
    compute dtype); they are used as-is, with no per-call casting.
    """
    w1, b1, w2, b2, w3, b3 = params
    B = x.shape[0]

    auto_block_b, min_steps = _device_tiling()
    if block_b is None:
        block_b = auto_block_b

    # Near-equal tiles: pick the number of grid steps first, then size the tile
    # as cdiv(B, n_tiles) rounded up to the sublane granule (8). Worst-case
    # padding is < 8 rows per tile instead of up to block_b - 1 rows total.
    n_tiles = max(pl.cdiv(B, block_b), min_steps if B > 8 else 1)
    bb = _round_up(pl.cdiv(B, n_tiles), 8)
    b_pad = n_tiles * bb

    xx = x
    if b_pad != B:
        xx = jnp.pad(x, ((0, b_pad - B), (0, 0)))

    out = _build_call(bb, b_pad, w1.dtype)(
        xx, w1, b1, w2, b2, w3, b3)

    return out[:B] if b_pad != B else out


def init_params(key):
    """Deterministic init mimicking PyTorch nn.Linear default (U(-1/sqrt(fan_in), +))."""
    ks = jax.random.split(key, 6)

    def linear(kw, kb, fan_in, fan_out):
        bound = 1.0 / jnp.sqrt(fan_in)
        w = jax.random.uniform(kw, (fan_in, fan_out), jnp.float32, -bound, bound)
        b = jax.random.uniform(kb, (1, fan_out), jnp.float32, -bound, bound)
        return w, b

    w1, b1 = linear(ks[0], ks[1], D_IN, D_H)
    w2, b2 = linear(ks[2], ks[3], D_H, D_H)
    w3, b3 = linear(ks[4], ks[5], D_H, D_OUT)
    return (w1, b1, w2, b2, w3, b3)


def _reference(x, params):
    w1, b1, w2, b2, w3, b3 = params
    h = jnp.maximum(x @ w1 + b1, 0.0)
    h = jnp.maximum(h @ w2 + b2, 0.0)
    return jnp.maximum(h @ w3 + b3, 0.0)


if __name__ == "__main__":
    key = jax.random.PRNGKey(0)
    k_x, k_p = jax.random.split(key)

    # Small, ragged batch (exercises the pad+slice path); feature dims are
    # fixed by the module (512 -> 1024 -> 1024 -> 128).
    B = 12
    x = jax.random.normal(k_x, (B, D_IN), jnp.float32)
    params_f32 = init_params(k_p)

    # Cast weights to bf16 exactly once, outside the per-call path.
    params = prepare_params(params_f32, compute_dtype=jnp.bfloat16)

    out = image_model_forward(x, params)
    out = jax.block_until_ready(out)

    ref = _reference(x, params_f32)
    assert out.shape == (B, D_OUT)
    # bf16 matmul inputs with f32 accumulation => loose-but-tight-enough tolerance.
    assert jnp.allclose(out, ref, atol=2e-2, rtol=2e-2), "mismatch vs reference"

    print("KERNEL_OK")
</pallas_src>

<mosaic_0001>
module attributes {stable_mosaic.version = 11 : i64} {
  func.func @_mlp_kernel(%arg0: i32, %arg1: memref<8x512xf32, #tpu.memory_space<vmem>>, %arg2: memref<512x1024xbf16, #tpu.memory_space<vmem>>, %arg3: memref<1x1024xf32, #tpu.memory_space<vmem>>, %arg4: memref<1024x1024xbf16, #tpu.memory_space<vmem>>, %arg5: memref<1x1024xf32, #tpu.memory_space<vmem>>, %arg6: memref<1024x128xbf16, #tpu.memory_space<vmem>>, %arg7: memref<1x128xf32, #tpu.memory_space<vmem>>, %arg8: memref<8x128xf32, #tpu.memory_space<vmem>>) attributes {dimension_semantics = [#tpu.dimension_semantics<parallel>], iteration_bounds = array<i64: 2>, scalar_prefetch = 0 : i64, scratch_operands = 0 : i64, tpu.core_type = #tpu.core_type<tc>, window_params = [{transform_indices = @transform_0, window_bounds = array<i64: 8, 512>}, {pipeline_mode = #tpu.pipeline_mode<synchronous>, transform_indices = @transform_1, window_bounds = array<i64: 512, 1024>}, {pipeline_mode = #tpu.pipeline_mode<synchronous>, transform_indices = @transform_2, window_bounds = array<i64: 1, 1024>}, {pipeline_mode = #tpu.pipeline_mode<synchronous>, transform_indices = @transform_3, window_bounds = array<i64: 1024, 1024>}, {pipeline_mode = #tpu.pipeline_mode<synchronous>, transform_indices = @transform_4, window_bounds = array<i64: 1, 1024>}, {pipeline_mode = #tpu.pipeline_mode<synchronous>, transform_indices = @transform_5, window_bounds = array<i64: 1024, 128>}, {pipeline_mode = #tpu.pipeline_mode<synchronous>, transform_indices = @transform_6, window_bounds = array<i64: 1, 128>}, {transform_indices = @transform_7, window_bounds = array<i64: 8, 128>}]} {
    %c0 = arith.constant 0 : index
    %c0_0 = arith.constant 0 : index
    %0 = vector.load %arg1[%c0, %c0_0] : memref<8x512xf32, #tpu.memory_space<vmem>>, vector<8x512xf32>
    %1 = arith.truncf %0 : vector<8x512xf32> to vector<8x512xbf16>
    %c0_1 = arith.constant 0 : index
    %c0_2 = arith.constant 0 : index
    %2 = vector.load %arg2[%c0_1, %c0_2] : memref<512x1024xbf16, #tpu.memory_space<vmem>>, vector<512x1024xbf16>
    %cst = arith.constant dense<0.000000e+00> : vector<8x1024xf32>
    %3 = tpu.matmul %1, %2, %cst {dimension_numbers = #tpu.dot_dimension_numbers<[1], [0], [0], [1], [0, 0, 1, 1], [], []>} : vector<8x512xbf16>, vector<512x1024xbf16>, vector<8x1024xf32> -> vector<8x1024xf32>
    %c0_3 = arith.constant 0 : index
    %c0_4 = arith.constant 0 : index
    %4 = vector.load %arg3[%c0_3, %c0_4] : memref<1x1024xf32, #tpu.memory_space<vmem>>, vector<1x1024xf32>
    %5 = vector.broadcast %4 : vector<1x1024xf32> to vector<8x1024xf32>
    %6 = arith.addf %3, %5 : vector<8x1024xf32>
    %cst_5 = arith.constant 0.000000e+00 : f32
    %7 = vector.broadcast %cst_5 : f32 to vector<8x1024xf32>
    %8 = arith.maximumf %6, %7 : vector<8x1024xf32>
    %9 = arith.truncf %8 : vector<8x1024xf32> to vector<8x1024xbf16>
    %c0_6 = arith.constant 0 : index
    %c0_7 = arith.constant 0 : index
    %10 = vector.load %arg4[%c0_6, %c0_7] : memref<1024x1024xbf16, #tpu.memory_space<vmem>>, vector<1024x1024xbf16>
    %cst_8 = arith.constant dense<0.000000e+00> : vector<8x1024xf32>
    %11 = tpu.matmul %9, %10, %cst_8 {dimension_numbers = #tpu.dot_dimension_numbers<[1], [0], [0], [1], [0, 0, 1, 1], [], []>} : vector<8x1024xbf16>, vector<1024x1024xbf16>, vector<8x1024xf32> -> vector<8x1024xf32>
    %c0_9 = arith.constant 0 : index
    %c0_10 = arith.constant 0 : index
    %12 = vector.load %arg5[%c0_9, %c0_10] : memref<1x1024xf32, #tpu.memory_space<vmem>>, vector<1x1024xf32>
    %13 = vector.broadcast %12 : vector<1x1024xf32> to vector<8x1024xf32>
    %14 = arith.addf %11, %13 : vector<8x1024xf32>
    %cst_11 = arith.constant 0.000000e+00 : f32
    %15 = vector.broadcast %cst_11 : f32 to vector<8x1024xf32>
    %16 = arith.maximumf %14, %15 : vector<8x1024xf32>
    %17 = arith.truncf %16 : vector<8x1024xf32> to vector<8x1024xbf16>
    %c0_12 = arith.constant 0 : index
    %c0_13 = arith.constant 0 : index
    %18 = vector.load %arg6[%c0_12, %c0_13] : memref<1024x128xbf16, #tpu.memory_space<vmem>>, vector<1024x128xbf16>
    %cst_14 = arith.constant dense<0.000000e+00> : vector<8x128xf32>
    %19 = tpu.matmul %17, %18, %cst_14 {dimension_numbers = #tpu.dot_dimension_numbers<[1], [0], [0], [1], [0, 0, 1, 1], [], []>} : vector<8x1024xbf16>, vector<1024x128xbf16>, vector<8x128xf32> -> vector<8x128xf32>
    %c0_15 = arith.constant 0 : index
    %c0_16 = arith.constant 0 : index
    %20 = vector.load %arg7[%c0_15, %c0_16] : memref<1x128xf32, #tpu.memory_space<vmem>>, vector<1x128xf32>
    %21 = vector.broadcast %20 : vector<1x128xf32> to vector<8x128xf32>
    %22 = arith.addf %19, %21 : vector<8x128xf32>
    %cst_17 = arith.constant 0.000000e+00 : f32
    %23 = vector.broadcast %cst_17 : f32 to vector<8x128xf32>
    %24 = arith.maximumf %22, %23 : vector<8x128xf32>
    %c0_18 = arith.constant 0 : index
    %c0_19 = arith.constant 0 : index
    %25 = vector.load %arg8[%c0_18, %c0_19] : memref<8x128xf32, #tpu.memory_space<vmem>>, vector<8x128xf32>
    tpu.vector_store %arg8[%c0_18, %c0_19], %24 {strides = array<i32>} : memref<8x128xf32, #tpu.memory_space<vmem>>, vector<8x128xf32>,
    return
  }
  func.func @transform_0(%arg0: i32) -> (i32, i32) {
    %c0_i32 = arith.constant 0 : i32
    %c0_i32_0 = arith.constant 0 : i32
    return %arg0, %c0_i32 : i32, i32
  }
  func.func @transform_1(%arg0: i32) -> (i32, i32) {
    %c0_i32 = arith.constant 0 : i32
    %c0_i32_0 = arith.constant 0 : i32
    %c0_i32_1 = arith.constant 0 : i32
    return %c0_i32, %c0_i32_0 : i32, i32
  }
  func.func @transform_2(%arg0: i32) -> (i32, i32) {
    %c0_i32 = arith.constant 0 : i32
    %c0_i32_0 = arith.constant 0 : i32
    %c0_i32_1 = arith.constant 0 : i32
    return %c0_i32, %c0_i32_0 : i32, i32
  }
  func.func @transform_3(%arg0: i32) -> (i32, i32) {
    %c0_i32 = arith.constant 0 : i32
    %c0_i32_0 = arith.constant 0 : i32
    %c0_i32_1 = arith.constant 0 : i32
    return %c0_i32, %c0_i32_0 : i32, i32
  }
  func.func @transform_4(%arg0: i32) -> (i32, i32) {
    %c0_i32 = arith.constant 0 : i32
    %c0_i32_0 = arith.constant 0 : i32
    %c0_i32_1 = arith.constant 0 : i32
    return %c0_i32, %c0_i32_0 : i32, i32
  }
  func.func @transform_5(%arg0: i32) -> (i32, i32) {
    %c0_i32 = arith.constant 0 : i32
    %c0_i32_0 = arith.constant 0 : i32
    %c0_i32_1 = arith.constant 0 : i32
    return %c0_i32, %c0_i32_0 : i32, i32
  }
  func.func @transform_6(%arg0: i32) -> (i32, i32) {
    %c0_i32 = arith.constant 0 : i32
    %c0_i32_0 = arith.constant 0 : i32
    %c0_i32_1 = arith.constant 0 : i32
    return %c0_i32, %c0_i32_0 : i32, i32
  }
  func.func @transform_7(%arg0: i32) -> (i32, i32) {
    %c0_i32 = arith.constant 0 : i32
    %c0_i32_0 = arith.constant 0 : i32
    return %arg0, %c0_i32 : i32, i32
  }
}

</mosaic_0001>

<bundles_post_ra>
// kernel: tpu_custom_call.1
= control target key start
LH: loop header
LB: loop body
LE: loop exit
PB: predicated region body
PF: predicated region fallthrough
CT: control target
= control target key end

     0   :  { %s8778_s0 = inlined_call_operand.hbm [shape: f32[16,512], index: 0, kind: input, shape index: {}]   ;;  %s8779_s1 = inlined_call_operand.hbm [shape: bf16[512,1024], index: 1, kind: input, shape index: {}]   ;;  %s8780_s2 = inlined_call_operand.hbm [shape: f32[1,1024], index: 2, kind: input, shape index: {}]   ;;  %s8781_s3 = inlined_call_operand.hbm [shape: bf16[1024,1024], index: 3, kind: input, shape index: {}]   ;;  %s8782_s4 = inlined_call_operand.hbm [shape: f32[1,1024], index: 4, kind: input, shape index: {}]   ;;  %s8783_s5 = inlined_call_operand.hbm [shape: bf16[1024,128], index: 5, kind: input, shape index: {}]   ;;  %s8784_s6 = inlined_call_operand.hbm [shape: f32[1,128], index: 6, kind: input, shape index: {}]   ;;  %s8785_s7 = inlined_call_operand.hbm [shape: f32[16,128], index: 7, kind: output, shape index: {}]  }
   0x1   :  { %8790 = sst [smem:[#allocation20_spill]] %s8779_s1 }
   0x2   :  { %8791 = sst [smem:[#allocation21_spill]] %s8780_s2 }
   0x3   :  { %12 = vsyncpa [#allocation3], 0 }
   0x4   :  { %14 = vsyncpa [#allocation3 + $0x1], 0 }
   0x5   :  { %15 = vsyncpa [#allocation6], 0 }
   0x6   :  { %16 = vsyncpa [#allocation9], 0 }
   0x7   :  { %17 = vsyncpa [#allocation12], 0 }
   0x8   :  { %18 = vsyncpa [#allocation4], 0 }
   0x9   :  { %20 = vsyncpa [#allocation4 + $0x1], 0  ;;  %s8353_s24 = smov 0   ;;  %s8355_s25 = smov 0  }
   0xa   :  { %s8357_s26 = smov 0   ;;  %s8359_s27 = smov 0  }
   0xb LB: > { %s8301_s28 = smov [#allocation5]   ;;  %s8374_s30 = sadd.s32 4294967295, %s8299_s27   ;;  %s8299_s27 = sphi %s8359_s27, %s8817_s27   ;;  %s8295_s26 = sphi %s8357_s26, %s8816_s26   ;;  %s8291_s25 = sphi %s8355_s25, %s8815_s25   ;;  %s8287_s24 = sphi %s8353_s24, %s8814_s24  }
   0xc   : > { %s221_s29 = sshll.u32 %s8301_s28, 4  ;;  %p6916_p0 = scmp.ge.s32.totalorder %s8299_s27, 1  ;;  %s222_s29 = int_to_ptr.vmem [resolvable:$true] %s221_s29 }
   0xd   : > { %p8786_p1 = scmp.eq.s32.totalorder %s8374_s30, 0  ;;  %p209_p2 = scmp.lt.s32.totalorder %s8299_s27, 3 }
   0xe   : > { %s8302_s9 = smov [#allocation8]   ;;  %s8303_s12 = smov [#allocation11]  }
   0xf   : > { %p8379_p3 = pnand %p6916_p0, %p209_p2  ;;  %s245_s10 = sshll.u32 %s8302_s9, 4  ;;  %s8392_s10 = int_to_ptr.vmem [resolvable:$true] %s245_s10 }
  0x10   : > { %s269_s13 = sshll.u32 %s8303_s12, 4  ;;  %s8050_s15 = scalar_lea.vmem %s222_s29, 32768  ;;  %s8394_s13 = int_to_ptr.vmem [resolvable:$true] %s269_s13 }
  0x11   : > { %s8792_s8 = scalar_select %p8379_p3, 1, 0 }
  0x12   : > { %p7890_p5 = pneg %p8379_p3  ;;  %p8051_p8 = scmp.ne.s32.totalorder %s222_s29, %s8050_s15 }
  0x13   : > { %p8058_p11 = scmp.lt.s32.totalorder %s222_s29, %s222_s29  ;;  %p8059_p12 = scmp.lt.s32.totalorder %s8050_s15, %s8050_s15 }
  0x14   : > { %p8388_p6 = pnand %p7890_p5, %p8786_p1 }
  0x15   : > { %p8060_p13 = por %p8059_p12, %p8058_p11 }
  0x16   : > { %p8398_p7 = pneg %p8388_p6 }
  0x18   : > { %p8053_p9 = pnand %p8051_p8, %p8398_p7 }
  0x1a   : > { %p8054_p10 = pneg %p8053_p9 }
  0x1c   : > { %p8061_p0 = pnand %p8060_p13, %p8054_p10 }
  0x1e   : > { %8064 = shalt.err (!%p8061_p0)
}
  0x1f   : > { %s8304_s16 = smov 512   ;;  %s8305_s17 = smov 32  }
  0x20   : > { %s8795_s1 = sld [smem:[#allocation20_spill]]  ;;  %s8076_s20 = scalar_lea.vmem %s8392_s10, 65536 }
  0x21   : > { %p8077_p2 = scmp.ne.s32.totalorder %s8392_s10, %s8076_s20  ;;  %p8084_p9 = scmp.lt.s32.totalorder %s8392_s10, %s8392_s10 }
  0x22   : > { %p8085_p10 = scmp.lt.s32.totalorder %s8076_s20, %s8076_s20 }
  0x23   : > { %p8079_p5 = pnand %p8077_p2, %p8398_p7 }
  0x24   : > { %p8086_p11 = por %p8085_p10, %p8084_p9 }
  0x25   : > { %p8080_p8 = pneg %p8079_p5 }
  0x26   : > { %7893 = dma.hbm_to_vmem [thread:$0]  (!%p8388_p6), %s8795_s1, 32768, %s222_s29, [#allocation6], %s8304_s16, %s8304_s16, %s8305_s17  }
  0x27   : > { %p8087_p12 = pnand %p8086_p11, %p8080_p8 }
  0x29   : > { %8090 = shalt.err (!%p8087_p12)
}
  0x2a   : > { %7899 = dma.hbm_to_vmem [thread:$0]  (!%p8388_p6), %s8781_s3, 65536, %s8392_s10, [#allocation9], %s8304_s16, %s8304_s16, %s8305_s17  }
  0x2b   : > { %s8102_s23 = scalar_lea.vmem %s8394_s13, 8192  ;;  %p8110_p5 = scmp.lt.s32.totalorder %s8394_s13, %s8394_s13 }
  0x2c   : > { %p8103_p13 = scmp.ne.s32.totalorder %s8394_s13, %s8102_s23  ;;  %p8111_p8 = scmp.lt.s32.totalorder %s8102_s23, %s8102_s23 }
  0x2e   : > { %p8105_p0 = pnand %p8103_p13, %p8398_p7  ;;  %p8112_p9 = por %p8111_p8, %p8110_p5 }
  0x30   : > { %p8106_p2 = pneg %p8105_p0 }
  0x32   : > { %p8113_p10 = pnand %p8112_p9, %p8106_p2 }
  0x34   : > { %8116 = shalt.err (!%p8113_p10)
}
  0x35   : > { %s8306_s28 = smov 64   ;;  %s8307_s29 = smov 4  }
  0x36   : > { %7905 = dma.hbm_to_vmem [thread:$0]  (!%p8388_p6), %s8783_s5, 8192, %s8394_s13, [#allocation12], %s8306_s28, %s8306_s28, %s8307_s29  }
  0x37   : > { %s8308_s10 = smov [#allocation7]   ;;  %s8309_s16 = smov [#allocation10]  }
  0x38   : > { %s235_s15 = sshll.u32 %s8308_s10, 4  ;;  %s259_s17 = sshll.u32 %s8309_s16, 4  ;;  %s236_s15 = int_to_ptr.vmem [resolvable:$true] %s235_s15  ;;  %s260_s17 = int_to_ptr.vmem [resolvable:$true] %s259_s17 }
  0x39   : > { %s8128_s18 = scalar_lea.vmem %s236_s15, 128  ;;  %p8136_p0 = scmp.lt.s32.totalorder %s236_s15, %s236_s15 }
  0x3a   : > { %p8129_p11 = scmp.ne.s32.totalorder %s236_s15, %s8128_s18  ;;  %p8137_p2 = scmp.lt.s32.totalorder %s8128_s18, %s8128_s18 }
  0x3c   : > { %p8131_p12 = pnand %p8129_p11, %p8398_p7  ;;  %p8138_p5 = por %p8137_p2, %p8136_p0 }
  0x3e   : > { %p8132_p13 = pneg %p8131_p12 }
  0x40   : > { %p8139_p8 = pnand %p8138_p5, %p8132_p13 }
  0x42   : > { %8142 = shalt.err (!%p8139_p8)
}
  0x43   : > { %s8796_s2 = sld [smem:[#allocation21_spill]]  ;;  %s8154_s13 = scalar_lea.vmem %s260_s17, 128 }
  0x44   : > { %p8155_p9 = scmp.ne.s32.totalorder %s260_s17, %s8154_s13  ;;  %p8162_p11 = scmp.lt.s32.totalorder %s260_s17, %s260_s17 }
  0x45   : > { %p8163_p12 = scmp.lt.s32.totalorder %s8154_s13, %s8154_s13 }
  0x46   : > { %p8157_p10 = pnand %p8155_p9, %p8398_p7 }
  0x47   : > { %p8164_p1 = por %p8163_p12, %p8162_p11 }
  0x48   : > { %p8158_p4 = pneg %p8157_p10 }
  0x49   : > { %7896 = dma.hbm_to_vmem [thread:$0]  (!%p8388_p6), %s8796_s2, 128, %s236_s15, [#allocation6]  }
  0x4a   : > { %p8165_p3 = pnand %p8164_p1, %p8158_p4 }
  0x4c   : > { %8168 = shalt.err (!%p8165_p3)
}
  0x4d   : > { %7902 = dma.hbm_to_vmem [thread:$0]  (!%p8388_p6), %s8782_s4, 128, %s260_s17, [#allocation9]  }
  0x4e   : > { %s8310_s23 = smov [#allocation13]  }
  0x4f   : > { %s283_s28 = sshll.u32 %s8310_s23, 4  ;;  %s284_s28 = int_to_ptr.vmem [resolvable:$true] %s283_s28 }
  0x50   : > { %s8180_s29 = scalar_lea.vmem %s284_s28, 16  ;;  %s8187_s9 = scalar_lea.vmem %s284_s28, 32 }
  0x51   : > { %p8181_p13 = scmp.ne.s32.totalorder %s284_s28, %s8180_s29  ;;  %p8188_p5 = scmp.lt.s32.totalorder %s284_s28, %s284_s28 }
  0x52   : > { %p8189_p8 = scmp.lt.s32.totalorder %s8187_s9, %s8180_s29 }
  0x53   : > { %p8183_p0 = pnand %p8181_p13, %p8398_p7 }
  0x54   : > { %p8190_p1 = por %p8189_p8, %p8188_p5 }
  0x55   : > { %p8184_p2 = pneg %p8183_p0 }
  0x57   : > { %p8191_p3 = pnand %p8190_p1, %p8184_p2 }
  0x59   : > { %8194 = shalt.err (!%p8191_p3)
}
  0x5a   : > { %7908 = dma.hbm_to_vmem [thread:$0]  (!%p8388_p6), %s8784_s6, 16, %s284_s28, [#allocation12]  }
  0x5b   : > { %s6915_s14 = sadd.s32 4294967294, %s8299_s27   ;;  %s8456_s11 = sadd.s32 1, %s8299_s27  }
  0x5c   : > { %s30_s15 = ssub.s32 %s8299_s27, %s8456_s11  ;;  %s33_s16 = sadd.s32 1, %s8295_s26 }
  0x5d   : > { %p31_p4 = scmp.eq.s32.totalorder %s30_s15, 0  ;;  %p40_p7 = scmp.ne.s32.totalorder %s8295_s26, %s8291_s25 }
  0x5e   : > { %p41_p9 = scmp.eq.s32.totalorder %s8299_s27, 0  ;;  %p46_p10 = scmp.ne.s32.totalorder %s8291_s25, %s8287_s24 }
  0x5f   : > { %s8467_s17 = scalar_select %p31_p4, %s8295_s26, %s33_s16  }
  0x60   : > { %p8469_p11 = por %p41_p9, %p40_p7  ;;  %p8798_p12 = scmp.eq.s32.totalorder %s8374_s30, 0 }
  0x61   : > { %p196_p13 = scmp.eq.s32.totalorder %s8374_s30, 1  ;;  %p202_p0 = scmp.eq.s32.totalorder %s6915_s14, 1 }
  0x62   : > { %p8475_p6 = por %p8798_p12, %p46_p10  ;;  %p7923_p2 = scmp.lt.s32.totalorder %s8299_s27, 2 }
  0x63   : > { %s294_s20 = sand.u32 1, %s8295_s26   ;;  %p8482_p5 = por %p196_p13, %p40_p7 }
  0x64   : > { %s8799_s19 = scalar_select %p8475_p6, 1, 0 }
  0x65   : > { %s8800_s13 = scalar_select %p8482_p5, 1, 0 }
  0x66   : > { %p8486_p8 = por %p202_p0, %p46_p10  ;;  %s6924_s22 = sshll.u32 %s294_s20, 5 }
  0x67   : > { %s7773_s23 = sshll.u32 %s8299_s27, 9  ;;  %s298_s12 = scalar_lea.vmem [#allocation2], %s6924_s22 }
  0x68   : > { %s8801_s21 = scalar_select %p8486_p8, 1, 0 }
  0x69   : > { %s8494_s9 = scalar_lea.hbm %s8778_s0, %s7773_s23  ;;  %s306_s10 = sshll.u32 %s298_s12, 4  ;;  %s307_s10 = int_to_ptr.vmem [resolvable:$true] %s306_s10 }
  0x6a   : > { %p8498_p1 = pnand %p7923_p2, %p8469_p11  ;;  %s295_s15 = scalar_lea.sflag [#allocation3], %s294_s20 }
  0x6b   : > { %s8195_s16 = scalar_lea.hbm %s8494_s9, 512  ;;  %s8200_s29 = scalar_lea.hbm %s8778_s0, 1024 }
  0x6c   : > { %p8196_p3 = scmp.ne.s32.totalorder %s8494_s9, %s8195_s16  ;;  %p8197_p4 = pneg %p8498_p1 }
  0x6d   : > { %p8201_p10 = scmp.lt.s32.totalorder %s8494_s9, %s8778_s0  ;;  %p8202_p11 = scmp.lt.s32.totalorder %s8200_s29, %s8195_s16 }
  0x6e   : > { %p8198_p7 = pnand %p8197_p4, %p8196_p3 }
  0x6f   : > { %p8203_p12 = por %p8202_p11, %p8201_p10 }
  0x70   : > { %p8199_p9 = pneg %p8198_p7 }
  0x72   : > { %p8204_p13 = pnand %p8203_p12, %p8199_p9 }
  0x74   : > { %8207 = shalt.err (!%p8204_p13)
}
  0x75   : > { %s8208_s18 = scalar_lea.vmem %s307_s10, 512  ;;  %s8311_s20 = smov [#allocation2]  }
  0x76   : > { %p8209_p0 = scmp.ne.s32.totalorder %s307_s10, %s8208_s18  ;;  %s8213_s1 = sshll.u32 %s8311_s20, 4  ;;  %s8214_s1 = int_to_ptr.vmem [resolvable:$false] %s8213_s1 }
  0x77   : > { %s8215_s2 = scalar_lea.vmem %s8214_s1, 1024  ;;  %p8216_p3 = scmp.lt.s32.totalorder %s307_s10, %s8214_s1 }
  0x78   : > { %p8211_p2 = pnand %p8209_p0, %p8197_p4  ;;  %p8217_p7 = scmp.lt.s32.totalorder %s8215_s2, %s8208_s18 }
  0x7a   : > { %p8212_p8 = pneg %p8211_p2  ;;  %p8218_p5 = por %p8217_p7, %p8216_p3 }
  0x7c   : > { %p8219_p6 = pnand %p8218_p5, %p8212_p8 }
  0x7e   : > { %8222 = shalt.err (!%p8219_p6)
}
  0x7f   : > { %7912 = dma.hbm_to_vmem [thread:$0]  (!%p8498_p1), %s8494_s9, 512, %s307_s10, %s295_s15  }
  0x80   : > { %p8803_p9 = scmp.ne.s32.totalorder %s8792_s8, 0 }
  0x81   : > { %s8519_s16 = sand.u32 (!%p8803_p9), 1, %s8291_s25   ;;  %p8804_p4 = scmp.ne.s32.totalorder (!%p8803_p9), %s8799_s19, 0 }
  0x82   : > { %315 = sbr.rel (%p8803_p9) target bundleno = 1410 (0x582), region = 48  ;;  %s6928_s23 = sshll.u32 (!%p8803_p9), %s8519_s16, 5 }
  0x83   : > { %s318_s28 = scalar_lea.sflag (!%p8803_p9), [#allocation3], %s8519_s16  ;;  %s8523_s1 = scalar_lea.vmem (!%p8803_p9), [#allocation2], %s6928_s23 }
  0x87   : > { %8266 = dma.done.wait (%p8804_p4), %s318_s28, 512  }
  0x88   : > { %8268 = vsyncadd (%p8804_p4), %s318_s28, 4294966784  ;;  %p8805_p6 = scmp.eq.s32.totalorder %s8374_s30, 0 }
  0x8a   : > { %8270 = dma.done.wait (%p8805_p6), [#allocation6], 32896   ;;  %p8806_p5 = pmov %p8805_p6 }
  0x8c   : > { %8272 = vsyncadd (%p8806_p5), [#allocation6], 4294934400  ;;  %p8807_p8 = pmov %p8806_p5 }
  0x8d   : > { %p8808_p1 = pmov %p8806_p5 }
  0x8e   : > { %8274 = dma.done.wait (%p8807_p8), [#allocation9], 65664  }
  0x8f   : > { %8276 = vsyncadd (%p8808_p1), [#allocation9], 4294901632  ;;  %p8809_p10 = pmov %p8808_p1 }
  0x90   : > { %p8810_p11 = pmov %p8808_p1 }
  0x91   : > { %8278 = dma.done.wait (%p8809_p10), [#allocation12], 8208  }
  0x92   : > { %8280 = vsyncadd (%p8810_p11), [#allocation12], 4294959088  ;;  %v441_v0 = vld [vmem:[#allocation5 + $0x1c0] sm:$0xff]  ;;  %v378_v53 = vld [vmem:[%s8523_s1 + $0x8] sm:$0xff]  ;;  %s6935_s2 = sshll.u32 %s8519_s16, 3  ;;  %s7770_s8 = sshll.u32 %s8374_s30, 7 }
  0x93   : > { %v445_v1 = vld [vmem:[#allocation5 + $0x1e0] sm:$0xff]  ;;  %v380_v54 = vld [vmem:[%s8523_s1 + $0x18] sm:$0xff]  ;;  %v8543_v58 = vpack.c.bf16 %v378_v53, %v378_v53  ;;  %s375_s19 = scalar_lea.vmem [#allocation14], %s6935_s2  ;;  %s6786_s15 = scalar_lea.hbm %s8785_s7, %s7770_s8 }
  0x94   : > { %v569_v2 = vld [vmem:[#allocation5 + $0x5c0] sm:$0xff]  ;;  %v6993_v3 = vcombine.high %v441_v0, %v445_v1  ;;  %v6992_v5 = vcombine.low %v441_v0, %v445_v1  ;;  %v8545_v59 = vpack.c.bf16 %v380_v54, %v380_v54  ;;  %s6788_s9 = sshll.u32 %s375_s19, 4  ;;  %s6775_s29 = scalar_lea.sflag [#allocation4], %s8519_s16  ;;  %s6789_s9 = int_to_ptr.vmem [resolvable:$true] %s6788_s9 }
  0x95   : > { %v573_v4 = vld [vmem:[#allocation5 + $0x5e0] sm:$0xff]  ;;  %1995 = vmatprep.mubr.bf16.mxu0 %v8543_v58  ;;  %s8223_s22 = scalar_lea.vmem %s6789_s9, 128  ;;  %p8811_p13 = scmp.ne.s32.totalorder %s8800_s13, 0 }
  0x96   : > { %v433_v6 = vld [vmem:[#allocation5 + $0x180] sm:$0xff]  ;;  %v7121_v8 = vcombine.high %v569_v2, %v573_v4  ;;  %v7120_v9 = vcombine.low %v569_v2, %v573_v4  ;;  %1963 = vmatprep.subr.bf16.mxu0 %v6993_v3  ;;  %2036 = vmatprep.mubr.bf16.mxu1 %v8545_v59  ;;  %p8224_p12 = scmp.ne.s32.totalorder %s6789_s9, %s8223_s22  ;;  %s8312_s12 = smov [#allocation14]  }
  0x97   : > { %v437_v7 = vld [vmem:[#allocation5 + $0x1a0] sm:$0xff]  ;;  %1964 = vmatpush1.bf16.msra.mxu0 %v6992_v5  ;;  %s8227_s18 = sshll.u32 %s8312_s12, 4  ;;  %s8228_s18 = int_to_ptr.vmem [resolvable:$false] %s8227_s18 }
  0x98   : > { %v6985_v10 = vcombine.high %v433_v6, %v437_v7  ;;  %v561_v11 = vld [vmem:[#allocation5 + $0x580] sm:$0xff]  ;;  %2004 = vmatprep.subr.bf16.mxu1 %v7121_v8  ;;  %v6984_v18 = vcombine.low %v433_v6, %v437_v7  ;;  %p8225_p0 = pnand %p8224_p12, %p8811_p13  ;;  %s8229_s30 = scalar_lea.vmem %s8228_s18, 256 }
  0x99   : > { %v565_v12 = vld [vmem:[#allocation5 + $0x5a0] sm:$0xff]  ;;  %2005 = vmatpush1.bf16.msra.mxu1 %v7120_v9  ;;  %p8230_p3 = scmp.lt.s32.totalorder %s6789_s9, %s8228_s18  ;;  %p8231_p7 = scmp.lt.s32.totalorder %s8229_s30, %s8223_s22 }
  0x9a   : > { %v425_v13 = vld [vmem:[#allocation5 + $0x140] sm:$0xff]  ;;  %v7113_v14 = vcombine.high %v561_v11, %v565_v12  ;;  %1965 = vmatprep.subr.bf16.mxu0 %v6985_v10  ;;  %v7112_v19 = vcombine.low %v561_v11, %v565_v12  ;;  %p8226_p2 = pneg %p8225_p0 }
  0x9b   : > { %v429_v15 = vld [vmem:[#allocation5 + $0x160] sm:$0xff]  ;;  %1966 = vmatpush1.bf16.msra.mxu0 %v6984_v18  ;;  %p8232_p9 = por %p8231_p7, %p8230_p3 }
  0x9c   : > { %v553_v16 = vld [vmem:[#allocation5 + $0x540] sm:$0xff]  ;;  %v6977_v20 = vcombine.high %v425_v13, %v429_v15  ;;  %2006 = vmatprep.subr.bf16.mxu1 %v7113_v14  ;;  %v6976_v26 = vcombine.low %v425_v13, %v429_v15 }
  0x9d   : > { %v557_v17 = vld [vmem:[#allocation5 + $0x560] sm:$0xff]  ;;  %2007 = vmatpush1.bf16.msra.mxu1 %v7112_v19  ;;  %p8233_p4 = pnand %p8232_p9, %p8226_p2 }
  0x9e   : > { %v7105_v21 = vcombine.high %v553_v16, %v557_v17  ;;  %v417_v22 = vld [vmem:[#allocation5 + $0x100] sm:$0xff]  ;;  %1967 = vmatprep.subr.bf16.mxu0 %v6977_v20  ;;  %v7104_v27 = vcombine.low %v553_v16, %v557_v17 }
  0x9f   : > { %v421_v23 = vld [vmem:[#allocation5 + $0x120] sm:$0xff]  ;;  %1968 = vmatpush1.bf16.msra.mxu0 %v6976_v26 }
  0xa0   : > { %v545_v24 = vld [vmem:[#allocation5 + $0x500] sm:$0xff]  ;;  %v6969_v28 = vcombine.high %v417_v22, %v421_v23  ;;  %2008 = vmatprep.subr.bf16.mxu1 %v7105_v21  ;;  %v6968_v34 = vcombine.low %v417_v22, %v421_v23 }
  0xa1   : > { %v549_v25 = vld [vmem:[#allocation5 + $0x520] sm:$0xff]  ;;  %2009 = vmatpush1.bf16.msra.mxu1 %v7104_v27 }
  0xa2   : > { %v7097_v29 = vcombine.high %v545_v24, %v549_v25  ;;  %v409_v30 = vld [vmem:[#allocation5 + $0xc0] sm:$0xff]  ;;  %1969 = vmatprep.subr.bf16.mxu0 %v6969_v28  ;;  %v7096_v35 = vcombine.low %v545_v24, %v549_v25 }
  0xa3   : > { %v413_v31 = vld [vmem:[#allocation5 + $0xe0] sm:$0xff]  ;;  %1970 = vmatpush1.bf16.msra.mxu0 %v6968_v34 }
  0xa4   : > { %v537_v32 = vld [vmem:[#allocation5 + $0x4c0] sm:$0xff]  ;;  %v6961_v36 = vcombine.high %v409_v30, %v413_v31  ;;  %2010 = vmatprep.subr.bf16.mxu1 %v7097_v29  ;;  %v6960_v42 = vcombine.low %v409_v30, %v413_v31 }
  0xa5   : > { %v541_v33 = vld [vmem:[#allocation5 + $0x4e0] sm:$0xff]  ;;  %2011 = vmatpush1.bf16.msra.mxu1 %v7096_v35 }
  0xa6   : > { %v7089_v37 = vcombine.high %v537_v32, %v541_v33  ;;  %v401_v38 = vld [vmem:[#allocation5 + $0x80] sm:$0xff]  ;;  %1971 = vmatprep.subr.bf16.mxu0 %v6961_v36  ;;  %v7088_v43 = vcombine.low %v537_v32, %v541_v33 }
  0xa7   : > { %v405_v39 = vld [vmem:[#allocation5 + $0xa0] sm:$0xff]  ;;  %1972 = vmatpush1.bf16.msra.mxu0 %v6960_v42 }
  0xa8   : > { %v529_v40 = vld [vmem:[#allocation5 + $0x480] sm:$0xff]  ;;  %v6953_v44 = vcombine.high %v401_v38, %v405_v39  ;;  %2012 = vmatprep.subr.bf16.mxu1 %v7089_v37  ;;  %v6952_v50 = vcombine.low %v401_v38, %v405_v39 }
  0xa9   : > { %v533_v41 = vld [vmem:[#allocation5 + $0x4a0] sm:$0xff]  ;;  %2013 = vmatpush1.bf16.msra.mxu1 %v7088_v43 }
  0xaa   : > { %v7081_v45 = vcombine.high %v529_v40, %v533_v41  ;;  %v393_v46 = vld [vmem:[#allocation5 + $0x40] sm:$0xff]  ;;  %1973 = vmatprep.subr.bf16.mxu0 %v6953_v44  ;;  %v7080_v51 = vcombine.low %v529_v40, %v533_v41 }
  0xab   : > { %v397_v47 = vld [vmem:[#allocation5 + $0x60] sm:$0xff]  ;;  %1974 = vmatpush1.bf16.msra.mxu0 %v6952_v50 }
  0xac   : > { %v521_v48 = vld [vmem:[#allocation5 + $0x440] sm:$0xff]  ;;  %v6945_v52 = vcombine.high %v393_v46, %v397_v47  ;;  %2014 = vmatprep.subr.bf16.mxu1 %v7081_v45  ;;  %v6944_v62 = vcombine.low %v393_v46, %v397_v47 }
  0xad   : > { %v525_v49 = vld [vmem:[#allocation5 + $0x460] sm:$0xff]  ;;  %2015 = vmatpush1.bf16.msra.mxu1 %v7080_v51 }
  0xae   : > { %v7073_v55 = vcombine.high %v521_v48, %v525_v49  ;;  %v385_v56 = vld [vmem:[#allocation5] sm:$0xff]  ;;  %1975 = vmatprep.subr.bf16.mxu0 %v6945_v52  ;;  %v7072_v63 = vcombine.low %v521_v48, %v525_v49 }
  0xaf   : > { %v389_v57 = vld [vmem:[#allocation5 + $0x20] sm:$0xff]  ;;  %1976 = vmatpush1.bf16.msra.mxu0 %v6944_v62 }
  0xb0   : > { %v513_v60 = vld [vmem:[#allocation5 + $0x400] sm:$0xff]  ;;  %v6937_v0 = vcombine.high %v385_v56, %v389_v57  ;;  %2016 = vmatprep.subr.bf16.mxu1 %v7073_v55  ;;  %v6936_v6 = vcombine.low %v385_v56, %v389_v57 }
  0xb1   : > { %v517_v61 = vld [vmem:[#allocation5 + $0x420] sm:$0xff]  ;;  %2017 = vmatpush1.bf16.msra.mxu1 %v7072_v63 }
  0xb2   : > { %v7065_v1 = vcombine.high %v513_v60, %v517_v61  ;;  %v505_v2 = vld [vmem:[#allocation5 + $0x3c0] sm:$0xff]  ;;  %1977 = vmatprep.subr.bf16.mxu0 %v6937_v0  ;;  %v7064_v7 = vcombine.low %v513_v60, %v517_v61 }
  0xb3   : > { %v509_v3 = vld [vmem:[#allocation5 + $0x3e0] sm:$0xff]  ;;  %1978 = vmatpush1.bf16.msra.mxu0 %v6936_v6  ;;  %v570_v6 = vld [vmem:[#allocation5 + $0x5c8] sm:$0xff] }
  0xb4   : > { %v633_v4 = vld [vmem:[#allocation5 + $0x7c0] sm:$0xff]  ;;  %v7057_v8 = vcombine.high %v505_v2, %v509_v3  ;;  %2018 = vmatprep.subr.bf16.mxu1 %v7065_v1  ;;  %v7056_v14 = vcombine.low %v505_v2, %v509_v3 }
  0xb5   : > { %v637_v5 = vld [vmem:[#allocation5 + $0x7e0] sm:$0xff]  ;;  %2019 = vmatpush1.bf16.msra.mxu1 %v7064_v7  ;;  %v574_v7 = vld [vmem:[#allocation5 + $0x5e8] sm:$0xff] }
  0xb6   : > { %v7185_v9 = vcombine.high %v633_v4, %v637_v5  ;;  %v497_v10 = vld [vmem:[#allocation5 + $0x380] sm:$0xff]  ;;  %1979 = vmatprep.subr.bf16.mxu0 %v7057_v8  ;;  %v7184_v15 = vcombine.low %v633_v4, %v637_v5  ;;  %v442_v4 = vld [vmem:[#allocation5 + $0x1c8] sm:$0xff] }
  0xb7   : > { %v501_v11 = vld [vmem:[#allocation5 + $0x3a0] sm:$0xff]  ;;  %1980 = vmatpush2.bf16.msra.mxu0 %v7056_v14  ;;  %v446_v5 = vld [vmem:[#allocation5 + $0x1e8] sm:$0xff] }
  0xb8   : > { %v625_v12 = vld [vmem:[#allocation5 + $0x780] sm:$0xff]  ;;  %v7049_v16 = vcombine.high %v497_v10, %v501_v11  ;;  %2020 = vmatprep.subr.bf16.mxu1 %v7185_v9  ;;  %v7048_v22 = vcombine.low %v497_v10, %v501_v11  ;;  %v379_v11 = vld [vmem:[%s8523_s1 + $0x10] sm:$0xff]  ;;  %v434_v14 = vld [vmem:[#allocation5 + $0x188] sm:$0xff] }
  0xb9   : > { %v629_v13 = vld [vmem:[#allocation5 + $0x7a0] sm:$0xff]  ;;  %2021 = vmatpush2.bf16.msra.mxu1 %v7184_v15  ;;  %v438_v15 = vld [vmem:[#allocation5 + $0x1a8] sm:$0xff] }
  0xba   : > { %v7177_v17 = vcombine.high %v625_v12, %v629_v13  ;;  %v489_v18 = vld [vmem:[#allocation5 + $0x340] sm:$0xff]  ;;  %1981 = vmatprep.subr.bf16.mxu0 %v7049_v16  ;;  %v7176_v23 = vcombine.low %v625_v12, %v629_v13  ;;  %v6995_v12 = vcombine.high %v442_v4, %v446_v5  ;;  %v7123_v13 = vcombine.high %v570_v6, %v574_v7 }
  0xbb   : > { %v493_v19 = vld [vmem:[#allocation5 + $0x360] sm:$0xff]  ;;  %1982 = vmatpush2.bf16.msra.mxu0 %v7048_v22  ;;  %v6987_v22 = vcombine.high %v434_v14, %v438_v15 }
  0xbc   : > { %v617_v20 = vld [vmem:[#allocation5 + $0x740] sm:$0xff]  ;;  %v7041_v24 = vcombine.high %v489_v18, %v493_v19  ;;  %2022 = vmatprep.subr.bf16.mxu1 %v7177_v17  ;;  %v7040_v30 = vcombine.low %v489_v18, %v493_v19  ;;  %v562_v17 = vld [vmem:[#allocation5 + $0x588] sm:$0xff]  ;;  %v8553_v19 = vpack.c.bf16 %v379_v11, %v379_v11 }
  0xbd   : > { %v621_v21 = vld [vmem:[#allocation5 + $0x760] sm:$0xff]  ;;  %2023 = vmatpush2.bf16.msra.mxu1 %v7176_v23  ;;  %v566_v18 = vld [vmem:[#allocation5 + $0x5a8] sm:$0xff] }
  0xbe   : > { %v7169_v25 = vcombine.high %v617_v20, %v621_v21  ;;  %v481_v26 = vld [vmem:[#allocation5 + $0x300] sm:$0xff]  ;;  %1983 = vmatprep.subr.bf16.mxu0 %v7041_v24  ;;  %v7168_v31 = vcombine.low %v617_v20, %v621_v21  ;;  %v6994_v20 = vcombine.low %v442_v4, %v446_v5  ;;  %v7122_v21 = vcombine.low %v570_v6, %v574_v7  ;;  %v426_v23 = vld [vmem:[#allocation5 + $0x148] sm:$0xff] }
  0xbf   : > { %v485_v27 = vld [vmem:[#allocation5 + $0x320] sm:$0xff]  ;;  %1984 = vmatpush2.bf16.msra.mxu0 %v7040_v30  ;;  %v430_v24 = vld [vmem:[#allocation5 + $0x168] sm:$0xff] }
  0xc0   : > { %v609_v28 = vld [vmem:[#allocation5 + $0x700] sm:$0xff]  ;;  %v7033_v32 = vcombine.high %v481_v26, %v485_v27  ;;  %2024 = vmatprep.subr.bf16.mxu1 %v7169_v25  ;;  %v7032_v38 = vcombine.low %v481_v26, %v485_v27  ;;  %v7115_v25 = vcombine.high %v562_v17, %v566_v18  ;;  %v554_v26 = vld [vmem:[#allocation5 + $0x548] sm:$0xff]  ;;  %v6979_v30 = vcombine.high %v426_v23, %v430_v24 }
  0xc1   : > { %v613_v29 = vld [vmem:[#allocation5 + $0x720] sm:$0xff]  ;;  %2025 = vmatpush2.bf16.msra.mxu1 %v7168_v31  ;;  %v558_v27 = vld [vmem:[#allocation5 + $0x568] sm:$0xff] }
  0xc2   : > { %v7161_v33 = vcombine.high %v609_v28, %v613_v29  ;;  %v473_v34 = vld [vmem:[#allocation5 + $0x2c0] sm:$0xff]  ;;  %1985 = vmatprep.subr.bf16.mxu0 %v7033_v32  ;;  %v7160_v39 = vcombine.low %v609_v28, %v613_v29  ;;  %v6986_v28 = vcombine.low %v434_v14, %v438_v15  ;;  %v7114_v29 = vcombine.low %v562_v17, %v566_v18  ;;  %v418_v31 = vld [vmem:[#allocation5 + $0x108] sm:$0xff] }
  0xc3   : > { %v477_v35 = vld [vmem:[#allocation5 + $0x2e0] sm:$0xff]  ;;  %1986 = vmatpush2.bf16.msra.mxu0 %v7032_v38  ;;  %v422_v32 = vld [vmem:[#allocation5 + $0x128] sm:$0xff] }
  0xc4   : > { %v601_v36 = vld [vmem:[#allocation5 + $0x6c0] sm:$0xff]  ;;  %v7025_v40 = vcombine.high %v473_v34, %v477_v35  ;;  %2026 = vmatprep.subr.bf16.mxu1 %v7161_v33  ;;  %v7024_v46 = vcombine.low %v473_v34, %v477_v35  ;;  %v546_v33 = vld [vmem:[#allocation5 + $0x508] sm:$0xff]  ;;  %v7107_v34 = vcombine.high %v554_v26, %v558_v27  ;;  %v6971_v38 = vcombine.high %v418_v31, %v422_v32 }
  0xc5   : > { %v605_v37 = vld [vmem:[#allocation5 + $0x6e0] sm:$0xff]  ;;  %2027 = vmatpush2.bf16.msra.mxu1 %v7160_v39  ;;  %v550_v35 = vld [vmem:[#allocation5 + $0x528] sm:$0xff] }
  0xc6   : > { %v7153_v41 = vcombine.high %v601_v36, %v605_v37  ;;  %v465_v42 = vld [vmem:[#allocation5 + $0x280] sm:$0xff]  ;;  %1987 = vmatprep.subr.bf16.mxu0 %v7025_v40  ;;  %v7152_v47 = vcombine.low %v601_v36, %v605_v37  ;;  %v6978_v36 = vcombine.low %v426_v23, %v430_v24  ;;  %v7106_v37 = vcombine.low %v554_v26, %v558_v27  ;;  %v410_v39 = vld [vmem:[#allocation5 + $0xc8] sm:$0xff] }
  0xc7   : > { %v469_v43 = vld [vmem:[#allocation5 + $0x2a0] sm:$0xff]  ;;  %1988 = vmatpush2.bf16.msra.mxu0 %v7024_v46  ;;  %v414_v40 = vld [vmem:[#allocation5 + $0xe8] sm:$0xff] }
  0xc8   : > { %v593_v44 = vld [vmem:[#allocation5 + $0x680] sm:$0xff]  ;;  %v7017_v48 = vcombine.high %v465_v42, %v469_v43  ;;  %2028 = vmatprep.subr.bf16.mxu1 %v7153_v41  ;;  %v7016_v54 = vcombine.low %v465_v42, %v469_v43  ;;  %v538_v41 = vld [vmem:[#allocation5 + $0x4c8] sm:$0xff]  ;;  %v7099_v42 = vcombine.high %v546_v33, %v550_v35  ;;  %v6963_v46 = vcombine.high %v410_v39, %v414_v40 }
  0xc9   : > { %v597_v45 = vld [vmem:[#allocation5 + $0x6a0] sm:$0xff]  ;;  %2029 = vmatpush2.bf16.msra.mxu1 %v7152_v47  ;;  %v542_v43 = vld [vmem:[#allocation5 + $0x4e8] sm:$0xff] }
  0xca   : > { %v7145_v49 = vcombine.high %v593_v44, %v597_v45  ;;  %v457_v50 = vld [vmem:[#allocation5 + $0x240] sm:$0xff]  ;;  %1989 = vmatprep.subr.bf16.mxu0 %v7017_v48  ;;  %v7144_v55 = vcombine.low %v593_v44, %v597_v45  ;;  %v6970_v44 = vcombine.low %v418_v31, %v422_v32  ;;  %v7098_v45 = vcombine.low %v546_v33, %v550_v35  ;;  %v402_v47 = vld [vmem:[#allocation5 + $0x88] sm:$0xff] }
  0xcb   : > { %v461_v51 = vld [vmem:[#allocation5 + $0x260] sm:$0xff]  ;;  %1990 = vmatpush2.bf16.msra.mxu0 %v7016_v54  ;;  %v406_v48 = vld [vmem:[#allocation5 + $0xa8] sm:$0xff] }
  0xcc   : > { %v585_v52 = vld [vmem:[#allocation5 + $0x640] sm:$0xff]  ;;  %v7009_v56 = vcombine.high %v457_v50, %v461_v51  ;;  %2030 = vmatprep.subr.bf16.mxu1 %v7145_v49  ;;  %v7008_v0 = vcombine.low %v457_v50, %v461_v51  ;;  %v530_v49 = vld [vmem:[#allocation5 + $0x488] sm:$0xff]  ;;  %v7091_v50 = vcombine.high %v538_v41, %v542_v43  ;;  %v6955_v54 = vcombine.high %v402_v47, %v406_v48 }
  0xcd   : > { %v589_v53 = vld [vmem:[#allocation5 + $0x660] sm:$0xff]  ;;  %2031 = vmatpush2.bf16.msra.mxu1 %v7144_v55  ;;  %v534_v51 = vld [vmem:[#allocation5 + $0x4a8] sm:$0xff] }
  0xce   : > { %v7137_v57 = vcombine.high %v585_v52, %v589_v53  ;;  %v449_v60 = vld [vmem:[#allocation5 + $0x200] sm:$0xff]  ;;  %1991 = vmatprep.subr.bf16.mxu0 %v7009_v56  ;;  %v7136_v1 = vcombine.low %v585_v52, %v589_v53  ;;  %v6962_v52 = vcombine.low %v410_v39, %v414_v40  ;;  %v7090_v53 = vcombine.low %v538_v41, %v542_v43  ;;  %v394_v55 = vld [vmem:[#allocation5 + $0x48] sm:$0xff] }
  0xcf   : > { %v453_v61 = vld [vmem:[#allocation5 + $0x220] sm:$0xff]  ;;  %1992 = vmatpush2.bf16.msra.mxu0 %v7008_v0  ;;  %v398_v56 = vld [vmem:[#allocation5 + $0x68] sm:$0xff] }
  0xd0   : > { %v577_v62 = vld [vmem:[#allocation5 + $0x600] sm:$0xff]  ;;  %v7001_v2 = vcombine.high %v449_v60, %v453_v61  ;;  %2032 = vmatprep.subr.bf16.mxu1 %v7137_v57  ;;  %v7000_v8 = vcombine.low %v449_v60, %v453_v61  ;;  %v522_v57 = vld [vmem:[#allocation5 + $0x448] sm:$0xff]  ;;  %v7083_v60 = vcombine.high %v530_v49, %v534_v51  ;;  %v6947_v0 = vcombine.high %v394_v55, %v398_v56 }
  0xd1   : > { %v581_v63 = vld [vmem:[#allocation5 + $0x620] sm:$0xff]  ;;  %2033 = vmatpush2.bf16.msra.mxu1 %v7136_v1  ;;  %v526_v61 = vld [vmem:[#allocation5 + $0x468] sm:$0xff]  ;;  %v6946_v6 = vcombine.low %v394_v55, %v398_v56 }
  0xd2   : > { %v7129_v3 = vcombine.high %v577_v62, %v581_v63  ;;  %v377_v9 = vld [vmem:[%s8523_s1] sm:$0xff]  ;;  %1993 = vmatprep.subr.bf16.mxu0 %v7001_v2  ;;  %v7128_v10 = vcombine.low %v577_v62, %v581_v63  ;;  %v6954_v62 = vcombine.low %v402_v47, %v406_v48  ;;  %v7082_v63 = vcombine.low %v530_v49, %v534_v51  ;;  %v386_v1 = vld [vmem:[#allocation5 + $0x8] sm:$0xff] }
  0xd3   : > { %v8551_v16 = vpack.c.bf16 %v377_v9, %v377_v9  ;;  %1994 = vmatpush2.bf16.msra.mxu0 %v7000_v8  ;;  %v390_v2 = vld [vmem:[#allocation5 + $0x28] sm:$0xff]  ;;  %v7075_v4 = vcombine.high %v522_v57, %v526_v61  ;;  %v7074_v7 = vcombine.low %v522_v57, %v526_v61 }
  0xd4   : > { %2034 = vmatprep.subr.bf16.mxu1 %v7129_v3  ;;  %2045 = vmatprep.subr.bf16.mxu0 %v6995_v12  ;;  %v514_v3 = vld [vmem:[#allocation5 + $0x408] sm:$0xff]  ;;  %v6939_v8 = vcombine.high %v386_v1, %v390_v2  ;;  %v6938_v14 = vcombine.low %v386_v1, %v390_v2 }
  0xd5   : > { %2035 = vmatpush2.bf16.msra.mxu1 %v7128_v10  ;;  %v518_v5 = vld [vmem:[#allocation5 + $0x428] sm:$0xff] }
  0xd6   : > { %2086 = vmatprep.subr.bf16.mxu1 %v7123_v13  ;;  %1996 = vmatmul.mubr.bf16.vlgmr.msra.gmra.mxu0 %v8551_v16  ;;  %v506_v9 = vld [vmem:[#allocation5 + $0x3c8] sm:$0xff]  ;;  %v7067_v12 = vcombine.high %v514_v3, %v518_v5  ;;  %v7066_v15 = vcombine.low %v514_v3, %v518_v5 }
  0xd7   : > { %2046 = vmatpush1.bf16.msra.mxu0 %v6994_v20  ;;  %2077 = vmatprep.mubr.bf16.mxu0 %v8543_v58  ;;  %v510_v10 = vld [vmem:[#allocation5 + $0x3e8] sm:$0xff] }
  0xd8   : > { %2037 = vmatmul.mubr.bf16.vlgmr.msra.gmra.mxu1 %v8553_v19  ;;  %2047 = vmatprep.subr.bf16.mxu0 %v6987_v22  ;;  %v634_v11 = vld [vmem:[#allocation5 + $0x7c8] sm:$0xff]  ;;  %v7059_v17 = vcombine.high %v506_v9, %v510_v10  ;;  %v7058_v24 = vcombine.low %v506_v9, %v510_v10 }
  0xd9   : > { %2087 = vmatpush1.bf16.msra.mxu1 %v7122_v21  ;;  %2118 = vmatprep.mubr.bf16.mxu1 %v8545_v59  ;;  %v638_v13 = vld [vmem:[#allocation5 + $0x7e8] sm:$0xff] }
  0xda   : > { %2088 = vmatprep.subr.bf16.mxu1 %v7115_v25  ;;  %v498_v18 = vld [vmem:[#allocation5 + $0x388] sm:$0xff]  ;;  %v7187_v22 = vcombine.high %v634_v11, %v638_v13  ;;  %v7186_v25 = vcombine.low %v634_v11, %v638_v13  ;;  %v443_v13 = vld [vmem:[#allocation5 + $0x1d0] sm:$0xff] }
  0xdb   : > { %2048 = vmatpush1.bf16.msra.mxu0 %v6986_v28  ;;  %v502_v20 = vld [vmem:[#allocation5 + $0x3a8] sm:$0xff] }
  0xdc   : > { %2049 = vmatprep.subr.bf16.mxu0 %v6979_v30  ;;  %v626_v21 = vld [vmem:[#allocation5 + $0x788] sm:$0xff]  ;;  %v7051_v26 = vcombine.high %v498_v18, %v502_v20  ;;  %v7050_v32 = vcombine.low %v498_v18, %v502_v20  ;;  %v575_v18 = vld [vmem:[#allocation5 + $0x5f0] sm:$0xff] }
  0xdd   : > { %2089 = vmatpush1.bf16.msra.mxu1 %v7114_v29  ;;  %v630_v23 = vld [vmem:[#allocation5 + $0x7a8] sm:$0xff] }
  0xde   : > { %2090 = vmatprep.subr.bf16.mxu1 %v7107_v34  ;;  %v490_v27 = vld [vmem:[#allocation5 + $0x348] sm:$0xff]  ;;  %v7179_v30 = vcombine.high %v626_v21, %v630_v23  ;;  %v7178_v33 = vcombine.low %v626_v21, %v630_v23  ;;  %v435_v23 = vld [vmem:[#allocation5 + $0x190] sm:$0xff] }
  0xdf   : > { %2050 = vmatpush1.bf16.msra.mxu0 %v6978_v36  ;;  %v494_v28 = vld [vmem:[#allocation5 + $0x368] sm:$0xff] }
  0xe0   : > { %2051 = vmatprep.subr.bf16.mxu0 %v6971_v38  ;;  %v618_v29 = vld [vmem:[#allocation5 + $0x748] sm:$0xff]  ;;  %v7043_v34 = vcombine.high %v490_v27, %v494_v28  ;;  %v7042_v40 = vcombine.low %v490_v27, %v494_v28  ;;  %v567_v27 = vld [vmem:[#allocation5 + $0x5b0] sm:$0xff] }
  0xe1   : > { %2091 = vmatpush1.bf16.msra.mxu1 %v7106_v37  ;;  %v622_v31 = vld [vmem:[#allocation5 + $0x768] sm:$0xff] }
  0xe2   : > { %2092 = vmatprep.subr.bf16.mxu1 %v7099_v42  ;;  %v482_v35 = vld [vmem:[#allocation5 + $0x308] sm:$0xff]  ;;  %v7171_v38 = vcombine.high %v618_v29, %v622_v31  ;;  %v7170_v41 = vcombine.low %v618_v29, %v622_v31  ;;  %v427_v31 = vld [vmem:[#allocation5 + $0x150] sm:$0xff] }
  0xe3   : > { %2052 = vmatpush1.bf16.msra.mxu0 %v6970_v44  ;;  %v486_v36 = vld [vmem:[#allocation5 + $0x328] sm:$0xff] }
  0xe4   : > { %2053 = vmatprep.subr.bf16.mxu0 %v6963_v46  ;;  %v610_v37 = vld [vmem:[#allocation5 + $0x708] sm:$0xff]  ;;  %v7035_v42 = vcombine.high %v482_v35, %v486_v36  ;;  %v7034_v48 = vcombine.low %v482_v35, %v486_v36  ;;  %v559_v35 = vld [vmem:[#allocation5 + $0x570] sm:$0xff] }
  0xe5   : > { %2093 = vmatpush1.bf16.msra.mxu1 %v7098_v45  ;;  %v614_v39 = vld [vmem:[#allocation5 + $0x728] sm:$0xff] }
  0xe6   : > { %2094 = vmatprep.subr.bf16.mxu1 %v7091_v50  ;;  %v474_v43 = vld [vmem:[#allocation5 + $0x2c8] sm:$0xff]  ;;  %v7163_v46 = vcombine.high %v610_v37, %v614_v39  ;;  %v7162_v49 = vcombine.low %v610_v37, %v614_v39 }
  0xe7   : > { %2054 = vmatpush1.bf16.msra.mxu0 %v6962_v52  ;;  %v478_v44 = vld [vmem:[#allocation5 + $0x2e8] sm:$0xff] }
  0xe8   : > { %2055 = vmatprep.subr.bf16.mxu0 %v6955_v54  ;;  %v602_v45 = vld [vmem:[#allocation5 + $0x6c8] sm:$0xff]  ;;  %v7027_v50 = vcombine.high %v474_v43, %v478_v44  ;;  %v7026_v56 = vcombine.low %v474_v43, %v478_v44  ;;  %v551_v43 = vld [vmem:[#allocation5 + $0x530] sm:$0xff] }
  0xe9   : > { %2095 = vmatpush1.bf16.msra.mxu1 %v7090_v53  ;;  %v606_v47 = vld [vmem:[#allocation5 + $0x6e8] sm:$0xff] }
  0xea   : > { %2096 = vmatprep.subr.bf16.mxu1 %v7083_v60  ;;  %v466_v51 = vld [vmem:[#allocation5 + $0x288] sm:$0xff]  ;;  %v7155_v54 = vcombine.high %v602_v45, %v606_v47  ;;  %v7154_v57 = vcombine.low %v602_v45, %v606_v47 }
  0xeb   : > { %2056 = vmatpush1.bf16.msra.mxu0 %v6954_v62  ;;  %v470_v52 = vld [vmem:[#allocation5 + $0x2a8] sm:$0xff] }
  0xec   : > { %2057 = vmatprep.subr.bf16.mxu0 %v6947_v0  ;;  %v594_v53 = vld [vmem:[#allocation5 + $0x688] sm:$0xff]  ;;  %v7019_v60 = vcombine.high %v466_v51, %v470_v52  ;;  %v7018_v2 = vcombine.low %v466_v51, %v470_v52  ;;  %v543_v51 = vld [vmem:[#allocation5 + $0x4f0] sm:$0xff] }
  0xed   : > { %2097 = vmatpush1.bf16.msra.mxu1 %v7082_v63  ;;  %v598_v55 = vld [vmem:[#allocation5 + $0x6a8] sm:$0xff] }
  0xee   : > { %2098 = vmatprep.subr.bf16.mxu1 %v7075_v4  ;;  %v458_v61 = vld [vmem:[#allocation5 + $0x248] sm:$0xff]  ;;  %v7147_v0 = vcombine.high %v594_v53, %v598_v55  ;;  %v7146_v3 = vcombine.low %v594_v53, %v598_v55 }
  0xef   : > { %2058 = vmatpush1.bf16.msra.mxu0 %v6946_v6  ;;  %v462_v62 = vld [vmem:[#allocation5 + $0x268] sm:$0xff] }
  0xf0   : > { %2059 = vmatprep.subr.bf16.mxu0 %v6939_v8  ;;  %v586_v63 = vld [vmem:[#allocation5 + $0x648] sm:$0xff]  ;;  %v7011_v4 = vcombine.high %v458_v61, %v462_v62  ;;  %v7010_v10 = vcombine.low %v458_v61, %v462_v62  ;;  %v535_v61 = vld [vmem:[#allocation5 + $0x4b0] sm:$0xff] }
  0xf1   : > { %2099 = vmatpush1.bf16.msra.mxu1 %v7074_v7  ;;  %v590_v1 = vld [vmem:[#allocation5 + $0x668] sm:$0xff] }
  0xf2   : > { %2100 = vmatprep.subr.bf16.mxu1 %v7067_v12  ;;  %v450_v5 = vld [vmem:[#allocation5 + $0x208] sm:$0xff]  ;;  %v7139_v8 = vcombine.high %v586_v63, %v590_v1  ;;  %v7138_v11 = vcombine.low %v586_v63, %v590_v1 }
  0xf3   : > { %2060 = vmatpush1.bf16.msra.mxu0 %v6938_v14  ;;  %v454_v6 = vld [vmem:[#allocation5 + $0x228] sm:$0xff]  ;;  %v447_v14 = vld [vmem:[#allocation5 + $0x1f0] sm:$0xff] }
  0xf4   : > { %2061 = vmatprep.subr.bf16.mxu0 %v7059_v17  ;;  %v578_v7 = vld [vmem:[#allocation5 + $0x608] sm:$0xff]  ;;  %v7003_v12 = vcombine.high %v450_v5, %v454_v6  ;;  %v7002_v20 = vcombine.low %v450_v5, %v454_v6  ;;  %v6996_v28 = vcombine.low %v443_v13, %v447_v14  ;;  %v527_v5 = vld [vmem:[#allocation5 + $0x470] sm:$0xff] }
  0xf5   : > { %2101 = vmatpush1.bf16.msra.mxu1 %v7066_v15  ;;  %v582_v9 = vld [vmem:[#allocation5 + $0x628] sm:$0xff]  ;;  %v571_v15 = vld [vmem:[#allocation5 + $0x5d0] sm:$0xff] }
  0xf6   : > { %2102 = vmatprep.subr.bf16.mxu1 %v7187_v22  ;;  %v7131_v17 = vcombine.high %v578_v7, %v582_v9  ;;  %v7130_v21 = vcombine.low %v578_v7, %v582_v9  ;;  %v6997_v22 = vcombine.high %v443_v13, %v447_v14  ;;  %v7124_v29 = vcombine.low %v571_v15, %v575_v18  ;;  %v519_v13 = vld [vmem:[#allocation5 + $0x430] sm:$0xff] }
  0xf7   : > { %2062 = vmatpush2.bf16.msra.mxu0 %v7058_v24  ;;  %v439_v24 = vld [vmem:[#allocation5 + $0x1b0] sm:$0xff] }
  0xf8   : > { %2063 = vmatprep.subr.bf16.mxu0 %v7051_v26  ;;  %v7125_v26 = vcombine.high %v571_v15, %v575_v18  ;;  %v6988_v36 = vcombine.low %v435_v23, %v439_v24 }
  0xf9   : > { %2103 = vmatpush2.bf16.msra.mxu1 %v7186_v25  ;;  %v563_v25 = vld [vmem:[#allocation5 + $0x590] sm:$0xff] }
  0xfa   : > { %2104 = vmatprep.subr.bf16.mxu1 %v7179_v30  ;;  %v6989_v30 = vcombine.high %v435_v23, %v439_v24  ;;  %v7116_v37 = vcombine.low %v563_v25, %v567_v27  ;;  %v639_v23 = vld [vmem:[#allocation5 + $0x7f0] sm:$0xff] }
  0xfb   : > { %2064 = vmatpush2.bf16.msra.mxu0 %v7050_v32  ;;  %v7117_v32 = vcombine.high %v563_v25, %v567_v27 }
  0xfc   : > { %2065 = vmatprep.subr.bf16.mxu0 %v7043_v34  ;;  %v555_v34 = vld [vmem:[#allocation5 + $0x550] sm:$0xff] }
  0xfd   : > { %2105 = vmatpush2.bf16.msra.mxu1 %v7178_v33  ;;  %v431_v33 = vld [vmem:[#allocation5 + $0x170] sm:$0xff]  ;;  %v7109_v39 = vcombine.high %v555_v34, %v559_v35  ;;  %v7108_v45 = vcombine.low %v555_v34, %v559_v35 }
  0xfe   : > { %2106 = vmatprep.subr.bf16.mxu1 %v7171_v38  ;;  %v6981_v38 = vcombine.high %v427_v31, %v431_v33  ;;  %v6980_v44 = vcombine.low %v427_v31, %v431_v33  ;;  %v631_v31 = vld [vmem:[#allocation5 + $0x7b0] sm:$0xff] }
  0xff   : > { %2066 = vmatpush2.bf16.msra.mxu0 %v7042_v40  ;;  %v419_v40 = vld [vmem:[#allocation5 + $0x110] sm:$0xff] }
 0x100   : > { %2067 = vmatprep.subr.bf16.mxu0 %v7035_v42  ;;  %v547_v42 = vld [vmem:[#allocation5 + $0x510] sm:$0xff] }
 0x101   : > { %2107 = vmatpush2.bf16.msra.mxu1 %v7170_v41  ;;  %v423_v41 = vld [vmem:[#allocation5 + $0x130] sm:$0xff]  ;;  %v7101_v47 = vcombine.high %v547_v42, %v551_v43  ;;  %v7100_v53 = vcombine.low %v547_v42, %v551_v43 }
 0x102   : > { %2108 = vmatprep.subr.bf16.mxu1 %v7163_v46  ;;  %v6973_v46 = vcombine.high %v419_v40, %v423_v41  ;;  %v6972_v52 = vcombine.low %v419_v40, %v423_v41 }
 0x103   : > { %2068 = vmatpush2.bf16.msra.mxu0 %v7034_v48  ;;  %v411_v48 = vld [vmem:[#allocation5 + $0xd0] sm:$0xff] }
 0x104   : > { %2069 = vmatprep.subr.bf16.mxu0 %v7027_v50  ;;  %v539_v50 = vld [vmem:[#allocation5 + $0x4d0] sm:$0xff] }
 0x105   : > { %2109 = vmatpush2.bf16.msra.mxu1 %v7162_v49  ;;  %v415_v49 = vld [vmem:[#allocation5 + $0xf0] sm:$0xff]  ;;  %v7093_v55 = vcombine.high %v539_v50, %v543_v51  ;;  %v7092_v63 = vcombine.low %v539_v50, %v543_v51 }
 0x106   : > { %2110 = vmatprep.subr.bf16.mxu1 %v7155_v54  ;;  %v6965_v54 = vcombine.high %v411_v48, %v415_v49  ;;  %v6964_v62 = vcombine.low %v411_v48, %v415_v49 }
 0x107   : > { %2070 = vmatpush2.bf16.msra.mxu0 %v7026_v56  ;;  %v403_v56 = vld [vmem:[#allocation5 + $0x90] sm:$0xff] }
 0x108   : > { %2071 = vmatprep.subr.bf16.mxu0 %v7019_v60  ;;  %v531_v60 = vld [vmem:[#allocation5 + $0x490] sm:$0xff] }
 0x109   : > { %2111 = vmatpush2.bf16.msra.mxu1 %v7154_v57  ;;  %v407_v57 = vld [vmem:[#allocation5 + $0xb0] sm:$0xff]  ;;  %v7085_v1 = vcombine.high %v531_v60, %v535_v61  ;;  %v7084_v7 = vcombine.low %v531_v60, %v535_v61 }
 0x10a   : > { %2112 = vmatprep.subr.bf16.mxu1 %v7147_v0  ;;  %v6957_v0 = vcombine.high %v403_v56, %v407_v57  ;;  %v6956_v6 = vcombine.low %v403_v56, %v407_v57 }
 0x10b   : > { %2072 = vmatpush2.bf16.msra.mxu0 %v7018_v2  ;;  %v395_v2 = vld [vmem:[#allocation5 + $0x50] sm:$0xff] }
 0x10c   : > { %2073 = vmatprep.subr.bf16.mxu0 %v7011_v4  ;;  %v523_v4 = vld [vmem:[#allocation5 + $0x450] sm:$0xff] }
 0x10d   : > { %2113 = vmatpush2.bf16.msra.mxu1 %v7146_v3  ;;  %v399_v3 = vld [vmem:[#allocation5 + $0x70] sm:$0xff]  ;;  %v7077_v9 = vcombine.high %v523_v4, %v527_v5  ;;  %v7076_v15 = vcombine.low %v523_v4, %v527_v5 }
 0x10e   : > { %2114 = vmatprep.subr.bf16.mxu1 %v7139_v8  ;;  %v6949_v8 = vcombine.high %v395_v2, %v399_v3  ;;  %v6948_v14 = vcombine.low %v395_v2, %v399_v3 }
 0x10f   : > { %2074 = vmatpush2.bf16.msra.mxu0 %v7010_v10  ;;  %v387_v10 = vld [vmem:[#allocation5 + $0x10] sm:$0xff] }
 0x110   : > { %2075 = vmatprep.subr.bf16.mxu0 %v7003_v12  ;;  %v515_v12 = vld [vmem:[#allocation5 + $0x410] sm:$0xff] }
 0x111   : > { %2115 = vmatpush2.bf16.msra.mxu1 %v7138_v11  ;;  %v391_v11 = vld [vmem:[#allocation5 + $0x30] sm:$0xff]  ;;  %v7069_v18 = vcombine.high %v515_v12, %v519_v13  ;;  %v7068_v25 = vcombine.low %v515_v12, %v519_v13 }
 0x112   : > { %2116 = vmatprep.subr.bf16.mxu1 %v7131_v17  ;;  %v6941_v17 = vcombine.high %v387_v10, %v391_v11  ;;  %v6940_v24 = vcombine.low %v387_v10, %v391_v11 }
 0x113   : > { %2076 = vmatpush2.bf16.msra.mxu0 %v7002_v20  ;;  %v507_v20 = vld [vmem:[#allocation5 + $0x3d0] sm:$0xff] }
 0x114   : > { %2127 = vmatprep.subr.bf16.mxu0 %v6997_v22  ;;  %v635_v22 = vld [vmem:[#allocation5 + $0x7d0] sm:$0xff] }
 0x115   : > { %2117 = vmatpush2.bf16.msra.mxu1 %v7130_v21  ;;  %v511_v21 = vld [vmem:[#allocation5 + $0x3f0] sm:$0xff]  ;;  %v7189_v27 = vcombine.high %v635_v22, %v639_v23  ;;  %v7188_v33 = vcombine.low %v635_v22, %v639_v23 }
 0x116   : > { %2168 = vmatprep.subr.bf16.mxu1 %v7125_v26  ;;  %2078 = vmatmul.mubr.bf16.vlgmr.msra.gmra.mxu0 %v8551_v16  ;;  %v7061_v26 = vcombine.high %v507_v20, %v511_v21 }
 0x117   : > { %2128 = vmatpush1.bf16.msra.mxu0 %v6996_v28  ;;  %2159 = vmatprep.mubr.bf16.mxu0 %v8543_v58  ;;  %v499_v28 = vld [vmem:[#allocation5 + $0x390] sm:$0xff] }
 0x118   : > { %2119 = vmatmul.mubr.bf16.vlgmr.msra.gmra.mxu1 %v8553_v19  ;;  %2129 = vmatprep.subr.bf16.mxu0 %v6989_v30  ;;  %v627_v30 = vld [vmem:[#allocation5 + $0x790] sm:$0xff] }
 0x119   : > { %2169 = vmatpush1.bf16.msra.mxu1 %v7124_v29  ;;  %2200 = vmatprep.mubr.bf16.mxu1 %v8545_v59  ;;  %v503_v29 = vld [vmem:[#allocation5 + $0x3b0] sm:$0xff]  ;;  %v7181_v35 = vcombine.high %v627_v30, %v631_v31  ;;  %v7180_v41 = vcombine.low %v627_v30, %v631_v31 }
 0x11a   : > { %2170 = vmatprep.subr.bf16.mxu1 %v7117_v32  ;;  %v7060_v32 = vcombine.low %v507_v20, %v511_v21  ;;  %v7053_v34 = vcombine.high %v499_v28, %v503_v29  ;;  %v7052_v40 = vcombine.low %v499_v28, %v503_v29 }
 0x11b   : > { %2130 = vmatpush1.bf16.msra.mxu0 %v6988_v36  ;;  %v491_v36 = vld [vmem:[#allocation5 + $0x350] sm:$0xff] }
 0x11c   : > { %2131 = vmatprep.subr.bf16.mxu0 %v6981_v38  ;;  %v619_v38 = vld [vmem:[#allocation5 + $0x750] sm:$0xff] }
 0x11d   : > { %2171 = vmatpush1.bf16.msra.mxu1 %v7116_v37  ;;  %v495_v37 = vld [vmem:[#allocation5 + $0x370] sm:$0xff] }
 0x11e   : > { %2172 = vmatprep.subr.bf16.mxu1 %v7109_v39  ;;  %v623_v39 = vld [vmem:[#allocation5 + $0x770] sm:$0xff]  ;;  %v7045_v42 = vcombine.high %v491_v36, %v495_v37  ;;  %v7044_v48 = vcombine.low %v491_v36, %v495_v37 }
 0x11f   : > { %2132 = vmatpush1.bf16.msra.mxu0 %v6980_v44  ;;  %v7173_v43 = vcombine.high %v619_v38, %v623_v39  ;;  %v483_v44 = vld [vmem:[#allocation5 + $0x310] sm:$0xff]  ;;  %v7172_v49 = vcombine.low %v619_v38, %v623_v39 }
 0x120   : > { %2133 = vmatprep.subr.bf16.mxu0 %v6973_v46  ;;  %v611_v46 = vld [vmem:[#allocation5 + $0x710] sm:$0xff] }
 0x121   : > { %2173 = vmatpush1.bf16.msra.mxu1 %v7108_v45  ;;  %v487_v45 = vld [vmem:[#allocation5 + $0x330] sm:$0xff] }
 0x122   : > { %2174 = vmatprep.subr.bf16.mxu1 %v7101_v47  ;;  %v615_v47 = vld [vmem:[#allocation5 + $0x730] sm:$0xff]  ;;  %v7037_v50 = vcombine.high %v483_v44, %v487_v45  ;;  %v7036_v56 = vcombine.low %v483_v44, %v487_v45 }
 0x123   : > { %2134 = vmatpush1.bf16.msra.mxu0 %v6972_v52  ;;  %v7165_v51 = vcombine.high %v611_v46, %v615_v47  ;;  %v475_v52 = vld [vmem:[#allocation5 + $0x2d0] sm:$0xff]  ;;  %v7164_v57 = vcombine.low %v611_v46, %v615_v47 }
 0x124   : > { %2135 = vmatprep.subr.bf16.mxu0 %v6965_v54  ;;  %v603_v54 = vld [vmem:[#allocation5 + $0x6d0] sm:$0xff] }
 0x125   : > { %2175 = vmatpush1.bf16.msra.mxu1 %v7100_v53  ;;  %v479_v53 = vld [vmem:[#allocation5 + $0x2f0] sm:$0xff] }
 0x126   : > { %2176 = vmatprep.subr.bf16.mxu1 %v7093_v55  ;;  %v607_v55 = vld [vmem:[#allocation5 + $0x6f0] sm:$0xff]  ;;  %v7029_v60 = vcombine.high %v475_v52, %v479_v53  ;;  %v7028_v2 = vcombine.low %v475_v52, %v479_v53 }
 0x127   : > { %2136 = vmatpush1.bf16.msra.mxu0 %v6964_v62  ;;  %v7157_v61 = vcombine.high %v603_v54, %v607_v55  ;;  %v467_v62 = vld [vmem:[#allocation5 + $0x290] sm:$0xff]  ;;  %v7156_v3 = vcombine.low %v603_v54, %v607_v55 }
 0x128   : > { %2137 = vmatprep.subr.bf16.mxu0 %v6957_v0  ;;  %v595_v0 = vld [vmem:[#allocation5 + $0x690] sm:$0xff] }
 0x129   : > { %2177 = vmatpush1.bf16.msra.mxu1 %v7092_v63  ;;  %v471_v63 = vld [vmem:[#allocation5 + $0x2b0] sm:$0xff] }
 0x12a   : > { %2178 = vmatprep.subr.bf16.mxu1 %v7085_v1  ;;  %v599_v1 = vld [vmem:[#allocation5 + $0x6b0] sm:$0xff]  ;;  %v7021_v4 = vcombine.high %v467_v62, %v471_v63  ;;  %v7020_v10 = vcombine.low %v467_v62, %v471_v63 }
 0x12b   : > { %2138 = vmatpush1.bf16.msra.mxu0 %v6956_v6  ;;  %v7149_v5 = vcombine.high %v595_v0, %v599_v1  ;;  %v459_v6 = vld [vmem:[#allocation5 + $0x250] sm:$0xff]  ;;  %v7148_v11 = vcombine.low %v595_v0, %v599_v1  ;;  %v404_v0 = vld [vmem:[#allocation5 + $0x98] sm:$0xff] }
 0x12c   : > { %2139 = vmatprep.subr.bf16.mxu0 %v6949_v8  ;;  %v587_v8 = vld [vmem:[#allocation5 + $0x650] sm:$0xff]  ;;  %v408_v1 = vld [vmem:[#allocation5 + $0xb8] sm:$0xff] }
 0x12d   : > { %2179 = vmatpush1.bf16.msra.mxu1 %v7084_v7  ;;  %v463_v7 = vld [vmem:[#allocation5 + $0x270] sm:$0xff] }
 0x12e   : > { %2180 = vmatprep.subr.bf16.mxu1 %v7077_v9  ;;  %v591_v9 = vld [vmem:[#allocation5 + $0x670] sm:$0xff]  ;;  %v7013_v12 = vcombine.high %v459_v6, %v463_v7  ;;  %v7012_v20 = vcombine.low %v459_v6, %v463_v7  ;;  %v6959_v6 = vcombine.high %v404_v0, %v408_v1 }
 0x12f   : > { %2140 = vmatpush1.bf16.msra.mxu0 %v6948_v14  ;;  %v7141_v13 = vcombine.high %v587_v8, %v591_v9  ;;  %v451_v14 = vld [vmem:[#allocation5 + $0x210] sm:$0xff]  ;;  %v7140_v21 = vcombine.low %v587_v8, %v591_v9  ;;  %v396_v8 = vld [vmem:[#allocation5 + $0x58] sm:$0xff] }
 0x130   : > { %2141 = vmatprep.subr.bf16.mxu0 %v6941_v17  ;;  %v579_v17 = vld [vmem:[#allocation5 + $0x610] sm:$0xff]  ;;  %v400_v9 = vld [vmem:[#allocation5 + $0x78] sm:$0xff] }
 0x131   : > { %2181 = vmatpush1.bf16.msra.mxu1 %v7076_v15  ;;  %v455_v15 = vld [vmem:[#allocation5 + $0x230] sm:$0xff] }
 0x132   : > { %2182 = vmatprep.subr.bf16.mxu1 %v7069_v18  ;;  %v583_v18 = vld [vmem:[#allocation5 + $0x630] sm:$0xff]  ;;  %v7005_v22 = vcombine.high %v451_v14, %v455_v15  ;;  %v7004_v28 = vcombine.low %v451_v14, %v455_v15  ;;  %v6951_v14 = vcombine.high %v396_v8, %v400_v9 }
 0x133   : > { %2142 = vmatpush1.bf16.msra.mxu0 %v6940_v24  ;;  %v7133_v23 = vcombine.high %v579_v17, %v583_v18  ;;  %v444_v24 = vld [vmem:[#allocation5 + $0x1d8] sm:$0xff]  ;;  %v7132_v29 = vcombine.low %v579_v17, %v583_v18 }
 0x134   : > { %2143 = vmatprep.subr.bf16.mxu0 %v7061_v26  ;;  %v572_v26 = vld [vmem:[#allocation5 + $0x5d8] sm:$0xff] }
 0x135   : > { %2183 = vmatpush1.bf16.msra.mxu1 %v7068_v25  ;;  %v448_v25 = vld [vmem:[#allocation5 + $0x1f8] sm:$0xff] }
 0x136   : > { %2184 = vmatprep.subr.bf16.mxu1 %v7189_v27  ;;  %v576_v27 = vld [vmem:[#allocation5 + $0x5f8] sm:$0xff]  ;;  %v6999_v30 = vcombine.high %v444_v24, %v448_v25  ;;  %v6998_v36 = vcombine.low %v444_v24, %v448_v25 }
 0x137   : > { %2144 = vmatpush2.bf16.msra.mxu0 %v7060_v32  ;;  %v7127_v31 = vcombine.high %v572_v26, %v576_v27  ;;  %v436_v32 = vld [vmem:[#allocation5 + $0x198] sm:$0xff]  ;;  %v7126_v37 = vcombine.low %v572_v26, %v576_v27 }
 0x138   : > { %2145 = vmatprep.subr.bf16.mxu0 %v7053_v34  ;;  %v564_v34 = vld [vmem:[#allocation5 + $0x598] sm:$0xff] }
 0x139   : > { %2185 = vmatpush2.bf16.msra.mxu1 %v7188_v33  ;;  %v440_v33 = vld [vmem:[#allocation5 + $0x1b8] sm:$0xff] }
 0x13a   : > { %2186 = vmatprep.subr.bf16.mxu1 %v7181_v35  ;;  %v568_v35 = vld [vmem:[#allocation5 + $0x5b8] sm:$0xff]  ;;  %v6991_v38 = vcombine.high %v436_v32, %v440_v33  ;;  %v6990_v44 = vcombine.low %v436_v32, %v440_v33 }
 0x13b   : > { %2146 = vmatpush2.bf16.msra.mxu0 %v7052_v40  ;;  %v7119_v39 = vcombine.high %v564_v34, %v568_v35  ;;  %v428_v40 = vld [vmem:[#allocation5 + $0x158] sm:$0xff]  ;;  %v7118_v45 = vcombine.low %v564_v34, %v568_v35 }
 0x13c   : > { %2147 = vmatprep.subr.bf16.mxu0 %v7045_v42  ;;  %v556_v42 = vld [vmem:[#allocation5 + $0x558] sm:$0xff] }
 0x13d   : > { %2187 = vmatpush2.bf16.msra.mxu1 %v7180_v41  ;;  %v432_v41 = vld [vmem:[#allocation5 + $0x178] sm:$0xff] }
 0x13e   : > { %2188 = vmatprep.subr.bf16.mxu1 %v7173_v43  ;;  %v560_v43 = vld [vmem:[#allocation5 + $0x578] sm:$0xff]  ;;  %v6983_v46 = vcombine.high %v428_v40, %v432_v41  ;;  %v6982_v52 = vcombine.low %v428_v40, %v432_v41 }
 0x13f   : > { %2148 = vmatpush2.bf16.msra.mxu0 %v7044_v48  ;;  %v7111_v47 = vcombine.high %v556_v42, %v560_v43  ;;  %v420_v48 = vld [vmem:[#allocation5 + $0x118] sm:$0xff]  ;;  %v7110_v53 = vcombine.low %v556_v42, %v560_v43 }
 0x140   : > { %2149 = vmatprep.subr.bf16.mxu0 %v7037_v50  ;;  %v548_v50 = vld [vmem:[#allocation5 + $0x518] sm:$0xff] }
 0x141   : > { %2189 = vmatpush2.bf16.msra.mxu1 %v7172_v49  ;;  %v424_v49 = vld [vmem:[#allocation5 + $0x138] sm:$0xff] }
 0x142   : > { %2190 = vmatprep.subr.bf16.mxu1 %v7165_v51  ;;  %v552_v51 = vld [vmem:[#allocation5 + $0x538] sm:$0xff]  ;;  %v6975_v54 = vcombine.high %v420_v48, %v424_v49  ;;  %v6974_v62 = vcombine.low %v420_v48, %v424_v49 }
 0x143   : > { %2150 = vmatpush2.bf16.msra.mxu0 %v7036_v56  ;;  %v7103_v55 = vcombine.high %v548_v50, %v552_v51  ;;  %v412_v56 = vld [vmem:[#allocation5 + $0xd8] sm:$0xff] }
 0x144   : > { %2151 = vmatprep.subr.bf16.mxu0 %v7029_v60  ;;  %v540_v60 = vld [vmem:[#allocation5 + $0x4d8] sm:$0xff] }
 0x145   : > { %2191 = vmatpush2.bf16.msra.mxu1 %v7164_v57  ;;  %v416_v57 = vld [vmem:[#allocation5 + $0xf8] sm:$0xff] }
 0x146   : > { %2192 = vmatprep.subr.bf16.mxu1 %v7157_v61  ;;  %v544_v61 = vld [vmem:[#allocation5 + $0x4f8] sm:$0xff]  ;;  %v6967_v63 = vcombine.high %v412_v56, %v416_v57 }
 0x147   : > { %2152 = vmatpush2.bf16.msra.mxu0 %v7028_v2  ;;  %v532_v2 = vld [vmem:[#allocation5 + $0x498] sm:$0xff] }
 0x148   : > { %2153 = vmatprep.subr.bf16.mxu0 %v7021_v4  ;;  %v6966_v4 = vcombine.low %v412_v56, %v416_v57  ;;  %v388_v17 = vld [vmem:[#allocation5 + $0x18] sm:$0xff] }
 0x149   : > { %2193 = vmatpush2.bf16.msra.mxu1 %v7156_v3  ;;  %v536_v3 = vld [vmem:[#allocation5 + $0x4b8] sm:$0xff] }
 0x14a   : > { %2194 = vmatprep.subr.bf16.mxu1 %v7149_v5  ;;  %v7094_v5 = vcombine.low %v540_v60, %v544_v61  ;;  %v7087_v7 = vcombine.high %v532_v2, %v536_v3  ;;  %v392_v18 = vld [vmem:[#allocation5 + $0x38] sm:$0xff] }
 0x14b   : > { %2154 = vmatpush2.bf16.msra.mxu0 %v7020_v10  ;;  %v524_v10 = vld [vmem:[#allocation5 + $0x458] sm:$0xff]  ;;  %v6943_v24 = vcombine.high %v388_v17, %v392_v18 }
 0x14c   : > { %2155 = vmatprep.subr.bf16.mxu0 %v7013_v12  ;;  %v6958_v12 = vcombine.low %v404_v0, %v408_v1  ;;  %v508_v26 = vld [vmem:[#allocation5 + $0x3d8] sm:$0xff] }
 0x14d   : > { %2195 = vmatpush2.bf16.msra.mxu1 %v7148_v11  ;;  %v528_v11 = vld [vmem:[#allocation5 + $0x478] sm:$0xff] }
 0x14e   : > { %2196 = vmatprep.subr.bf16.mxu1 %v7141_v13  ;;  %v7086_v13 = vcombine.low %v532_v2, %v536_v3  ;;  %v7079_v15 = vcombine.high %v524_v10, %v528_v11  ;;  %v512_v27 = vld [vmem:[#allocation5 + $0x3f8] sm:$0xff] }
 0x14f   : > { %2156 = vmatpush2.bf16.msra.mxu0 %v7012_v20  ;;  %v516_v20 = vld [vmem:[#allocation5 + $0x418] sm:$0xff]  ;;  %v7063_v32 = vcombine.high %v508_v26, %v512_v27 }
 0x150   : > { %2157 = vmatprep.subr.bf16.mxu0 %v7005_v22  ;;  %v6950_v22 = vcombine.low %v396_v8, %v400_v9  ;;  %v500_v34 = vld [vmem:[#allocation5 + $0x398] sm:$0xff] }
 0x151   : > { %2197 = vmatpush2.bf16.msra.mxu1 %v7140_v21  ;;  %v520_v21 = vld [vmem:[#allocation5 + $0x438] sm:$0xff] }
 0x152   : > { %2198 = vmatprep.subr.bf16.mxu1 %v7133_v23  ;;  %v7078_v23 = vcombine.low %v524_v10, %v528_v11  ;;  %v7071_v25 = vcombine.high %v516_v20, %v520_v21  ;;  %v504_v35 = vld [vmem:[#allocation5 + $0x3b8] sm:$0xff] }
 0x153   : > { %2158 = vmatpush2.bf16.msra.mxu0 %v7004_v28  ;;  %v636_v28 = vld [vmem:[#allocation5 + $0x7d8] sm:$0xff]  ;;  %v7055_v40 = vcombine.high %v500_v34, %v504_v35 }
 0x154   : > { %2209 = vmatprep.subr.bf16.mxu0 %v6999_v30  ;;  %v6942_v30 = vcombine.low %v388_v17, %v392_v18  ;;  %v492_v42 = vld [vmem:[#allocation5 + $0x358] sm:$0xff] }
 0x155   : > { %2199 = vmatpush2.bf16.msra.mxu1 %v7132_v29  ;;  %v640_v29 = vld [vmem:[#allocation5 + $0x7f8] sm:$0xff] }
 0x156   : > { %2250 = vmatprep.subr.bf16.mxu1 %v7127_v31  ;;  %2160 = vmatmul.mubr.bf16.vlgmr.msra.gmra.mxu0 %v8551_v16  ;;  %v7070_v31 = vcombine.low %v516_v20, %v520_v21  ;;  %v7191_v33 = vcombine.high %v636_v28, %v640_v29  ;;  %v496_v43 = vld [vmem:[#allocation5 + $0x378] sm:$0xff] }
 0x157   : > { %2210 = vmatpush1.bf16.msra.mxu0 %v6998_v36  ;;  %2241 = vmatprep.mubr.bf16.mxu0 %v8543_v58  ;;  %v7102_v58 = vcombine.low %v548_v50, %v552_v51  ;;  %v628_v36 = vld [vmem:[#allocation5 + $0x798] sm:$0xff]  ;;  %v7047_v48 = vcombine.high %v492_v42, %v496_v43 }
 0x158   : > { %2201 = vmatmul.mubr.bf16.vlgmr.msra.gmra.mxu1 %v8553_v19  ;;  %2211 = vmatprep.subr.bf16.mxu0 %v6991_v38  ;;  %v7062_v38 = vcombine.low %v508_v26, %v512_v27  ;;  %v484_v50 = vld [vmem:[#allocation5 + $0x318] sm:$0xff] }
 0x159   : > { %2251 = vmatpush1.bf16.msra.mxu1 %v7126_v37  ;;  %2282 = vmatprep.mubr.bf16.mxu1 %v8545_v59  ;;  %v7095_v59 = vcombine.high %v540_v60, %v544_v61  ;;  %v632_v37 = vld [vmem:[#allocation5 + $0x7b8] sm:$0xff] }
 0x15a   : > { %2252 = vmatprep.subr.bf16.mxu1 %v7119_v39  ;;  %v7190_v39 = vcombine.low %v636_v28, %v640_v29  ;;  %v7183_v41 = vcombine.high %v628_v36, %v632_v37  ;;  %v488_v51 = vld [vmem:[#allocation5 + $0x338] sm:$0xff] }
 0x15b   : > { %2212 = vmatpush1.bf16.msra.mxu0 %v6990_v44  ;;  %v620_v44 = vld [vmem:[#allocation5 + $0x758] sm:$0xff]  ;;  %v7039_v56 = vcombine.high %v484_v50, %v488_v51 }
 0x15c   : > { %2213 = vmatprep.subr.bf16.mxu0 %v6983_v46  ;;  %v7054_v46 = vcombine.low %v500_v34, %v504_v35  ;;  %v476_v60 = vld [vmem:[#allocation5 + $0x2d8] sm:$0xff] }
 0x15d   : > { %2253 = vmatpush1.bf16.msra.mxu1 %v7118_v45  ;;  %v624_v45 = vld [vmem:[#allocation5 + $0x778] sm:$0xff] }
 0x15e   : > { %2254 = vmatprep.subr.bf16.mxu1 %v7111_v47  ;;  %v7182_v47 = vcombine.low %v628_v36, %v632_v37  ;;  %v7175_v49 = vcombine.high %v620_v44, %v624_v45  ;;  %v480_v61 = vld [vmem:[#allocation5 + $0x2f8] sm:$0xff] }
 0x15f   : > { %2214 = vmatpush1.bf16.msra.mxu0 %v6982_v52  ;;  %v612_v52 = vld [vmem:[#allocation5 + $0x718] sm:$0xff]  ;;  %v7031_v0 = vcombine.high %v476_v60, %v480_v61 }
 0x160   : > { %2215 = vmatprep.subr.bf16.mxu0 %v6975_v54  ;;  %v7046_v54 = vcombine.low %v492_v42, %v496_v43  ;;  %v468_v2 = vld [vmem:[#allocation5 + $0x298] sm:$0xff]  ;;  %v2483_v42 = vld [vmem:[#allocation8 + $0x580] sm:$0xff] }
 0x161   : > { %2255 = vmatpush1.bf16.msra.mxu1 %v7110_v53  ;;  %v616_v53 = vld [vmem:[#allocation5 + $0x738] sm:$0xff]  ;;  %v2487_v43 = vld [vmem:[#allocation8 + $0x5a0] sm:$0xff] }
 0x162   : > { %2256 = vmatprep.subr.bf16.mxu1 %v7103_v55  ;;  %v7174_v55 = vcombine.low %v620_v44, %v624_v45  ;;  %v7167_v57 = vcombine.high %v612_v52, %v616_v53  ;;  %v472_v3 = vld [vmem:[#allocation5 + $0x2b8] sm:$0xff] }
 0x163   : > { %2216 = vmatpush1.bf16.msra.mxu0 %v6974_v62  ;;  %v604_v62 = vld [vmem:[#allocation5 + $0x6d8] sm:$0xff]  ;;  %v7023_v8 = vcombine.high %v468_v2, %v472_v3 }
 0x164   : > { %2217 = vmatprep.subr.bf16.mxu0 %v6967_v63  ;;  %v7038_v63 = vcombine.low %v484_v50, %v488_v51  ;;  %v460_v10 = vld [vmem:[#allocation5 + $0x258] sm:$0xff]  ;;  %v7369_v50 = vcombine.high %v2483_v42, %v2487_v43 }
 0x165   : > { %2257 = vmatpush1.bf16.msra.mxu1 %v7102_v58  ;;  %v608_v58 = vld [vmem:[#allocation5 + $0x6f8] sm:$0xff] }
 0x166   : > { %2258 = vmatprep.subr.bf16.mxu1 %v7095_v59  ;;  %v7166_v59 = vcombine.low %v612_v52, %v616_v53  ;;  %v7159_v1 = vcombine.high %v604_v62, %v608_v58  ;;  %v464_v11 = vld [vmem:[#allocation5 + $0x278] sm:$0xff]  ;;  %v2475_v52 = vld [vmem:[#allocation8 + $0x540] sm:$0xff] }
 0x167   : > { %2218 = vmatpush1.bf16.msra.mxu0 %v6966_v4  ;;  %v596_v4 = vld [vmem:[#allocation5 + $0x698] sm:$0xff]  ;;  %v7015_v17 = vcombine.high %v460_v10, %v464_v11  ;;  %v2479_v53 = vld [vmem:[#allocation8 + $0x560] sm:$0xff] }
 0x168   : > { %2219 = vmatprep.subr.bf16.mxu0 %v6959_v6  ;;  %v7030_v6 = vcombine.low %v476_v60, %v480_v61  ;;  %v452_v20 = vld [vmem:[#allocation5 + $0x218] sm:$0xff]  ;;  %v7368_v60 = vcombine.low %v2483_v42, %v2487_v43  ;;  %v2435_v42 = vld [vmem:[#allocation8 + $0x400] sm:$0xff] }
 0x169   : > { %2259 = vmatpush1.bf16.msra.mxu1 %v7094_v5  ;;  %v600_v5 = vld [vmem:[#allocation5 + $0x6b8] sm:$0xff]  ;;  %v2439_v43 = vld [vmem:[#allocation8 + $0x420] sm:$0xff] }
 0x16a   : > { %2260 = vmatprep.subr.bf16.mxu1 %v7087_v7  ;;  %v7158_v7 = vcombine.low %v604_v62, %v608_v58  ;;  %v7151_v9 = vcombine.high %v596_v4, %v600_v5  ;;  %v456_v21 = vld [vmem:[#allocation5 + $0x238] sm:$0xff]  ;;  %v2339_v58 = vld [vmem:[#allocation8 + $0x100] sm:$0xff] }
 0x16b   : > { %2220 = vmatpush1.bf16.msra.mxu0 %v6958_v12  ;;  %v588_v12 = vld [vmem:[#allocation5 + $0x658] sm:$0xff]  ;;  %v7007_v27 = vcombine.high %v452_v20, %v456_v21  ;;  %v7006_v34 = vcombine.low %v452_v20, %v456_v21  ;;  %v2323_v20 = vld [vmem:[#allocation8 + $0x80] sm:$0xff] }
 0x16c   : > { %2221 = vmatprep.subr.bf16.mxu0 %v6951_v14  ;;  %v7022_v14 = vcombine.low %v468_v2, %v472_v3  ;;  %v2327_v21 = vld [vmem:[#allocation8 + $0xa0] sm:$0xff] }
 0x16d   : > { %2261 = vmatpush1.bf16.msra.mxu1 %v7086_v13  ;;  %v592_v13 = vld [vmem:[#allocation5 + $0x678] sm:$0xff] }
 0x16e   : > { %2262 = vmatprep.subr.bf16.mxu1 %v7079_v15  ;;  %v7150_v15 = vcombine.low %v596_v4, %v600_v5  ;;  %v7143_v18 = vcombine.high %v588_v12, %v592_v13  ;;  %v7142_v26 = vcombine.low %v588_v12, %v592_v13  ;;  %v2459_v12 = vld [vmem:[#allocation8 + $0x4c0] sm:$0xff] }
 0x16f   : > { %2222 = vmatpush1.bf16.msra.mxu0 %v6950_v22  ;;  %v643_v22 = vlaneseq  ;;  %v2463_v13 = vld [vmem:[#allocation8 + $0x4e0] sm:$0xff] }
 0x170   : > { %2223 = vmatprep.subr.bf16.mxu0 %v6943_v24  ;;  %v584_v24 = vld [vmem:[#allocation5 + $0x638] sm:$0xff] }
 0x171   : > { %2263 = vmatpush1.bf16.msra.mxu1 %v7078_v23  ;;  %v580_v23 = vld [vmem:[#allocation5 + $0x618] sm:$0xff]  ;;  %v8567_v29 = vshrl.u32 %v643_v22, 7  ;;  %v7345_v22 = vcombine.high %v2459_v12, %v2463_v13 }
 0x172   : > { %2264 = vmatprep.subr.bf16.mxu1 %v7071_v25  ;;  %v7014_v25 = vcombine.low %v460_v10, %v464_v11  ;;  %v7135_v28 = vcombine.high %v580_v23, %v584_v24  ;;  %v7134_v35 = vcombine.low %v580_v23, %v584_v24  ;;  %v2335_v10 = vld [vmem:[#allocation8 + $0xe0] sm:$0xff] }
 0x173   : > { %2224 = vmatpush1.bf16.msra.mxu0 %v6942_v30  ;;  %v2363_v30 = vld [vmem:[#allocation8 + $0x1c0] sm:$0xff]  ;;  %v649_v37 = vsub.s32 1, %v8567_v29 }
 0x174   : > { %2225 = vmatprep.subr.bf16.mxu0 %v7063_v32  ;;  %v2491_v32 = vld [vmem:[#allocation8 + $0x5c0] sm:$0xff] }
 0x175   : > { %2265 = vmatpush1.bf16.msra.mxu1 %v7070_v31  ;;  %v2367_v31 = vld [vmem:[#allocation8 + $0x1e0] sm:$0xff] }
 0x176   : > { %2266 = vmatprep.subr.bf16.mxu1 %v7191_v33  ;;  %v2495_v33 = vld [vmem:[#allocation8 + $0x5e0] sm:$0xff]  ;;  %v7249_v36 = vcombine.high %v2363_v30, %v2367_v31  ;;  %v7248_v44 = vcombine.low %v2363_v30, %v2367_v31 }
 0x177   : > { %2226 = vmatpush2.bf16.msra.mxu0 %v7062_v38  ;;  %v2355_v38 = vld [vmem:[#allocation8 + $0x180] sm:$0xff] }
 0x178   : > { %2227 = vmatprep.subr.bf16.mxu0 %v7055_v40  ;;  %v7377_v40 = vcombine.high %v2491_v32, %v2495_v33  ;;  %v2451_v23 = vld [vmem:[#allocation8 + $0x480] sm:$0xff] }
 0x179   : > { %2267 = vmatpush2.bf16.msra.mxu1 %v7190_v39  ;;  %v2359_v39 = vld [vmem:[#allocation8 + $0x1a0] sm:$0xff] }
 0x17a   : > { %2268 = vmatprep.subr.bf16.mxu1 %v7183_v41  ;;  %v8570_v41 = vld [vmem:[#allocation7] sm:$0xff]  ;;  %v7241_v45 = vcombine.high %v2355_v38, %v2359_v39  ;;  %v2455_v24 = vld [vmem:[#allocation8 + $0x4a0] sm:$0xff] }
 0x17b   : > { %2228 = vmatpush2.bf16.msra.mxu0 %v7054_v46  ;;  %v7376_v46 = vcombine.low %v2491_v32, %v2495_v33  ;;  %v2319_v30 = vld [vmem:[#allocation8 + $0x60] sm:$0xff]  ;;  %v7337_v31 = vcombine.high %v2451_v23, %v2455_v24 }
 0x17c   : > { %2229 = vmatprep.subr.bf16.mxu0 %v7047_v48  ;;  %v2347_v48 = vld [vmem:[#allocation8 + $0x140] sm:$0xff] }
 0x17d   : > { %2269 = vmatpush2.bf16.msra.mxu1 %v7182_v47  ;;  %v650_v47 = vrot.slane %v8570_v41, %v649_v37  ;;  %v2443_v32 = vld [vmem:[#allocation8 + $0x440] sm:$0xff] }
 0x17e   : > { %2270 = vmatprep.subr.bf16.mxu1 %v7175_v49  ;;  %v2351_v49 = vld [vmem:[#allocation8 + $0x160] sm:$0xff] }
 0x17f   : > { %2230 = vmatpush2.bf16.msra.mxu0 %v7046_v54  ;;  %v2447_v33 = vld [vmem:[#allocation8 + $0x460] sm:$0xff] }
 0x180   : > { %2231 = vmatprep.subr.bf16.mxu0 %v7039_v56 }
 0x181   : > { %2271 = vmatpush2.bf16.msra.mxu1 %v7174_v55  ;;  %v7240_v55 = vcombine.low %v2355_v38, %v2359_v39  ;;  %v2307_v38 = vld [vmem:[#allocation8] sm:$0xff] }
 0x182   : > { %2272 = vmatprep.subr.bf16.mxu1 %v7167_v57  ;;  %v7233_v57 = vcombine.high %v2347_v48, %v2351_v49  ;;  %v2311_v39 = vld [vmem:[#allocation8 + $0x20] sm:$0xff] }
 0x183   : > { %2232 = vmatpush2.bf16.msra.mxu0 %v7038_v63  ;;  %v2343_v63 = vld [vmem:[#allocation8 + $0x120] sm:$0xff] }
 0x184   : > { %2233 = vmatprep.subr.bf16.mxu0 %v7031_v0  ;;  %v2467_v0 = vld [vmem:[#allocation8 + $0x500] sm:$0xff]  ;;  %v7225_v5 = vcombine.high %v2339_v58, %v2343_v63 }
 0x185   : > { %2273 = vmatpush2.bf16.msra.mxu1 %v7166_v59  ;;  %v7361_v59 = vcombine.high %v2475_v52, %v2479_v53 }
 0x186   : > { %2274 = vmatprep.subr.bf16.mxu1 %v7159_v1  ;;  %v2471_v1 = vld [vmem:[#allocation8 + $0x520] sm:$0xff] }
 0x187   : > { %2234 = vmatpush2.bf16.msra.mxu0 %v7030_v6  ;;  %v7360_v6 = vcombine.low %v2475_v52, %v2479_v53  ;;  %v7353_v11 = vcombine.high %v2467_v0, %v2471_v1  ;;  %v2559_v52 = vld [vmem:[#allocation8 + $0x7e0] sm:$0xff]  ;;  %v7192_v53 = vcombine.low %v2307_v38, %v2311_v39 }
 0x188   : > { %2235 = vmatprep.subr.bf16.mxu0 %v7023_v8 }
 0x189   : > { %2275 = vmatpush2.bf16.msra.mxu1 %v7158_v7 }
 0x18a   : > { %2276 = vmatprep.subr.bf16.mxu1 %v7151_v9  ;;  %v2331_v9 = vld [vmem:[#allocation8 + $0xc0] sm:$0xff] }
 0x18b   : > { %2236 = vmatpush2.bf16.msra.mxu0 %v7022_v14 }
 0x18c   : > { %2237 = vmatprep.subr.bf16.mxu0 %v7015_v17  ;;  %v7217_v17 = vcombine.high %v2331_v9, %v2335_v10 }
 0x18d   : > { %2277 = vmatpush2.bf16.msra.mxu1 %v7150_v15  ;;  %v7224_v15 = vcombine.low %v2339_v58, %v2343_v63  ;;  %v2551_v58 = vld [vmem:[#allocation8 + $0x7a0] sm:$0xff] }
 0x18e   : > { %2278 = vmatprep.subr.bf16.mxu1 %v7143_v18  ;;  %v7352_v18 = vcombine.low %v2467_v0, %v2471_v1  ;;  %v2411_v0 = vld [vmem:[#allocation8 + $0x340] sm:$0xff] }
 0x18f   : > { %2238 = vmatpush2.bf16.msra.mxu0 %v7014_v25  ;;  %v7216_v25 = vcombine.low %v2331_v9, %v2335_v10  ;;  %v2415_v1 = vld [vmem:[#allocation8 + $0x360] sm:$0xff] }
 0x190   : > { %2239 = vmatprep.subr.bf16.mxu0 %v7007_v27  ;;  %v7344_v27 = vcombine.low %v2459_v12, %v2463_v13  ;;  %v2531_v10 = vld [vmem:[#allocation8 + $0x700] sm:$0xff]  ;;  %v7296_v12 = vcombine.low %v2411_v0, %v2415_v1 }
 0x191   : > { %2279 = vmatpush2.bf16.msra.mxu1 %v7142_v26  ;;  %v7209_v26 = vcombine.high %v2323_v20, %v2327_v21 }
 0x192   : > { %2280 = vmatprep.subr.bf16.mxu1 %v7135_v28  ;;  %v2315_v28 = vld [vmem:[#allocation8 + $0x40] sm:$0xff] }
 0x193   : > { %2240 = vmatpush2.bf16.msra.mxu0 %v7006_v34  ;;  %v7208_v34 = vcombine.low %v2323_v20, %v2327_v21  ;;  %v2523_v21 = vld [vmem:[#allocation8 + $0x6c0] sm:$0xff] }
 0x194   : > { %5421 = vmatprep.subr.bf16.mxu0 %v7249_v36  ;;  %v7336_v36 = vcombine.low %v2451_v23, %v2455_v24  ;;  %v645_v24 = vsub.s32 0, %v8567_v29 }
 0x195   : > { %2281 = vmatpush2.bf16.msra.mxu1 %v7134_v35  ;;  %v7201_v35 = vcombine.high %v2315_v28, %v2319_v30 }
 0x196   : > { %5462 = vmatprep.subr.bf16.mxu1 %v7377_v40  ;;  %v8575_v51 = vpop.f32.mrf.mxu0  ;;  %2242 = vmatmul.mubr.bf16.vlgmr.msra.gmra.mxu0 %v8551_v16  ;;  %v7329_v40 = vcombine.high %v2443_v32, %v2447_v33 }
 0x197   : > { %5422 = vmatpush1.bf16.msra.mxu0 %v7248_v44  ;;  %v7200_v44 = vcombine.low %v2315_v28, %v2319_v30  ;;  %v2391_v28 = vld [vmem:[#allocation8 + $0x2a0] sm:$0xff] }
 0x198   : > { %v8578_v54 = vpop.f32.mrf.mxu1  ;;  %2283 = vmatmul.mubr.bf16.vlgmr.msra.gmra.mxu1 %v8553_v19  ;;  %v1999_v56 = vpop.f32.mrf.mxu0  ;;  %5423 = vmatprep.subr.bf16.mxu0 %v7241_v45  ;;  %v7232_v19 = vcombine.low %v2347_v48, %v2351_v49  ;;  %v7193_v45 = vcombine.high %v2307_v38, %v2311_v39  ;;  %v2431_v48 = vld [vmem:[#allocation8 + $0x3e0] sm:$0xff]  ;;  %v7321_v49 = vcombine.high %v2435_v42, %v2439_v43 }
 0x199   : > { %5463 = vmatpush1.bf16.msra.mxu1 %v7376_v46  ;;  %v2000_v61 = vadd.f32 %v1999_v56, %v650_v47  ;;  %v7328_v46 = vcombine.low %v2443_v32, %v2447_v33  ;;  %v2427_v47 = vld [vmem:[#allocation8 + $0x3c0] sm:$0xff]  ;;  %v7320_v56 = vcombine.low %v2435_v42, %v2439_v43 }
 0x19a   : > { %v2040_v62 = vpop.f32.mrf.mxu1  ;;  %5464 = vmatprep.subr.bf16.mxu1 %v7369_v50  ;;  %v2001_v16 = vpop.f32.mrf.mxu0  ;;  %v2555_v50 = vld [vmem:[#allocation8 + $0x7c0] sm:$0xff]  ;;  %v7312_v63 = vcombine.low %v2427_v47, %v2431_v48 }
 0x19b   : > { %v2041_v2 = vadd.f32 %v2040_v62, %v2000_v61  ;;  %5424 = vmatpush1.bf16.msra.mxu0 %v7240_v55  ;;  %v7313_v55 = vcombine.high %v2427_v47, %v2431_v48  ;;  %v7441_v61 = vcombine.high %v2555_v50, %v2559_v52  ;;  %v2547_v62 = vld [vmem:[#allocation8 + $0x780] sm:$0xff]  ;;  %v7440_v16 = vcombine.low %v2555_v50, %v2559_v52 }
 0x19c   : > { %v2042_v3 = vpop.f32.mrf.mxu1  ;;  %v2002_v4 = vpop.f32.mrf.mxu0  ;;  %5425 = vmatprep.subr.bf16.mxu0 %v7233_v57  ;;  %v2419_v57 = vld [vmem:[#allocation8 + $0x380] sm:$0xff] }
 0x19d   : > { %5465 = vmatpush1.bf16.msra.mxu1 %v7368_v60  ;;  %v2292_v7 = vmax.f32 %v2041_v2, 0.0  ;;  %v2423_v60 = vld [vmem:[#allocation8 + $0x3a0] sm:$0xff]  ;;  %v7433_v2 = vcombine.high %v2547_v62, %v2551_v58 }
 0x19e   : > { %v2043_v8 = vpop.f32.mrf.mxu1  ;;  %5466 = vmatprep.subr.bf16.mxu1 %v7361_v59  ;;  %v7305_v59 = vcombine.high %v2419_v57, %v2423_v60  ;;  %v2539_v3 = vld [vmem:[#allocation8 + $0x740] sm:$0xff]  ;;  %v7304_v4 = vcombine.low %v2419_v57, %v2423_v60 }
 0x19f   : > { %v8581_v14 = vpack.c.bf16 %v2292_v7, %v2292_v7  ;;  %5426 = vmatpush1.bf16.msra.mxu0 %v7232_v19  ;;  %v2543_v19 = vld [vmem:[#allocation8 + $0x760] sm:$0xff] }
 0x1a0   : > { %5427 = vmatprep.subr.bf16.mxu0 %v7225_v5  ;;  %v7297_v5 = vcombine.high %v2411_v0, %v2415_v1  ;;  %v2403_v7 = vld [vmem:[#allocation8 + $0x300] sm:$0xff]  ;;  %v7425_v9 = vcombine.high %v2539_v3, %v2543_v19 }
 0x1a1   : > { %5467 = vmatpush1.bf16.msra.mxu1 %v7360_v6  ;;  %5453 = vmatprep.mubr.bf16.mxu0 %v8581_v14  ;;  %v7432_v6 = vcombine.low %v2547_v62, %v2551_v58  ;;  %v2407_v8 = vld [vmem:[#allocation8 + $0x320] sm:$0xff] }
 0x1a2   : > { %5468 = vmatprep.subr.bf16.mxu1 %v7353_v11  ;;  %v2535_v11 = vld [vmem:[#allocation8 + $0x720] sm:$0xff]  ;;  %v7289_v13 = vcombine.high %v2403_v7, %v2407_v8  ;;  %v7288_v23 = vcombine.low %v2403_v7, %v2407_v8 }
 0x1a3   : > { %5428 = vmatpush1.bf16.msra.mxu0 %v7224_v15  ;;  %v7424_v15 = vcombine.low %v2539_v3, %v2543_v19  ;;  %v7417_v20 = vcombine.high %v2531_v10, %v2535_v11  ;;  %v2519_v32 = vld [vmem:[#allocation8 + $0x6a0] sm:$0xff] }
 0x1a4   : > { %5429 = vmatprep.subr.bf16.mxu0 %v7217_v17  ;;  %v2395_v17 = vld [vmem:[#allocation8 + $0x2c0] sm:$0xff] }
 0x1a5   : > { %5469 = vmatpush1.bf16.msra.mxu1 %v7352_v18  ;;  %v2399_v18 = vld [vmem:[#allocation8 + $0x2e0] sm:$0xff] }
 0x1a6   : > { %5470 = vmatprep.subr.bf16.mxu1 %v7345_v22  ;;  %v2527_v22 = vld [vmem:[#allocation8 + $0x6e0] sm:$0xff]  ;;  %v7280_v33 = vcombine.low %v2395_v17, %v2399_v18 }
 0x1a7   : > { %5430 = vmatpush1.bf16.msra.mxu0 %v7216_v25  ;;  %v7281_v25 = vcombine.high %v2395_v17, %v2399_v18  ;;  %v7409_v30 = vcombine.high %v2523_v21, %v2527_v22  ;;  %v2379_v38 = vld [vmem:[#allocation8 + $0x240] sm:$0xff] }
 0x1a8   : > { %5431 = vmatprep.subr.bf16.mxu0 %v7209_v26  ;;  %v7416_v26 = vcombine.low %v2531_v10, %v2535_v11  ;;  %v2383_v39 = vld [vmem:[#allocation8 + $0x260] sm:$0xff] }
 0x1a9   : > { %5471 = vmatpush1.bf16.msra.mxu1 %v7344_v27  ;;  %v2387_v27 = vld [vmem:[#allocation8 + $0x280] sm:$0xff] }
 0x1aa   : > { %5472 = vmatprep.subr.bf16.mxu1 %v7337_v31  ;;  %v2515_v31 = vld [vmem:[#allocation8 + $0x680] sm:$0xff] }
 0x1ab   : > { %5432 = vmatpush1.bf16.msra.mxu0 %v7208_v34  ;;  %v646_v34 = vrot.slane %v8570_v41, %v645_v24  ;;  %v2507_v42 = vld [vmem:[#allocation8 + $0x640] sm:$0xff]  ;;  %v7400_v47 = vcombine.low %v2515_v31, %v2519_v32 }
 0x1ac   : > { %5433 = vmatprep.subr.bf16.mxu0 %v7201_v35  ;;  %v7273_v35 = vcombine.high %v2387_v27, %v2391_v28  ;;  %v2511_v43 = vld [vmem:[#allocation8 + $0x660] sm:$0xff] }
 0x1ad   : > { %5473 = vmatpush1.bf16.msra.mxu1 %v7336_v36  ;;  %v7408_v36 = vcombine.low %v2523_v21, %v2527_v22  ;;  %v2371_v48 = vld [vmem:[#allocation8 + $0x200] sm:$0xff]  ;;  %v7393_v50 = vcombine.high %v2507_v42, %v2511_v43  ;;  %v7392_v60 = vcombine.low %v2507_v42, %v2511_v43 }
 0x1ae   : > { %5474 = vmatprep.subr.bf16.mxu1 %v7329_v40  ;;  %v7401_v40 = vcombine.high %v2515_v31, %v2519_v32  ;;  %v2499_v52 = vld [vmem:[#allocation8 + $0x600] sm:$0xff] }
 0x1af   : > { %5434 = vmatpush1.bf16.msra.mxu0 %v7200_v44  ;;  %v7272_v44 = vcombine.low %v2387_v27, %v2391_v28  ;;  %v2623_v62 = vld [vmem:[#allocation8 + $0x9e0] sm:$0xff] }
 0x1b0   : > { %5435 = vmatprep.subr.bf16.mxu0 %v7193_v45  ;;  %v1998_v45 = vadd.f32 %v8575_v51, %v646_v34  ;;  %v8590_v58 = vld [vmem:[#allocation8 + $0xdc0] sm:$0xff] }
 0x1b1   : > { %5475 = vmatpush1.bf16.msra.mxu1 %v7328_v46  ;;  %v7265_v46 = vcombine.high %v2379_v38, %v2383_v39  ;;  %v2611_v3 = vld [vmem:[#allocation8 + $0x980] sm:$0xff] }
 0x1b2   : > { %5476 = vmatprep.subr.bf16.mxu1 %v7321_v49  ;;  %v2375_v49 = vld [vmem:[#allocation8 + $0x220] sm:$0xff] }
 0x1b3   : > { %5436 = vmatpush1.bf16.msra.mxu0 %v7192_v53  ;;  %v2503_v53 = vld [vmem:[#allocation8 + $0x620] sm:$0xff]  ;;  %v7257_v57 = vcombine.high %v2371_v48, %v2375_v49 }
 0x1b4   : > { %5437 = vmatprep.subr.bf16.mxu0 %v7313_v55  ;;  %v7264_v55 = vcombine.low %v2379_v38, %v2383_v39  ;;  %v7385_v51 = vcombine.high %v2499_v52, %v2503_v53  ;;  %v2615_v19 = vld [vmem:[#allocation8 + $0x9a0] sm:$0xff] }
 0x1b5   : > { %5477 = vmatpush1.bf16.msra.mxu1 %v7320_v56  ;;  %v2039_v56 = vadd.f32 %v8578_v54, %v1998_v45  ;;  %v7384_v54 = vcombine.low %v2499_v52, %v2503_v53  ;;  %v7497_v8 = vcombine.high %v2611_v3, %v2615_v19  ;;  %v2603_v10 = vld [vmem:[#allocation8 + $0x940] sm:$0xff]  ;;  %v7496_v17 = vcombine.low %v2611_v3, %v2615_v19 }
 0x1b6   : > { %5478 = vmatprep.subr.bf16.mxu1 %v7441_v61  ;;  %v2619_v61 = vld [vmem:[#allocation8 + $0x9c0] sm:$0xff] }
 0x1b7   : > { %5438 = vmatpush2.bf16.msra.mxu0 %v7312_v63  ;;  %v8592_v63 = vld [vmem:[#allocation8 + $0xde0] sm:$0xff]  ;;  %v2291_v0 = vmax.f32 %v2039_v56, 0.0  ;;  %v7505_v1 = vcombine.high %v2619_v61, %v2623_v62 }
 0x1b8   : > { %5439 = vmatprep.subr.bf16.mxu0 %v7305_v59  ;;  %v7256_v59 = vcombine.low %v2371_v48, %v2375_v49  ;;  %v2607_v11 = vld [vmem:[#allocation8 + $0x960] sm:$0xff]  ;;  %v7632_v45 = vcombine.low %v8590_v58, %v8592_v63 }
 0x1b9   : > { %5479 = vmatpush2.bf16.msra.mxu1 %v7440_v16  ;;  %v653_v16 = vsub.s32 2, %v8567_v29  ;;  %v8601_v7 = vpack.c.bf16 %v2291_v0, %v2291_v0  ;;  %v7488_v31 = vcombine.low %v2603_v10, %v2607_v11  ;;  %v2591_v39 = vld [vmem:[#allocation8 + $0x8e0] sm:$0xff] }
 0x1ba   : > { %5480 = vmatprep.subr.bf16.mxu1 %v7433_v2  ;;  %v657_v2 = vsub.s32 3, %v8567_v29  ;;  %v2743_v42 = vld [vmem:[#allocation8 + $0xda0] sm:$0xff] }
 0x1bb   : > { %5440 = vmatpush2.bf16.msra.mxu0 %v7304_v4  ;;  %v7633_v4 = vcombine.high %v8590_v58, %v8592_v63  ;;  %v2583_v53 = vld [vmem:[#allocation8 + $0x8a0] sm:$0xff] }
 0x1bc   : > { %5441 = vmatprep.subr.bf16.mxu0 %v7297_v5  ;;  %v654_v5 = vrot.slane %v8570_v41, %v653_v16  ;;  %v2735_v56 = vld [vmem:[#allocation8 + $0xd60] sm:$0xff] }
 0x1bd   : > { %5481 = vmatpush2.bf16.msra.mxu1 %v7432_v6  ;;  %v7504_v6 = vcombine.low %v2619_v61, %v2623_v62  ;;  %v2571_v62 = vld [vmem:[#allocation8 + $0x840] sm:$0xff] }
 0x1be   : > { %5482 = vmatprep.subr.bf16.mxu1 %v7425_v9  ;;  %v658_v9 = vrot.slane %v8570_v41, %v657_v2  ;;  %v2575_v63 = vld [vmem:[#allocation8 + $0x860] sm:$0xff] }
 0x1bf   : > { %5442 = vmatpush2.bf16.msra.mxu0 %v7296_v12  ;;  %v2727_v0 = vld [vmem:[#allocation8 + $0xd20] sm:$0xff]  ;;  %v7457_v3 = vcombine.high %v2571_v62, %v2575_v63 }
 0x1c0   : > { %5443 = vmatprep.subr.bf16.mxu0 %v7289_v13  ;;  %v2563_v19 = vld [vmem:[#allocation8 + $0x800] sm:$0xff] }
 0x1c1   : > { %5483 = vmatpush2.bf16.msra.mxu1 %v7424_v15 }
 0x1c2   : > { %5484 = vmatprep.subr.bf16.mxu1 %v7417_v20  ;;  %v7489_v20 = vcombine.high %v2603_v10, %v2607_v11 }
 0x1c3   : > { %5444 = vmatpush2.bf16.msra.mxu0 %v7288_v23 }
 0x1c4   : > { %5445 = vmatprep.subr.bf16.mxu0 %v7281_v25  ;;  %v2595_v25 = vld [vmem:[#allocation8 + $0x900] sm:$0xff] }
 0x1c5   : > { %5485 = vmatpush2.bf16.msra.mxu1 %v7416_v26  ;;  %v2599_v26 = vld [vmem:[#allocation8 + $0x920] sm:$0xff] }
 0x1c6   : > { %5486 = vmatprep.subr.bf16.mxu1 %v7409_v30  ;;  %v7481_v34 = vcombine.high %v2595_v25, %v2599_v26 }
 0x1c7   : > { %5446 = vmatpush2.bf16.msra.mxu0 %v7280_v33 }
 0x1c8   : > { %5447 = vmatprep.subr.bf16.mxu0 %v7273_v35  ;;  %v2587_v35 = vld [vmem:[#allocation8 + $0x8c0] sm:$0xff] }
 0x1c9   : > { %5487 = vmatpush2.bf16.msra.mxu1 %v7408_v36  ;;  %v7473_v49 = vcombine.high %v2587_v35, %v2591_v39 }
 0x1ca   : > { %5488 = vmatprep.subr.bf16.mxu1 %v7401_v40  ;;  %v2739_v40 = vld [vmem:[#allocation8 + $0xd80] sm:$0xff] }
 0x1cb   : > { %5448 = vmatpush2.bf16.msra.mxu0 %v7272_v44  ;;  %v7480_v44 = vcombine.low %v2595_v25, %v2599_v26  ;;  %v7625_v52 = vcombine.high %v2739_v40, %v2743_v42  ;;  %v2679_v26 = vld [vmem:[#allocation8 + $0xba0] sm:$0xff] }
 0x1cc   : > { %5449 = vmatprep.subr.bf16.mxu0 %v7265_v46  ;;  %v8611_v46 = vld [vmem:[#allocation8 + $0x5c8] sm:$0xff] }
 0x1cd   : > { %5489 = vmatpush2.bf16.msra.mxu1 %v7400_v47  ;;  %v8613_v47 = vld [vmem:[#allocation8 + $0x5e8] sm:$0xff] }
 0x1ce   : > { %5490 = vmatprep.subr.bf16.mxu1 %v7393_v50  ;;  %v2579_v50 = vld [vmem:[#allocation8 + $0x880] sm:$0xff] }
 0x1cf   : > { %5450 = vmatpush2.bf16.msra.mxu0 %v7264_v55  ;;  %v2731_v55 = vld [vmem:[#allocation8 + $0xd40] sm:$0xff]  ;;  %v7465_v61 = vcombine.high %v2579_v50, %v2583_v53 }
 0x1d0   : > { %5451 = vmatprep.subr.bf16.mxu0 %v7257_v57  ;;  %v7378_v57 = vcombine.low %v8611_v46, %v8613_v47  ;;  %v7617_v58 = vcombine.high %v2731_v55, %v2735_v56 }
 0x1d1   : > { %5491 = vmatpush2.bf16.msra.mxu1 %v7392_v60  ;;  %v7472_v60 = vcombine.low %v2587_v35, %v2591_v39  ;;  %v2671_v35 = vld [vmem:[#allocation8 + $0xb60] sm:$0xff] }
 0x1d2   : > { %5492 = vmatprep.subr.bf16.mxu1 %v7385_v51  ;;  %v7624_v51 = vcombine.low %v2739_v40, %v2743_v42 }
 0x1d3   : > { %5452 = vmatpush2.bf16.msra.mxu0 %v7256_v59  ;;  %v2723_v59 = vld [vmem:[#allocation8 + $0xd00] sm:$0xff] }
 0x1d4   : > { %5503 = vmatprep.subr.bf16.mxu0 %v7505_v1  ;;  %v7616_v1 = vcombine.low %v2731_v55, %v2735_v56  ;;  %v7608_v10 = vcombine.low %v2723_v59, %v2727_v0 }
 0x1d5   : > { %5493 = vmatpush2.bf16.msra.mxu1 %v7384_v54  ;;  %v7464_v54 = vcombine.low %v2579_v50, %v2583_v53  ;;  %v2811_v50 = vld [vmem:[#allocation8 + $0xfc0] sm:$0xff] }
 0x1d6   : > { %5544 = vmatprep.subr.bf16.mxu1 %v7633_v4  ;;  %v2079_v12 = vpop.f32.mrf.mxu0  ;;  %5454 = vmatmul.mubr.bf16.vlgmr.msra.gmra.mxu0 %v8601_v7  ;;  %v7609_v4 = vcombine.high %v2723_v59, %v2727_v0 }
 0x1d7   : > { %v2080_v13 = vadd.f32 %v2079_v12, %v654_v5  ;;  %5504 = vmatpush1.bf16.msra.mxu0 %v7504_v6  ;;  %v2567_v5 = vld [vmem:[#allocation8 + $0x820] sm:$0xff] }
 0x1d8   : > { %v2120_v15 = vpop.f32.mrf.mxu1  ;;  %v2081_v18 = vpop.f32.mrf.mxu0  ;;  %5505 = vmatprep.subr.bf16.mxu0 %v7497_v8  ;;  %v2715_v6 = vld [vmem:[#allocation8 + $0xcc0] sm:$0xff]  ;;  %v7449_v11 = vcombine.high %v2563_v19, %v2567_v5 }
 0x1d9   : > { %v2121_v21 = vadd.f32 %v2120_v15, %v2080_v13  ;;  %v2082_v22 = vadd.f32 %v2081_v18, %v658_v9  ;;  %v2719_v8 = vld [vmem:[#allocation8 + $0xce0] sm:$0xff]  ;;  %v7456_v9 = vcombine.low %v2571_v62, %v2575_v63 }
 0x1da   : > { %v2122_v23 = vpop.f32.mrf.mxu1  ;;  %v2083_v27 = vpop.f32.mrf.mxu0  ;;  %v2683_v12 = vld [vmem:[#allocation8 + $0xbc0] sm:$0xff]  ;;  %v7601_v13 = vcombine.high %v2715_v6, %v2719_v8 }
 0x1db   : > { %v2123_v28 = vadd.f32 %v2122_v23, %v2082_v22  ;;  %5506 = vmatpush1.bf16.msra.mxu0 %v7496_v17  ;;  %v2293_v32 = vmax.f32 %v2121_v21, 0.0  ;;  %v2687_v15 = vld [vmem:[#allocation8 + $0xbe0] sm:$0xff]  ;;  %v7600_v21 = vcombine.low %v2715_v6, %v2719_v8 }
 0x1dc   : > { %v2124_v30 = vpop.f32.mrf.mxu1  ;;  %v2084_v33 = vpop.f32.mrf.mxu0  ;;  %5507 = vmatprep.subr.bf16.mxu0 %v7489_v20  ;;  %v2707_v17 = vld [vmem:[#allocation8 + $0xc80] sm:$0xff]  ;;  %v7448_v20 = vcombine.low %v2563_v19, %v2567_v5  ;;  %v7569_v22 = vcombine.high %v2683_v12, %v2687_v15 }
 0x1dd   : > { %v2294_v36 = vmax.f32 %v2123_v28, 0.0  ;;  %v8615_v48 = vpack.c.bf16 %v2293_v32, %v2293_v32  ;;  %v2711_v18 = vld [vmem:[#allocation8 + $0xca0] sm:$0xff]  ;;  %v7568_v30 = vcombine.low %v2683_v12, %v2687_v15 }
 0x1de   : > { %v2125_v38 = vpop.f32.mrf.mxu1  ;;  %v2675_v23 = vld [vmem:[#allocation8 + $0xb80] sm:$0xff]  ;;  %v7593_v25 = vcombine.high %v2707_v17, %v2711_v18 }
 0x1df   : > { %v8607_v43 = vpack.c.bf16 %v2294_v36, %v2294_v36  ;;  %5508 = vmatpush1.bf16.msra.mxu0 %v7488_v31  ;;  %v2699_v27 = vld [vmem:[#allocation8 + $0xc40] sm:$0xff]  ;;  %v7592_v31 = vcombine.low %v2707_v17, %v2711_v18  ;;  %v7561_v32 = vcombine.high %v2675_v23, %v2679_v26  ;;  %v7560_v39 = vcombine.low %v2675_v23, %v2679_v26 }
 0x1e0   : > { %5509 = vmatprep.subr.bf16.mxu0 %v7481_v34  ;;  %v2703_v28 = vld [vmem:[#allocation8 + $0xc60] sm:$0xff] }
 0x1e1   : > { %5494 = vmatprep.mubr.bf16.mxu1 %v8607_v43  ;;  %v2667_v33 = vld [vmem:[#allocation8 + $0xb40] sm:$0xff]  ;;  %v7585_v34 = vcombine.high %v2699_v27, %v2703_v28  ;;  %v7584_v40 = vcombine.low %v2699_v27, %v2703_v28 }
 0x1e2   : > { %5495 = vmatmul.mubr.bf16.vlgmr.msra.gmra.mxu1 %v8615_v48  ;;  %v2691_v36 = vld [vmem:[#allocation8 + $0xc00] sm:$0xff]  ;;  %v7553_v42 = vcombine.high %v2667_v33, %v2671_v35  ;;  %v7552_v53 = vcombine.low %v2667_v33, %v2671_v35  ;;  %v661_v35 = vsub.s32 4, %v8567_v29 }
 0x1e3   : > { %5510 = vmatpush1.bf16.msra.mxu0 %v7480_v44  ;;  %5545 = vmatpush1.bf16.msra.mxu1 %v7632_v45  ;;  %v2695_v38 = vld [vmem:[#allocation8 + $0xc20] sm:$0xff] }
 0x1e4   : > { %5511 = vmatprep.subr.bf16.mxu0 %v7473_v49  ;;  %5546 = vmatprep.subr.bf16.mxu1 %v7625_v52  ;;  %v2659_v44 = vld [vmem:[#allocation8 + $0xb00] sm:$0xff]  ;;  %v7577_v45 = vcombine.high %v2691_v36, %v2695_v38  ;;  %v7576_v55 = vcombine.low %v2691_v36, %v2695_v38 }
 0x1e5   : > { %v2663_v49 = vld [vmem:[#allocation8 + $0xb20] sm:$0xff] }
 0x1e6   : > { %v2815_v52 = vld [vmem:[#allocation8 + $0xfe0] sm:$0xff]  ;;  %v7545_v56 = vcombine.high %v2659_v44, %v2663_v49  ;;  %v7544_v63 = vcombine.low %v2659_v44, %v2663_v49  ;;  %v662_v49 = vrot.slane %v8570_v41, %v661_v35 }
 0x1e7   : > { %5512 = vmatpush1.bf16.msra.mxu0 %v7472_v60  ;;  %5547 = vmatpush1.bf16.msra.mxu1 %v7624_v51  ;;  %v2651_v60 = vld [vmem:[#allocation8 + $0xac0] sm:$0xff]  ;;  %v7697_v51 = vcombine.high %v2811_v50, %v2815_v52  ;;  %v7696_v59 = vcombine.low %v2811_v50, %v2815_v52 }
 0x1e8   : > { %5513 = vmatprep.subr.bf16.mxu0 %v7465_v61  ;;  %5548 = vmatprep.subr.bf16.mxu1 %v7617_v58  ;;  %v2655_v61 = vld [vmem:[#allocation8 + $0xae0] sm:$0xff] }
 0x1e9   : > { %v2803_v62 = vld [vmem:[#allocation8 + $0xf80] sm:$0xff]  ;;  %v7537_v0 = vcombine.high %v2651_v60, %v2655_v61  ;;  %v7536_v5 = vcombine.low %v2651_v60, %v2655_v61 }
 0x1ea   : > { %v2807_v58 = vld [vmem:[#allocation8 + $0xfa0] sm:$0xff] }
 0x1eb   : > { %5514 = vmatpush1.bf16.msra.mxu0 %v7464_v54  ;;  %5549 = vmatpush1.bf16.msra.mxu1 %v7616_v1  ;;  %v2643_v54 = vld [vmem:[#allocation8 + $0xa80] sm:$0xff]  ;;  %v7689_v1 = vcombine.high %v2803_v62, %v2807_v58  ;;  %v7688_v6 = vcombine.low %v2803_v62, %v2807_v58 }
 0x1ec   : > { %5515 = vmatprep.subr.bf16.mxu0 %v7457_v3  ;;  %5550 = vmatprep.subr.bf16.mxu1 %v7609_v4  ;;  %v2647_v3 = vld [vmem:[#allocation8 + $0xaa0] sm:$0xff] }
 0x1ed   : > { %v2795_v19 = vld [vmem:[#allocation8 + $0xf40] sm:$0xff]  ;;  %v7529_v8 = vcombine.high %v2643_v54, %v2647_v3  ;;  %v7528_v15 = vcombine.low %v2643_v54, %v2647_v3 }
 0x1ee   : > { %v2799_v4 = vld [vmem:[#allocation8 + $0xf60] sm:$0xff] }
 0x1ef   : > { %5516 = vmatpush1.bf16.msra.mxu0 %v7456_v9  ;;  %5551 = vmatpush1.bf16.msra.mxu1 %v7608_v10  ;;  %v2635_v9 = vld [vmem:[#allocation8 + $0xa40] sm:$0xff]  ;;  %v7681_v10 = vcombine.high %v2795_v19, %v2799_v4  ;;  %v7680_v17 = vcombine.low %v2795_v19, %v2799_v4 }
 0x1f0   : > { %5517 = vmatprep.subr.bf16.mxu0 %v7449_v11  ;;  %5552 = vmatprep.subr.bf16.mxu1 %v7601_v13  ;;  %v2639_v11 = vld [vmem:[#allocation8 + $0xa60] sm:$0xff] }
 0x1f1   : > { %v2787_v12 = vld [vmem:[#allocation8 + $0xf00] sm:$0xff]  ;;  %v7521_v18 = vcombine.high %v2635_v9, %v2639_v11  ;;  %v7520_v26 = vcombine.low %v2635_v9, %v2639_v11  ;;  %v2360_v11 = vld [vmem:[#allocation8 + $0x1a8] sm:$0xff] }
 0x1f2   : > { %v2791_v13 = vld [vmem:[#allocation8 + $0xf20] sm:$0xff] }
 0x1f3   : > { %5518 = vmatpush1.bf16.msra.mxu0 %v7448_v20  ;;  %5553 = vmatpush1.bf16.msra.mxu1 %v7600_v21  ;;  %v2627_v20 = vld [vmem:[#allocation8 + $0xa00] sm:$0xff]  ;;  %v7673_v21 = vcombine.high %v2787_v12, %v2791_v13  ;;  %v7672_v27 = vcombine.low %v2787_v12, %v2791_v13 }
 0x1f4   : > { %5519 = vmatprep.subr.bf16.mxu0 %v7569_v22  ;;  %5554 = vmatprep.subr.bf16.mxu1 %v7593_v25  ;;  %v2631_v22 = vld [vmem:[#allocation8 + $0xa20] sm:$0xff] }
 0x1f5   : > { %v2779_v23 = vld [vmem:[#allocation8 + $0xec0] sm:$0xff]  ;;  %v7513_v28 = vcombine.high %v2627_v20, %v2631_v22  ;;  %v7512_v36 = vcombine.low %v2627_v20, %v2631_v22  ;;  %v2352_v20 = vld [vmem:[#allocation8 + $0x168] sm:$0xff] }
 0x1f6   : > { %v2783_v25 = vld [vmem:[#allocation8 + $0xee0] sm:$0xff] }
 0x1f7   : > { %5520 = vmatpush2.bf16.msra.mxu0 %v7568_v30  ;;  %5555 = vmatpush1.bf16.msra.mxu1 %v7592_v31  ;;  %v2364_v30 = vld [vmem:[#allocation8 + $0x1c8] sm:$0xff]  ;;  %v7665_v31 = vcombine.high %v2779_v23, %v2783_v25  ;;  %v2771_v33 = vld [vmem:[#allocation8 + $0xe80] sm:$0xff]  ;;  %v7664_v38 = vcombine.low %v2779_v23, %v2783_v25 }
 0x1f8   : > { %5521 = vmatprep.subr.bf16.mxu0 %v7561_v32  ;;  %5556 = vmatprep.subr.bf16.mxu1 %v7585_v34  ;;  %v2368_v32 = vld [vmem:[#allocation8 + $0x1e8] sm:$0xff]  ;;  %v2775_v34 = vld [vmem:[#allocation8 + $0xea0] sm:$0xff] }
 0x1f9   : > { %v2763_v44 = vld [vmem:[#allocation8 + $0xe40] sm:$0xff]  ;;  %v7656_v50 = vcombine.low %v2771_v33, %v2775_v34  ;;  %v7250_v13 = vcombine.low %v2364_v30, %v2368_v32  ;;  %v2340_v23 = vld [vmem:[#allocation8 + $0x108] sm:$0xff] }
 0x1fa   : > { %v2344_v25 = vld [vmem:[#allocation8 + $0x128] sm:$0xff] }
 0x1fb   : > { %5522 = vmatpush2.bf16.msra.mxu0 %v7560_v39  ;;  %5557 = vmatpush1.bf16.msra.mxu1 %v7584_v40  ;;  %v7251_v39 = vcombine.high %v2364_v30, %v2368_v32  ;;  %v7657_v40 = vcombine.high %v2771_v33, %v2775_v34  ;;  %v2336_v30 = vld [vmem:[#allocation8 + $0xe8] sm:$0xff] }
 0x1fc   : > { %5523 = vmatprep.subr.bf16.mxu0 %v7553_v42  ;;  %5558 = vmatprep.subr.bf16.mxu1 %v7577_v45  ;;  %v665_v42 = vsub.s32 5, %v8567_v29  ;;  %v2767_v45 = vld [vmem:[#allocation8 + $0xe60] sm:$0xff]  ;;  %v2324_v33 = vld [vmem:[#allocation8 + $0x88] sm:$0xff] }
 0x1fd   : > { %v7649_v52 = vcombine.high %v2763_v44, %v2767_v45  ;;  %v7648_v62 = vcombine.low %v2763_v44, %v2767_v45  ;;  %v2328_v34 = vld [vmem:[#allocation8 + $0xa8] sm:$0xff] }
 0x1fe   : > { %v7210_v44 = vcombine.low %v2324_v33, %v2328_v34 }
 0x1ff   : > { %5524 = vmatpush2.bf16.msra.mxu0 %v7552_v53  ;;  %5559 = vmatpush1.bf16.msra.mxu1 %v7576_v55  ;;  %v666_v53 = vrot.slane %v8570_v41, %v665_v42  ;;  %v2755_v55 = vld [vmem:[#allocation8 + $0xe00] sm:$0xff] }
 0x200   : > { %5525 = vmatprep.subr.bf16.mxu0 %v7545_v56  ;;  %5560 = vmatprep.subr.bf16.mxu1 %v7697_v51  ;;  %v2759_v56 = vld [vmem:[#allocation8 + $0xe20] sm:$0xff] }
 0x201   : > { %v7640_v4 = vcombine.low %v2755_v55, %v2759_v56 }
 0x203   : > { %5526 = vmatpush2.bf16.msra.mxu0 %v7544_v63  ;;  %5561 = vmatpush2.bf16.msra.mxu1 %v7696_v59  ;;  %v7641_v63 = vcombine.high %v2755_v55, %v2759_v56  ;;  %v2428_v55 = vld [vmem:[#allocation8 + $0x3c8] sm:$0xff] }
 0x204   : > { %5527 = vmatprep.subr.bf16.mxu0 %v7537_v0  ;;  %5562 = vmatprep.subr.bf16.mxu1 %v7689_v1  ;;  %v2432_v56 = vld [vmem:[#allocation8 + $0x3e8] sm:$0xff] }
 0x207   : > { %5528 = vmatpush2.bf16.msra.mxu0 %v7536_v5  ;;  %5563 = vmatpush2.bf16.msra.mxu1 %v7688_v6  ;;  %v7379_v6 = vcombine.high %v8611_v46, %v8613_v47 }
 0x208   : > { %5529 = vmatprep.subr.bf16.mxu0 %v7529_v8  ;;  %5564 = vmatprep.subr.bf16.mxu1 %v7681_v10  ;;  %v2356_v10 = vld [vmem:[#allocation8 + $0x188] sm:$0xff] }
 0x20b   : > { %5530 = vmatpush2.bf16.msra.mxu0 %v7528_v15  ;;  %5565 = vmatpush2.bf16.msra.mxu1 %v7680_v17  ;;  %v7243_v17 = vcombine.high %v2356_v10, %v2360_v11 }
 0x20c   : > { %5531 = vmatprep.subr.bf16.mxu0 %v7521_v18  ;;  %5566 = vmatprep.subr.bf16.mxu1 %v7673_v21  ;;  %v2348_v18 = vld [vmem:[#allocation8 + $0x148] sm:$0xff]  ;;  %v7242_v21 = vcombine.low %v2356_v10, %v2360_v11 }
 0x20d   : > { %v7235_v22 = vcombine.high %v2348_v18, %v2352_v20  ;;  %v2388_v10 = vld [vmem:[#allocation8 + $0x288] sm:$0xff] }
 0x20e   : > { %v2392_v11 = vld [vmem:[#allocation8 + $0x2a8] sm:$0xff] }
 0x20f   : > { %5532 = vmatpush2.bf16.msra.mxu0 %v7520_v26  ;;  %5567 = vmatpush2.bf16.msra.mxu1 %v7672_v27  ;;  %v7234_v26 = vcombine.low %v2348_v18, %v2352_v20  ;;  %v7227_v27 = vcombine.high %v2340_v23, %v2344_v25  ;;  %v7275_v18 = vcombine.high %v2388_v10, %v2392_v11  ;;  %v673_v20 = vsub.s32 7, %v8567_v29 }
 0x210   : > { %5533 = vmatprep.subr.bf16.mxu0 %v7513_v28  ;;  %5568 = vmatprep.subr.bf16.mxu1 %v7665_v31  ;;  %v2332_v28 = vld [vmem:[#allocation8 + $0xc8] sm:$0xff]  ;;  %v7226_v31 = vcombine.low %v2340_v23, %v2344_v25  ;;  %v7274_v23 = vcombine.low %v2388_v10, %v2392_v11  ;;  %v8037_v25 = vld [vmem:[#allocation7] sm:$0xff] }
 0x211   : > { %v7219_v32 = vcombine.high %v2332_v28, %v2336_v30 }
 0x213   : > { %5534 = vmatpush2.bf16.msra.mxu0 %v7512_v36  ;;  %5569 = vmatpush2.bf16.msra.mxu1 %v7664_v38  ;;  %v7218_v36 = vcombine.low %v2332_v28, %v2336_v30  ;;  %v7211_v38 = vcombine.high %v2324_v33, %v2328_v34  ;;  %v674_v28 = vrot.slane %v8037_v25, %v673_v20  ;;  %v2372_v30 = vld [vmem:[#allocation8 + $0x208] sm:$0xff] }
 0x214   : > { %5585 = vmatprep.subr.bf16.mxu0 %v7251_v39  ;;  %5570 = vmatprep.subr.bf16.mxu1 %v7657_v40  ;;  %v2316_v39 = vld [vmem:[#allocation8 + $0x48] sm:$0xff] }
 0x215   : > { %v2320_v40 = vld [vmem:[#allocation8 + $0x68] sm:$0xff] }
 0x216   : > { %v2161_v60 = vpop.f32.mrf.mxu0  ;;  %v7203_v45 = vcombine.high %v2316_v39, %v2320_v40 }
 0x217   : > { %v2162_v51 = vadd.f32 %v2161_v60, %v662_v49  ;;  %5571 = vmatpush2.bf16.msra.mxu1 %v7656_v50  ;;  %v2308_v49 = vld [vmem:[#allocation8 + $0x8] sm:$0xff] }
 0x218   : > { %v2202_v61 = vpop.f32.mrf.mxu1  ;;  %v2163_v58 = vpop.f32.mrf.mxu0  ;;  %5572 = vmatprep.subr.bf16.mxu1 %v7649_v52  ;;  %v2312_v50 = vld [vmem:[#allocation8 + $0x28] sm:$0xff]  ;;  %v7202_v52 = vcombine.low %v2316_v39, %v2320_v40 }
 0x219   : > { %v2203_v59 = vadd.f32 %v2202_v61, %v2162_v51  ;;  %v2164_v0 = vadd.f32 %v2163_v58, %v666_v53  ;;  %v7195_v53 = vcombine.high %v2308_v49, %v2312_v50  ;;  %v7194_v60 = vcombine.low %v2308_v49, %v2312_v50  ;;  %v2420_v61 = vld [vmem:[#allocation8 + $0x388] sm:$0xff] }
 0x21a   : > { %v2204_v54 = vpop.f32.mrf.mxu1  ;;  %v2165_v1 = vpop.f32.mrf.mxu0  ;;  %v7315_v51 = vcombine.high %v2428_v55, %v2432_v56  ;;  %v7314_v58 = vcombine.low %v2428_v55, %v2432_v56  ;;  %v2620_v49 = vld [vmem:[#allocation8 + $0x9c8] sm:$0xff] }
 0x21b   : > { %v2205_v3 = vadd.f32 %v2204_v54, %v2164_v0  ;;  %5573 = vmatpush2.bf16.msra.mxu1 %v7648_v62  ;;  %v2295_v5 = vmax.f32 %v2203_v59, 0.0  ;;  %v2424_v62 = vld [vmem:[#allocation8 + $0x3a8] sm:$0xff] }
 0x21c   : > { %v2206_v19 = vpop.f32.mrf.mxu1  ;;  %v2166_v41 = vpop.f32.mrf.mxu0  ;;  %5574 = vmatprep.subr.bf16.mxu1 %v7641_v63  ;;  %v7307_v63 = vcombine.high %v2420_v61, %v2424_v62  ;;  %v2412_v59 = vld [vmem:[#allocation8 + $0x348] sm:$0xff]  ;;  %v7306_v54 = vcombine.low %v2420_v61, %v2424_v62 }
 0x21d   : > { %v2296_v8 = vmax.f32 %v2205_v3, 0.0  ;;  %v8633_v15 = vpack.c.bf16 %v2295_v5, %v2295_v5  ;;  %v2416_v0 = vld [vmem:[#allocation8 + $0x368] sm:$0xff] }
 0x21e   : > { %v2207_v9 = vpop.f32.mrf.mxu1  ;;  %v7299_v1 = vcombine.high %v2412_v59, %v2416_v0  ;;  %v2404_v3 = vld [vmem:[#allocation8 + $0x308] sm:$0xff] }
 0x21f   : > { %v8631_v12 = vpack.c.bf16 %v2296_v8, %v2296_v8  ;;  %5575 = vmatpush2.bf16.msra.mxu1 %v7640_v4  ;;  %v2408_v19 = vld [vmem:[#allocation8 + $0x328] sm:$0xff]  ;;  %v7298_v4 = vcombine.low %v2412_v59, %v2416_v0 }
 0x220   : > { %5626 = vmatprep.subr.bf16.mxu1 %v7379_v6  ;;  %v7291_v5 = vcombine.high %v2404_v3, %v2408_v19  ;;  %v2396_v41 = vld [vmem:[#allocation8 + $0x2c8] sm:$0xff]  ;;  %v7290_v8 = vcombine.low %v2404_v3, %v2408_v19 }
 0x221   : > { %5535 = vmatprep.mubr.bf16.mxu0 %v8631_v12  ;;  %v2400_v6 = vld [vmem:[#allocation8 + $0x2e8] sm:$0xff] }
 0x222   : > { %5536 = vmatmul.mubr.bf16.vlgmr.msra.gmra.mxu0 %v8633_v15  ;;  %v7283_v9 = vcombine.high %v2396_v41, %v2400_v6  ;;  %v2624_v50 = vld [vmem:[#allocation8 + $0x9e8] sm:$0xff] }
 0x223   : > { %5586 = vmatpush1.bf16.msra.mxu0 %v7250_v13  ;;  %5617 = vmatprep.mubr.bf16.mxu0 %v8581_v14  ;;  %v7282_v13 = vcombine.low %v2396_v41, %v2400_v6  ;;  %v7507_v61 = vcombine.high %v2620_v49, %v2624_v50  ;;  %v2488_v59 = vld [vmem:[#allocation8 + $0x5a8] sm:$0xff]  ;;  %v7506_v3 = vcombine.low %v2620_v49, %v2624_v50 }
 0x224   : > { %5587 = vmatprep.subr.bf16.mxu0 %v7243_v17  ;;  %v669_v17 = vsub.s32 6, %v8567_v29  ;;  %v2612_v0 = vld [vmem:[#allocation8 + $0x988] sm:$0xff] }
 0x225   : > { %v2480_v6 = vld [vmem:[#allocation8 + $0x568] sm:$0xff] }
 0x227   : > { %5588 = vmatpush1.bf16.msra.mxu0 %v7242_v21  ;;  %v2380_v21 = vld [vmem:[#allocation8 + $0x248] sm:$0xff] }
 0x228   : > { %5589 = vmatprep.subr.bf16.mxu0 %v7235_v22  ;;  %v2384_v22 = vld [vmem:[#allocation8 + $0x268] sm:$0xff] }
 0x22b   : > { %5590 = vmatpush1.bf16.msra.mxu0 %v7234_v26  ;;  %v670_v26 = vrot.slane %v8037_v25, %v669_v17  ;;  %v2600_v25 = vld [vmem:[#allocation8 + $0x928] sm:$0xff] }
 0x22c   : > { %5591 = vmatprep.subr.bf16.mxu0 %v7227_v27  ;;  %v7267_v27 = vcombine.high %v2380_v21, %v2384_v22 }
 0x22f   : > { %5592 = vmatpush1.bf16.msra.mxu0 %v7226_v31  ;;  %v2376_v31 = vld [vmem:[#allocation8 + $0x228] sm:$0xff] }
 0x230   : > { %5593 = vmatprep.subr.bf16.mxu0 %v7219_v32  ;;  %v7259_v39 = vcombine.high %v2372_v30, %v2376_v31  ;;  %v7258_v56 = vcombine.low %v2372_v30, %v2376_v31  ;;  %v2588_v30 = vld [vmem:[#allocation8 + $0x8c8] sm:$0xff] }
 0x231   : > { %v2592_v31 = vld [vmem:[#allocation8 + $0x8e8] sm:$0xff] }
 0x232   : > { %v7474_v49 = vcombine.low %v2588_v30, %v2592_v31 }
 0x233   : > { %5594 = vmatpush1.bf16.msra.mxu0 %v7218_v36  ;;  %v7266_v36 = vcombine.low %v2380_v21, %v2384_v22  ;;  %v2468_v21 = vld [vmem:[#allocation8 + $0x508] sm:$0xff] }
 0x234   : > { %5595 = vmatprep.subr.bf16.mxu0 %v7211_v38  ;;  %v2472_v22 = vld [vmem:[#allocation8 + $0x528] sm:$0xff] }
 0x235   : > { %v7355_v47 = vcombine.high %v2468_v21, %v2472_v22 }
 0x237   : > { %5596 = vmatpush1.bf16.msra.mxu0 %v7210_v44 }
 0x238   : > { %5597 = vmatprep.subr.bf16.mxu0 %v7203_v45 }
 0x23b   : > { %5598 = vmatpush1.bf16.msra.mxu0 %v7202_v52 }
 0x23c   : > { %5599 = vmatprep.subr.bf16.mxu0 %v7195_v53 }
 0x23f   : > { %5600 = vmatpush1.bf16.msra.mxu0 %v7194_v60 }
 0x240   : > { %5601 = vmatprep.subr.bf16.mxu0 %v7315_v51 }
 0x243   : > { %5602 = vmatpush2.bf16.msra.mxu0 %v7314_v58 }
 0x244   : > { %5603 = vmatprep.subr.bf16.mxu0 %v7307_v63  ;;  %v2484_v63 = vld [vmem:[#allocation8 + $0x588] sm:$0xff] }
 0x245   : > { %v7370_v10 = vcombine.low %v2484_v63, %v2488_v59 }
 0x247   : > { %5604 = vmatpush2.bf16.msra.mxu0 %v7306_v54  ;;  %v2616_v54 = vld [vmem:[#allocation8 + $0x9a8] sm:$0xff] }
 0x248   : > { %5605 = vmatprep.subr.bf16.mxu0 %v7299_v1  ;;  %v7499_v41 = vcombine.high %v2612_v0, %v2616_v54  ;;  %v7498_v11 = vcombine.low %v2612_v0, %v2616_v54  ;;  %v2564_v0 = vld [vmem:[#allocation8 + $0x808] sm:$0xff] }
 0x249   : > { %v2568_v54 = vld [vmem:[#allocation8 + $0x828] sm:$0xff] }
 0x24b   : > { %5606 = vmatpush2.bf16.msra.mxu0 %v7298_v4  ;;  %v2476_v4 = vld [vmem:[#allocation8 + $0x548] sm:$0xff] }
 0x24c   : > { %5607 = vmatprep.subr.bf16.mxu0 %v7291_v5  ;;  %v7371_v5 = vcombine.high %v2484_v63, %v2488_v59  ;;  %v2436_v63 = vld [vmem:[#allocation8 + $0x408] sm:$0xff] }
 0x24d   : > { %v2440_v59 = vld [vmem:[#allocation8 + $0x428] sm:$0xff] }
 0x24f   : > { %5608 = vmatpush2.bf16.msra.mxu0 %v7290_v8  ;;  %v2604_v8 = vld [vmem:[#allocation8 + $0x948] sm:$0xff] }
 0x250   : > { %5609 = vmatprep.subr.bf16.mxu0 %v7283_v9  ;;  %v2608_v9 = vld [vmem:[#allocation8 + $0x968] sm:$0xff] }
 0x251   : > { %v7490_v46 = vcombine.low %v2604_v8, %v2608_v9 }
 0x253   : > { %5610 = vmatpush2.bf16.msra.mxu0 %v7282_v13  ;;  %v7363_v13 = vcombine.high %v2476_v4, %v2480_v6 }
 0x254   : > { %5611 = vmatprep.subr.bf16.mxu0 %v7275_v18  ;;  %v7491_v18 = vcombine.high %v2604_v8, %v2608_v9  ;;  %v2560_v8 = vld [vmem:[#allocation8 + $0x7e8] sm:$0xff] }
 0x255   : > { %v2684_v9 = vld [vmem:[#allocation8 + $0xbc8] sm:$0xff] }
 0x256   : > { %v2243_v32 = vpop.f32.mrf.mxu0 }
 0x257   : > { %v2244_v33 = vadd.f32 %v2243_v32, %v670_v26  ;;  %5612 = vmatpush2.bf16.msra.mxu0 %v7274_v23  ;;  %v2596_v23 = vld [vmem:[#allocation8 + $0x908] sm:$0xff]  ;;  %v7362_v26 = vcombine.low %v2476_v4, %v2480_v6  ;;  %v7354_v32 = vcombine.low %v2468_v21, %v2472_v22 }
 0x258   : > { %v2284_v34 = vpop.f32.mrf.mxu1  ;;  %v2245_v38 = vpop.f32.mrf.mxu0  ;;  %5613 = vmatprep.subr.bf16.mxu0 %v7267_v27  ;;  %v2460_v27 = vld [vmem:[#allocation8 + $0x4c8] sm:$0xff] }
 0x259   : > { %v2285_v40 = vadd.f32 %v2284_v34, %v2244_v33  ;;  %v2246_v44 = vadd.f32 %v2245_v38, %v674_v28  ;;  %v2464_v28 = vld [vmem:[#allocation8 + $0x4e8] sm:$0xff]  ;;  %v7482_v33 = vcombine.low %v2596_v23, %v2600_v25 }
 0x25a   : > { %v2286_v45 = vpop.f32.mrf.mxu1  ;;  %v2247_v52 = vpop.f32.mrf.mxu0  ;;  %v7347_v34 = vcombine.high %v2460_v27, %v2464_v28  ;;  %v2452_v38 = vld [vmem:[#allocation8 + $0x488] sm:$0xff] }
 0x25b   : > { %v2287_v53 = vadd.f32 %v2286_v45, %v2246_v44  ;;  %5614 = vmatpush2.bf16.msra.mxu0 %v7266_v36  ;;  %v2297_v60 = vmax.f32 %v2285_v40, 0.0  ;;  %v7475_v36 = vcombine.high %v2588_v30, %v2592_v31  ;;  %v2580_v40 = vld [vmem:[#allocation8 + $0x888] sm:$0xff]  ;;  %v7346_v45 = vcombine.low %v2460_v27, %v2464_v28 }
 0x25c   : > { %v2288_v55 = vpop.f32.mrf.mxu1  ;;  %v2248_v51 = vpop.f32.mrf.mxu0  ;;  %5615 = vmatprep.subr.bf16.mxu0 %v7259_v39  ;;  %v2456_v39 = vld [vmem:[#allocation8 + $0x4a8] sm:$0xff] }
 0x25d   : > { %v2298_v62 = vmax.f32 %v2287_v53, 0.0  ;;  %v8646_v19 = vpack.c.bf16 %v2297_v60, %v2297_v60  ;;  %v2584_v44 = vld [vmem:[#allocation8 + $0x8a8] sm:$0xff]  ;;  %v7339_v50 = vcombine.high %v2452_v38, %v2456_v39  ;;  %v7338_v51 = vcombine.low %v2452_v38, %v2456_v39 }
 0x25e   : > { %v2289_v58 = vpop.f32.mrf.mxu1  ;;  %v7467_v52 = vcombine.high %v2580_v40, %v2584_v44  ;;  %v2444_v53 = vld [vmem:[#allocation8 + $0x448] sm:$0xff] }
 0x25f   : > { %v8644_v1 = vpack.c.bf16 %v2298_v62, %v2298_v62  ;;  %5616 = vmatpush2.bf16.msra.mxu0 %v7258_v56  ;;  %v2448_v55 = vld [vmem:[#allocation8 + $0x468] sm:$0xff] }
 0x260   : > { %5667 = vmatprep.subr.bf16.mxu0 %v7507_v61  ;;  %v2572_v56 = vld [vmem:[#allocation8 + $0x848] sm:$0xff]  ;;  %v7466_v61 = vcombine.low %v2580_v40, %v2584_v44  ;;  %v7331_v62 = vcombine.high %v2444_v53, %v2448_v55 }
 0x261   : > { %5576 = vmatprep.mubr.bf16.mxu1 %v8644_v1  ;;  %v2576_v60 = vld [vmem:[#allocation8 + $0x868] sm:$0xff] }
 0x262   : > { %5618 = vmatmul.mubr.bf16.vlgmr.msra.gmra.mxu0 %v8601_v7  ;;  %5577 = vmatmul.mubr.bf16.vlgmr.msra.gmra.mxu1 %v8646_v19  ;;  %v7459_v58 = vcombine.high %v2572_v56, %v2576_v60  ;;  %v7458_v4 = vcombine.low %v2572_v56, %v2576_v60  ;;  %v2556_v6 = vld [vmem:[#allocation8 + $0x7c8] sm:$0xff] }
 0x263   : > { %5627 = vmatpush1.bf16.msra.mxu1 %v7378_v57  ;;  %5668 = vmatpush1.bf16.msra.mxu0 %v7506_v3  ;;  %v7483_v57 = vcombine.high %v2596_v23, %v2600_v25  ;;  %v7330_v3 = vcombine.low %v2444_v53, %v2448_v55  ;;  %v2548_v22 = vld [vmem:[#allocation8 + $0x788] sm:$0xff] }
 0x264   : > { %5699 = vmatprep.mubr.bf16.mxu0 %v8631_v12  ;;  %5658 = vmatprep.mubr.bf16.mxu1 %v8607_v43  ;;  %v2552_v23 = vld [vmem:[#allocation8 + $0x7a8] sm:$0xff] }
 0x265   : > { %5628 = vmatprep.subr.bf16.mxu1 %v7371_v5  ;;  %5669 = vmatprep.subr.bf16.mxu0 %v7499_v41  ;;  %v7323_v5 = vcombine.high %v2436_v63, %v2440_v59  ;;  %v7451_v41 = vcombine.high %v2564_v0, %v2568_v54  ;;  %v2676_v25 = vld [vmem:[#allocation8 + $0xb88] sm:$0xff] }
 0x266   : > { %v2540_v28 = vld [vmem:[#allocation8 + $0x748] sm:$0xff] }
 0x267   : > { %5629 = vmatpush1.bf16.msra.mxu1 %v7370_v10  ;;  %5670 = vmatpush1.bf16.msra.mxu0 %v7498_v11  ;;  %v2688_v10 = vld [vmem:[#allocation8 + $0xbe8] sm:$0xff]  ;;  %v7322_v11 = vcombine.low %v2436_v63, %v2440_v59 }
 0x268   : > { %5630 = vmatprep.subr.bf16.mxu1 %v7363_v13  ;;  %5671 = vmatprep.subr.bf16.mxu0 %v7491_v18  ;;  %v7450_v13 = vcombine.low %v2564_v0, %v2568_v54  ;;  %v7443_v18 = vcombine.high %v2556_v6, %v2560_v8  ;;  %v7571_v21 = vcombine.high %v2684_v9, %v2688_v10  ;;  %v2544_v30 = vld [vmem:[#allocation8 + $0x768] sm:$0xff] }
 0x269   : > { %v2668_v31 = vld [vmem:[#allocation8 + $0xb48] sm:$0xff] }
 0x26a   : > { %v2532_v39 = vld [vmem:[#allocation8 + $0x708] sm:$0xff] }
 0x26b   : > { %5631 = vmatpush1.bf16.msra.mxu1 %v7362_v26  ;;  %5672 = vmatpush1.bf16.msra.mxu0 %v7490_v46  ;;  %v2680_v26 = vld [vmem:[#allocation8 + $0xba8] sm:$0xff]  ;;  %v7442_v46 = vcombine.low %v2556_v6, %v2560_v8 }
 0x26c   : > { %5632 = vmatprep.subr.bf16.mxu1 %v7355_v47  ;;  %5673 = vmatprep.subr.bf16.mxu0 %v7483_v57  ;;  %v7570_v47 = vcombine.low %v2684_v9, %v2688_v10  ;;  %v7435_v57 = vcombine.high %v2548_v22, %v2552_v23  ;;  %v7563_v27 = vcombine.high %v2676_v25, %v2680_v26  ;;  %v2536_v40 = vld [vmem:[#allocation8 + $0x728] sm:$0xff] }
 0x26d   : > { %v2660_v44 = vld [vmem:[#allocation8 + $0xb08] sm:$0xff] }
 0x26e   : > { %v2524_v55 = vld [vmem:[#allocation8 + $0x6c8] sm:$0xff] }
 0x26f   : > { %5633 = vmatpush1.bf16.msra.mxu1 %v7354_v32  ;;  %5674 = vmatpush1.bf16.msra.mxu0 %v7482_v33  ;;  %v2672_v32 = vld [vmem:[#allocation8 + $0xb68] sm:$0xff]  ;;  %v7434_v33 = vcombine.low %v2548_v22, %v2552_v23 }
 0x270   : > { %5634 = vmatprep.subr.bf16.mxu1 %v7347_v34  ;;  %5675 = vmatprep.subr.bf16.mxu0 %v7475_v36  ;;  %v7562_v34 = vcombine.low %v2676_v25, %v2680_v26  ;;  %v7427_v36 = vcombine.high %v2540_v28, %v2544_v30  ;;  %v7555_v38 = vcombine.high %v2668_v31, %v2672_v32  ;;  %v2528_v56 = vld [vmem:[#allocation8 + $0x6e8] sm:$0xff] }
 0x271   : > { %v2652_v60 = vld [vmem:[#allocation8 + $0xac8] sm:$0xff] }
 0x272   : > { %v2516_v59 = vld [vmem:[#allocation8 + $0x688] sm:$0xff] }
 0x273   : > { %5635 = vmatpush1.bf16.msra.mxu1 %v7346_v45  ;;  %5676 = vmatpush1.bf16.msra.mxu0 %v7474_v49  ;;  %v2664_v45 = vld [vmem:[#allocation8 + $0xb28] sm:$0xff]  ;;  %v7426_v49 = vcombine.low %v2540_v28, %v2544_v30 }
 0x274   : > { %5636 = vmatprep.subr.bf16.mxu1 %v7339_v50  ;;  %5677 = vmatprep.subr.bf16.mxu0 %v7467_v52  ;;  %v7554_v50 = vcombine.low %v2668_v31, %v2672_v32  ;;  %v7419_v52 = vcombine.high %v2532_v39, %v2536_v40  ;;  %v7547_v53 = vcombine.high %v2660_v44, %v2664_v45  ;;  %v2520_v0 = vld [vmem:[#allocation8 + $0x6a8] sm:$0xff] }
 0x275   : > { %v2644_v54 = vld [vmem:[#allocation8 + $0xa88] sm:$0xff] }
 0x276   : > { %v2508_v8 = vld [vmem:[#allocation8 + $0x648] sm:$0xff] }
 0x277   : > { %5637 = vmatpush1.bf16.msra.mxu1 %v7338_v51  ;;  %5678 = vmatpush1.bf16.msra.mxu0 %v7466_v61  ;;  %v2656_v51 = vld [vmem:[#allocation8 + $0xae8] sm:$0xff]  ;;  %v7418_v61 = vcombine.low %v2532_v39, %v2536_v40 }
 0x278   : > { %5638 = vmatprep.subr.bf16.mxu1 %v7331_v62  ;;  %5679 = vmatprep.subr.bf16.mxu0 %v7459_v58  ;;  %v7546_v62 = vcombine.low %v2660_v44, %v2664_v45  ;;  %v7411_v58 = vcombine.high %v2524_v55, %v2528_v56  ;;  %v7539_v63 = vcombine.high %v2652_v60, %v2656_v51  ;;  %v2512_v9 = vld [vmem:[#allocation8 + $0x668] sm:$0xff] }
 0x279   : > { %v2636_v10 = vld [vmem:[#allocation8 + $0xa48] sm:$0xff] }
 0x27a   : > { %v2500_v23 = vld [vmem:[#allocation8 + $0x608] sm:$0xff] }
 0x27b   : > { %5639 = vmatpush1.bf16.msra.mxu1 %v7330_v3  ;;  %5680 = vmatpush1.bf16.msra.mxu0 %v7458_v4  ;;  %v2648_v3 = vld [vmem:[#allocation8 + $0xaa8] sm:$0xff]  ;;  %v7410_v4 = vcombine.low %v2524_v55, %v2528_v56  ;;  %v2357_v56 = vld [vmem:[#allocation8 + $0x190] sm:$0xff] }
 0x27c   : > { %5640 = vmatprep.subr.bf16.mxu1 %v7323_v5  ;;  %5681 = vmatprep.subr.bf16.mxu0 %v7451_v41  ;;  %v7538_v5 = vcombine.low %v2652_v60, %v2656_v51  ;;  %v7403_v41 = vcombine.high %v2516_v59, %v2520_v0  ;;  %v7531_v6 = vcombine.high %v2644_v54, %v2648_v3  ;;  %v2504_v25 = vld [vmem:[#allocation8 + $0x628] sm:$0xff]  ;;  %v2361_v60 = vld [vmem:[#allocation8 + $0x1b0] sm:$0xff] }
 0x27d   : > { %v2628_v26 = vld [vmem:[#allocation8 + $0xa08] sm:$0xff]  ;;  %v7387_v30 = vcombine.high %v2500_v23, %v2504_v25  ;;  %v7386_v40 = vcombine.low %v2500_v23, %v2504_v25  ;;  %v2345_v23 = vld [vmem:[#allocation8 + $0x130] sm:$0xff] }
 0x27e   : > { %v2748_v32 = vld [vmem:[#allocation8 + $0xdc8] sm:$0xff] }
 0x27f   : > { %5641 = vmatpush1.bf16.msra.mxu1 %v7322_v11  ;;  %5682 = vmatpush1.bf16.msra.mxu0 %v7450_v13  ;;  %v2640_v11 = vld [vmem:[#allocation8 + $0xa68] sm:$0xff]  ;;  %v7402_v13 = vcombine.low %v2516_v59, %v2520_v0  ;;  %v7245_v59 = vcombine.high %v2357_v56, %v2361_v60 }
 0x280   : > { %5642 = vmatprep.subr.bf16.mxu1 %v7443_v18  ;;  %5683 = vmatprep.subr.bf16.mxu0 %v7571_v21  ;;  %v7530_v18 = vcombine.low %v2644_v54, %v2648_v3  ;;  %v7395_v21 = vcombine.high %v2508_v8, %v2512_v9  ;;  %v7523_v22 = vcombine.high %v2636_v10, %v2640_v11  ;;  %v2744_v55 = vld [vmem:[#allocation8 + $0xda8] sm:$0xff]  ;;  %v2349_v3 = vld [vmem:[#allocation8 + $0x150] sm:$0xff] }
 0x281   : > { %v2732_v0 = vld [vmem:[#allocation8 + $0xd48] sm:$0xff] }
 0x282   : > { %v2736_v54 = vld [vmem:[#allocation8 + $0xd68] sm:$0xff] }
 0x283   : > { %5643 = vmatpush2.bf16.msra.mxu1 %v7442_v46  ;;  %5684 = vmatpush2.bf16.msra.mxu0 %v7570_v47  ;;  %v2632_v46 = vld [vmem:[#allocation8 + $0xa28] sm:$0xff]  ;;  %v7618_v25 = vcombine.low %v2732_v0, %v2736_v54 }
 0x284   : > { %5644 = vmatprep.subr.bf16.mxu1 %v7435_v57  ;;  %5685 = vmatprep.subr.bf16.mxu0 %v7563_v27  ;;  %v7394_v57 = vcombine.low %v2508_v8, %v2512_v9  ;;  %v7522_v27 = vcombine.low %v2636_v10, %v2640_v11  ;;  %v7515_v31 = vcombine.high %v2628_v26, %v2632_v46 }
 0x285   : > { %v7514_v44 = vcombine.low %v2628_v26, %v2632_v46  ;;  %v7244_v8 = vcombine.low %v2357_v56, %v2361_v60  ;;  %v7619_v9 = vcombine.high %v2732_v0, %v2736_v54  ;;  %v2317_v56 = vld [vmem:[#allocation8 + $0x50] sm:$0xff] }
 0x286   : > { %v2321_v60 = vld [vmem:[#allocation8 + $0x70] sm:$0xff] }
 0x287   : > { %5645 = vmatpush2.bf16.msra.mxu1 %v7434_v33  ;;  %5686 = vmatpush2.bf16.msra.mxu0 %v7562_v34  ;;  %v2752_v33 = vld [vmem:[#allocation8 + $0xde8] sm:$0xff]  ;;  %v2365_v34 = vld [vmem:[#allocation8 + $0x1d0] sm:$0xff] }
 0x288   : > { %5646 = vmatprep.subr.bf16.mxu1 %v7427_v36  ;;  %5687 = vmatprep.subr.bf16.mxu0 %v7555_v38  ;;  %v2369_v36 = vld [vmem:[#allocation8 + $0x1f0] sm:$0xff]  ;;  %v2819_v38 = vld [vmem:[#allocation10] sm:$0xff] }
 0x289   : > { %v2828_v51 = vrot.slane %v2819_v38, %v649_v37  ;;  %v2309_v0 = vld [vmem:[#allocation8 + $0x10] sm:$0xff] }
 0x28a   : > { %v2313_v54 = vld [vmem:[#allocation8 + $0x30] sm:$0xff] }
 0x28b   : > { %5647 = vmatpush2.bf16.msra.mxu1 %v7426_v49  ;;  %5688 = vmatpush2.bf16.msra.mxu0 %v7554_v50  ;;  %v7635_v49 = vcombine.high %v2748_v32, %v2752_v33  ;;  %v7253_v50 = vcombine.high %v2365_v34, %v2369_v36 }
 0x28c   : > { %5648 = vmatprep.subr.bf16.mxu1 %v7419_v52  ;;  %5689 = vmatprep.subr.bf16.mxu0 %v7547_v53  ;;  %v2824_v52 = vrot.slane %v2819_v38, %v645_v24  ;;  %v2740_v53 = vld [vmem:[#allocation8 + $0xd88] sm:$0xff] }
 0x28d   : > { %v2708_v38 = vld [vmem:[#allocation8 + $0xc88] sm:$0xff] }
 0x28f   : > { %5649 = vmatpush2.bf16.msra.mxu1 %v7418_v61  ;;  %5690 = vmatpush2.bf16.msra.mxu0 %v7546_v62  ;;  %v7634_v61 = vcombine.low %v2748_v32, %v2752_v33  ;;  %v7252_v62 = vcombine.low %v2365_v34, %v2369_v36 }
 0x290   : > { %5650 = vmatprep.subr.bf16.mxu1 %v7411_v58  ;;  %5691 = vmatprep.subr.bf16.mxu0 %v7539_v63  ;;  %v7627_v63 = vcombine.high %v2740_v53, %v2744_v55 }
 0x293   : > { %5651 = vmatpush2.bf16.msra.mxu1 %v7410_v4  ;;  %5692 = vmatpush2.bf16.msra.mxu0 %v7538_v5  ;;  %v2353_v4 = vld [vmem:[#allocation8 + $0x170] sm:$0xff] }
 0x294   : > { %5652 = vmatprep.subr.bf16.mxu1 %v7403_v41  ;;  %5693 = vmatprep.subr.bf16.mxu0 %v7531_v6  ;;  %v7626_v41 = vcombine.low %v2740_v53, %v2744_v55  ;;  %v7237_v11 = vcombine.high %v2349_v3, %v2353_v4  ;;  %v7236_v46 = vcombine.low %v2349_v3, %v2353_v4  ;;  %v2700_v53 = vld [vmem:[#allocation8 + $0xc48] sm:$0xff] }
 0x295   : > { %v2704_v55 = vld [vmem:[#allocation8 + $0xc68] sm:$0xff]  ;;  %v7204_v3 = vcombine.low %v2317_v56, %v2321_v60 }
 0x296   : > { %v5455_v47 = vpop.f32.mrf.mxu0 }
 0x297   : > { %5653 = vmatpush2.bf16.msra.mxu1 %v7402_v13  ;;  %5694 = vmatpush2.bf16.msra.mxu0 %v7530_v18  ;;  %v5456_v58 = vadd.f32 %v5455_v47, %v2824_v52  ;;  %v2724_v13 = vld [vmem:[#allocation8 + $0xd08] sm:$0xff] }
 0x298   : > { %v5457_v28 = vpop.f32.mrf.mxu0  ;;  %5654 = vmatprep.subr.bf16.mxu1 %v7395_v21  ;;  %5695 = vmatprep.subr.bf16.mxu0 %v7523_v22  ;;  %v2728_v18 = vld [vmem:[#allocation8 + $0xd28] sm:$0xff]  ;;  %v2341_v22 = vld [vmem:[#allocation8 + $0x110] sm:$0xff] }
 0x299   : > { %v5458_v5 = vadd.f32 %v5457_v28, %v2828_v51  ;;  %v7611_v47 = vcombine.high %v2724_v13, %v2728_v18  ;;  %v2720_v28 = vld [vmem:[#allocation8 + $0xce8] sm:$0xff]  ;;  %v7610_v32 = vcombine.low %v2724_v13, %v2728_v18  ;;  %v7228_v33 = vcombine.low %v2341_v22, %v2345_v23 }
 0x29a   : > { %v5459_v39 = vpop.f32.mrf.mxu0  ;;  %v7196_v13 = vcombine.low %v2309_v0, %v2313_v54 }
 0x29b   : > { %5655 = vmatpush2.bf16.msra.mxu1 %v7394_v57  ;;  %5696 = vmatpush2.bf16.msra.mxu0 %v7522_v27  ;;  %v7229_v57 = vcombine.high %v2341_v22, %v2345_v23  ;;  %v2716_v27 = vld [vmem:[#allocation8 + $0xcc8] sm:$0xff] }
 0x29c   : > { %v5460_v45 = vpop.f32.mrf.mxu0  ;;  %5656 = vmatprep.subr.bf16.mxu1 %v7387_v30  ;;  %5697 = vmatprep.subr.bf16.mxu0 %v7515_v31  ;;  %v2333_v30 = vld [vmem:[#allocation8 + $0xd0] sm:$0xff]  ;;  %v7603_v34 = vcombine.high %v2716_v27, %v2720_v28  ;;  %v2712_v39 = vld [vmem:[#allocation8 + $0xca8] sm:$0xff] }
 0x29d   : > { %v2337_v31 = vld [vmem:[#allocation8 + $0xf0] sm:$0xff]  ;;  %v7602_v45 = vcombine.low %v2716_v27, %v2720_v28  ;;  %v7594_v51 = vcombine.low %v2708_v38, %v2712_v39  ;;  %v2804_v22 = vld [vmem:[#allocation8 + $0xf88] sm:$0xff] }
 0x29e   : > { %v7221_v36 = vcombine.high %v2333_v30, %v2337_v31  ;;  %v2808_v23 = vld [vmem:[#allocation8 + $0xfa8] sm:$0xff] }
 0x29f   : > { %5657 = vmatpush2.bf16.msra.mxu1 %v7386_v40  ;;  %5698 = vmatpush2.bf16.msra.mxu0 %v7514_v44  ;;  %v2325_v40 = vld [vmem:[#allocation8 + $0x90] sm:$0xff]  ;;  %v2796_v28 = vld [vmem:[#allocation8 + $0xf48] sm:$0xff] }
 0x2a0   : > { %5708 = vmatprep.subr.bf16.mxu1 %v7635_v49  ;;  %5749 = vmatprep.subr.bf16.mxu0 %v7253_v50  ;;  %v2329_v44 = vld [vmem:[#allocation8 + $0xb0] sm:$0xff]  ;;  %v7220_v49 = vcombine.low %v2333_v30, %v2337_v31  ;;  %v7595_v50 = vcombine.high %v2708_v38, %v2712_v39  ;;  %v2800_v30 = vld [vmem:[#allocation8 + $0xf68] sm:$0xff] }
 0x2a1   : > { %v7213_v52 = vcombine.high %v2325_v40, %v2329_v44  ;;  %v2413_v31 = vld [vmem:[#allocation8 + $0x350] sm:$0xff]  ;;  %v2788_v39 = vld [vmem:[#allocation8 + $0xf08] sm:$0xff] }
 0x2a2   : > { %5659 = vmatmul.mubr.bf16.vlgmr.msra.gmra.mxu1 %v8615_v48  ;;  %5700 = vmatmul.mubr.bf16.vlgmr.msra.gmra.mxu0 %v8633_v15  ;;  %v5496_v24 = vpop.f32.mrf.mxu1 }
 0x2a3   : > { %v8662_v37 = vadd.f32 %v5496_v24, %v5456_v58  ;;  %5709 = vmatpush1.bf16.msra.mxu1 %v7634_v61  ;;  %5740 = vmatprep.mubr.bf16.mxu1 %v8644_v1  ;;  %v7212_v61 = vcombine.low %v2325_v40, %v2329_v44  ;;  %v7205_v58 = vcombine.high %v2317_v56, %v2321_v60  ;;  %v2792_v40 = vld [vmem:[#allocation8 + $0xf28] sm:$0xff]  ;;  %v2405_v44 = vld [vmem:[#allocation8 + $0x310] sm:$0xff] }
 0x2a4   : > { %5750 = vmatpush1.bf16.msra.mxu0 %v7252_v62  ;;  %5781 = vmatprep.mubr.bf16.mxu0 %v8581_v14  ;;  %v5498_v6 = vpop.f32.mrf.mxu1  ;;  %v7587_v62 = vcombine.high %v2700_v53, %v2704_v55  ;;  %v7586_v24 = vcombine.low %v2700_v53, %v2704_v55  ;;  %v2780_v55 = vld [vmem:[#allocation8 + $0xec8] sm:$0xff]  ;;  %v2397_v60 = vld [vmem:[#allocation8 + $0x2d0] sm:$0xff] }
 0x2a5   : > { %v8666_v10 = vadd.f32 %v5498_v6, %v5458_v5  ;;  %5710 = vmatprep.subr.bf16.mxu1 %v7627_v63  ;;  %5751 = vmatprep.subr.bf16.mxu0 %v7245_v59  ;;  %v2692_v63 = vld [vmem:[#allocation8 + $0xc08] sm:$0xff]  ;;  %v7197_v5 = vcombine.high %v2309_v0, %v2313_v54  ;;  %v2389_v54 = vld [vmem:[#allocation8 + $0x290] sm:$0xff] }
 0x2a6   : > { %v5500_v21 = vpop.f32.mrf.mxu1  ;;  %v2696_v59 = vld [vmem:[#allocation8 + $0xc28] sm:$0xff] }
 0x2a7   : > { %5711 = vmatpush1.bf16.msra.mxu1 %v7626_v41  ;;  %v7579_v4 = vcombine.high %v2692_v63, %v2696_v59  ;;  %v2812_v41 = vld [vmem:[#allocation8 + $0xfc8] sm:$0xff] }
 0x2a8   : > { %5752 = vmatpush1.bf16.msra.mxu0 %v7244_v8  ;;  %v5501_v26 = vpop.f32.mrf.mxu1  ;;  %5712 = vmatprep.subr.bf16.mxu1 %v7619_v9  ;;  %v2816_v6 = vld [vmem:[#allocation8 + $0xfe8] sm:$0xff]  ;;  %v2429_v8 = vld [vmem:[#allocation8 + $0x3d0] sm:$0xff] }
 0x2a9   : > { %5753 = vmatprep.subr.bf16.mxu0 %v7237_v11  ;;  %v2433_v9 = vld [vmem:[#allocation8 + $0x3f0] sm:$0xff]  ;;  %v7578_v11 = vcombine.low %v2692_v63, %v2696_v59  ;;  %v7699_v18 = vcombine.high %v2812_v41, %v2816_v6  ;;  %v2784_v56 = vld [vmem:[#allocation8 + $0xee8] sm:$0xff] }
 0x2aa   : > { %v7317_v21 = vcombine.high %v2429_v8, %v2433_v9  ;;  %v2425_v26 = vld [vmem:[#allocation8 + $0x3b0] sm:$0xff]  ;;  %v2772_v59 = vld [vmem:[#allocation8 + $0xe88] sm:$0xff] }
 0x2ab   : > { %5713 = vmatpush1.bf16.msra.mxu1 %v7618_v25  ;;  %v2421_v25 = vld [vmem:[#allocation8 + $0x390] sm:$0xff]  ;;  %v2776_v0 = vld [vmem:[#allocation8 + $0xea8] sm:$0xff] }
 0x2ac   : > { %5754 = vmatpush1.bf16.msra.mxu0 %v7236_v46  ;;  %5714 = vmatprep.subr.bf16.mxu1 %v7611_v47  ;;  %v7698_v46 = vcombine.low %v2812_v41, %v2816_v6  ;;  %v7316_v47 = vcombine.low %v2429_v8, %v2433_v9  ;;  %v7309_v27 = vcombine.high %v2421_v25, %v2425_v26  ;;  %v2764_v6 = vld [vmem:[#allocation8 + $0xe48] sm:$0xff]  ;;  %v2381_v9 = vld [vmem:[#allocation8 + $0x250] sm:$0xff] }
 0x2ad   : > { %5755 = vmatprep.subr.bf16.mxu0 %v7229_v57  ;;  %v7691_v57 = vcombine.high %v2804_v22, %v2808_v23  ;;  %v2768_v8 = vld [vmem:[#allocation8 + $0xe68] sm:$0xff] }
 0x2af   : > { %5715 = vmatpush1.bf16.msra.mxu1 %v7610_v32  ;;  %v2417_v32 = vld [vmem:[#allocation8 + $0x370] sm:$0xff] }
 0x2b0   : > { %5756 = vmatpush1.bf16.msra.mxu0 %v7228_v33  ;;  %5716 = vmatprep.subr.bf16.mxu1 %v7603_v34  ;;  %v7690_v33 = vcombine.low %v2804_v22, %v2808_v23  ;;  %v7308_v34 = vcombine.low %v2421_v25, %v2425_v26  ;;  %v7301_v38 = vcombine.high %v2413_v31, %v2417_v32  ;;  %v2756_v23 = vld [vmem:[#allocation8 + $0xe08] sm:$0xff]  ;;  %v2373_v26 = vld [vmem:[#allocation8 + $0x210] sm:$0xff] }
 0x2b1   : > { %5757 = vmatprep.subr.bf16.mxu0 %v7221_v36  ;;  %v7683_v36 = vcombine.high %v2796_v28, %v2800_v30  ;;  %v2760_v25 = vld [vmem:[#allocation8 + $0xe28] sm:$0xff] }
 0x2b3   : > { %5717 = vmatpush1.bf16.msra.mxu1 %v7602_v45  ;;  %v2409_v45 = vld [vmem:[#allocation8 + $0x330] sm:$0xff] }
 0x2b4   : > { %5758 = vmatpush1.bf16.msra.mxu0 %v7220_v49  ;;  %5718 = vmatprep.subr.bf16.mxu1 %v7595_v50  ;;  %v7682_v49 = vcombine.low %v2796_v28, %v2800_v30  ;;  %v7300_v50 = vcombine.low %v2413_v31, %v2417_v32  ;;  %v7293_v53 = vcombine.high %v2405_v44, %v2409_v45  ;;  %v2493_v30 = vld [vmem:[#allocation8 + $0x5d0] sm:$0xff] }
 0x2b5   : > { %5759 = vmatprep.subr.bf16.mxu0 %v7213_v52  ;;  %v7675_v52 = vcombine.high %v2788_v39, %v2792_v40  ;;  %v2497_v31 = vld [vmem:[#allocation8 + $0x5f0] sm:$0xff] }
 0x2b6   : > { %v2621_v32 = vld [vmem:[#allocation8 + $0x9d0] sm:$0xff] }
 0x2b7   : > { %5719 = vmatpush1.bf16.msra.mxu1 %v7594_v51  ;;  %v2401_v51 = vld [vmem:[#allocation8 + $0x2f0] sm:$0xff] }
 0x2b8   : > { %5760 = vmatpush1.bf16.msra.mxu0 %v7212_v61  ;;  %5720 = vmatprep.subr.bf16.mxu1 %v7587_v62  ;;  %v7674_v61 = vcombine.low %v2788_v39, %v2792_v40  ;;  %v7292_v62 = vcombine.low %v2405_v44, %v2409_v45  ;;  %v7285_v63 = vcombine.high %v2397_v60, %v2401_v51  ;;  %v2485_v40 = vld [vmem:[#allocation8 + $0x590] sm:$0xff] }
 0x2b9   : > { %5761 = vmatprep.subr.bf16.mxu0 %v7205_v58  ;;  %v7667_v58 = vcombine.high %v2780_v55, %v2784_v56  ;;  %v2489_v44 = vld [vmem:[#allocation8 + $0x5b0] sm:$0xff]  ;;  %v7380_v45 = vcombine.low %v2493_v30, %v2497_v31 }
 0x2bb   : > { %5721 = vmatpush1.bf16.msra.mxu1 %v7586_v24  ;;  %v2393_v24 = vld [vmem:[#allocation8 + $0x2b0] sm:$0xff] }
 0x2bc   : > { %5762 = vmatpush1.bf16.msra.mxu0 %v7204_v3  ;;  %5722 = vmatprep.subr.bf16.mxu1 %v7579_v4  ;;  %v7666_v3 = vcombine.low %v2780_v55, %v2784_v56  ;;  %v7284_v4 = vcombine.low %v2397_v60, %v2401_v51  ;;  %v7277_v41 = vcombine.high %v2389_v54, %v2393_v24  ;;  %v2477_v55 = vld [vmem:[#allocation8 + $0x550] sm:$0xff] }
 0x2bd   : > { %5763 = vmatprep.subr.bf16.mxu0 %v7197_v5  ;;  %v7659_v5 = vcombine.high %v2772_v59, %v2776_v0  ;;  %v2481_v56 = vld [vmem:[#allocation8 + $0x570] sm:$0xff] }
 0x2bf   : > { %5723 = vmatpush1.bf16.msra.mxu1 %v7578_v11  ;;  %v2385_v11 = vld [vmem:[#allocation8 + $0x270] sm:$0xff] }
 0x2c0   : > { %5764 = vmatpush1.bf16.msra.mxu0 %v7196_v13  ;;  %5724 = vmatprep.subr.bf16.mxu1 %v7699_v18  ;;  %v7658_v13 = vcombine.low %v2772_v59, %v2776_v0  ;;  %v7276_v18 = vcombine.low %v2389_v54, %v2393_v24  ;;  %v7269_v22 = vcombine.high %v2381_v9, %v2385_v11 }
 0x2c1   : > { %5765 = vmatprep.subr.bf16.mxu0 %v7317_v21  ;;  %v7651_v21 = vcombine.high %v2764_v6, %v2768_v8  ;;  %v7365_v54 = vcombine.high %v2477_v55, %v2481_v56 }
 0x2c3   : > { %5725 = vmatpush2.bf16.msra.mxu1 %v7698_v46  ;;  %v2377_v46 = vld [vmem:[#allocation8 + $0x230] sm:$0xff] }
 0x2c4   : > { %5766 = vmatpush2.bf16.msra.mxu0 %v7316_v47  ;;  %5726 = vmatprep.subr.bf16.mxu1 %v7691_v57  ;;  %v7650_v47 = vcombine.low %v2764_v6, %v2768_v8  ;;  %v7268_v57 = vcombine.low %v2381_v9, %v2385_v11  ;;  %v7261_v28 = vcombine.high %v2373_v26, %v2377_v46  ;;  %v2601_v6 = vld [vmem:[#allocation8 + $0x930] sm:$0xff] }
 0x2c5   : > { %5767 = vmatprep.subr.bf16.mxu0 %v7309_v27  ;;  %v7643_v27 = vcombine.high %v2756_v23, %v2760_v25  ;;  %v7364_v8 = vcombine.low %v2477_v55, %v2481_v56  ;;  %v2565_v55 = vld [vmem:[#allocation8 + $0x810] sm:$0xff] }
 0x2c6   : > { %v2569_v56 = vld [vmem:[#allocation8 + $0x830] sm:$0xff] }
 0x2c7   : > { %5727 = vmatpush2.bf16.msra.mxu1 %v7690_v33  ;;  %v2625_v33 = vld [vmem:[#allocation8 + $0x9f0] sm:$0xff] }
 0x2c8   : > { %5768 = vmatpush2.bf16.msra.mxu0 %v7308_v34  ;;  %5728 = vmatprep.subr.bf16.mxu1 %v7683_v36  ;;  %v7642_v34 = vcombine.low %v2756_v23, %v2760_v25  ;;  %v7260_v36 = vcombine.low %v2373_v26, %v2377_v46  ;;  %v7509_v39 = vcombine.high %v2621_v32, %v2625_v33  ;;  %v2593_v23 = vld [vmem:[#allocation8 + $0x8f0] sm:$0xff] }
 0x2c9   : > { %5769 = vmatprep.subr.bf16.mxu0 %v7301_v38  ;;  %v7381_v38 = vcombine.high %v2493_v30, %v2497_v31  ;;  %v2585_v30 = vld [vmem:[#allocation8 + $0x8b0] sm:$0xff] }
 0x2cb   : > { %5729 = vmatpush2.bf16.msra.mxu1 %v7682_v49  ;;  %v2613_v49 = vld [vmem:[#allocation8 + $0x990] sm:$0xff] }
 0x2cc   : > { %5770 = vmatpush2.bf16.msra.mxu0 %v7300_v50  ;;  %5730 = vmatprep.subr.bf16.mxu1 %v7675_v52  ;;  %v2617_v50 = vld [vmem:[#allocation8 + $0x9b0] sm:$0xff]  ;;  %v7508_v52 = vcombine.low %v2621_v32, %v2625_v33 }
 0x2cd   : > { %5771 = vmatprep.subr.bf16.mxu0 %v7293_v53  ;;  %v7373_v53 = vcombine.high %v2485_v40, %v2489_v44  ;;  %v7501_v51 = vcombine.high %v2613_v49, %v2617_v50  ;;  %v7500_v0 = vcombine.low %v2613_v49, %v2617_v50 }
 0x2cf   : > { %5731 = vmatpush2.bf16.msra.mxu1 %v7674_v61  ;;  %v2605_v61 = vld [vmem:[#allocation8 + $0x950] sm:$0xff] }
 0x2d0   : > { %5772 = vmatpush2.bf16.msra.mxu0 %v7292_v62  ;;  %5732 = vmatprep.subr.bf16.mxu1 %v7667_v58  ;;  %v2609_v62 = vld [vmem:[#allocation8 + $0x970] sm:$0xff] }
 0x2d1   : > { %5773 = vmatprep.subr.bf16.mxu0 %v7285_v63  ;;  %v7372_v63 = vcombine.low %v2485_v40, %v2489_v44  ;;  %v7492_v11 = vcombine.low %v2605_v61, %v2609_v62  ;;  %v2577_v40 = vld [vmem:[#allocation8 + $0x870] sm:$0xff] }
 0x2d3   : > { %5733 = vmatpush2.bf16.msra.mxu1 %v7666_v3  ;;  %v7493_v3 = vcombine.high %v2605_v61, %v2609_v62  ;;  %v7453_v62 = vcombine.high %v2565_v55, %v2569_v56 }
 0x2d4   : > { %5774 = vmatpush2.bf16.msra.mxu0 %v7284_v4  ;;  %5734 = vmatprep.subr.bf16.mxu1 %v7659_v5  ;;  %v2469_v4 = vld [vmem:[#allocation8 + $0x510] sm:$0xff] }
 0x2d5   : > { %5775 = vmatprep.subr.bf16.mxu0 %v7277_v41  ;;  %v2473_v5 = vld [vmem:[#allocation8 + $0x530] sm:$0xff] }
 0x2d6   : > { %v2597_v41 = vld [vmem:[#allocation8 + $0x910] sm:$0xff]  ;;  %v7356_v25 = vcombine.low %v2469_v4, %v2473_v5 }
 0x2d7   : > { %5735 = vmatpush2.bf16.msra.mxu1 %v7658_v13  ;;  %v7357_v13 = vcombine.high %v2469_v4, %v2473_v5  ;;  %v7484_v26 = vcombine.low %v2597_v41, %v2601_v6  ;;  %v7452_v4 = vcombine.low %v2565_v55, %v2569_v56  ;;  %v2521_v55 = vld [vmem:[#allocation8 + $0x6b0] sm:$0xff] }
 0x2d8   : > { %5776 = vmatpush2.bf16.msra.mxu0 %v7276_v18  ;;  %5736 = vmatprep.subr.bf16.mxu1 %v7651_v21  ;;  %v7485_v18 = vcombine.high %v2597_v41, %v2601_v6  ;;  %v2461_v21 = vld [vmem:[#allocation8 + $0x4d0] sm:$0xff] }
 0x2d9   : > { %5777 = vmatprep.subr.bf16.mxu0 %v7269_v22  ;;  %v2589_v22 = vld [vmem:[#allocation8 + $0x8d0] sm:$0xff] }
 0x2da   : > { %v7476_v32 = vcombine.low %v2589_v22, %v2593_v23  ;;  %v2549_v41 = vld [vmem:[#allocation8 + $0x790] sm:$0xff] }
 0x2db   : > { %5737 = vmatpush2.bf16.msra.mxu1 %v7650_v47  ;;  %v7477_v47 = vcombine.high %v2589_v22, %v2593_v23  ;;  %v2553_v6 = vld [vmem:[#allocation8 + $0x7b0] sm:$0xff] }
 0x2dc   : > { %5778 = vmatpush2.bf16.msra.mxu0 %v7268_v57  ;;  %5738 = vmatprep.subr.bf16.mxu1 %v7643_v27  ;;  %v2453_v57 = vld [vmem:[#allocation8 + $0x490] sm:$0xff] }
 0x2dd   : > { %5779 = vmatprep.subr.bf16.mxu0 %v7261_v28  ;;  %v2457_v27 = vld [vmem:[#allocation8 + $0x4b0] sm:$0xff] }
 0x2de   : > { %v2581_v28 = vld [vmem:[#allocation8 + $0x890] sm:$0xff]  ;;  %v7341_v33 = vcombine.high %v2453_v57, %v2457_v27  ;;  %v7340_v44 = vcombine.low %v2453_v57, %v2457_v27 }
 0x2df   : > { %5739 = vmatpush2.bf16.msra.mxu1 %v7642_v34  ;;  %v7469_v34 = vcombine.high %v2581_v28, %v2585_v30  ;;  %v2545_v22 = vld [vmem:[#allocation8 + $0x770] sm:$0xff] }
 0x2e0   : > { %5780 = vmatpush2.bf16.msra.mxu0 %v7260_v36  ;;  %5790 = vmatprep.subr.bf16.mxu1 %v7381_v38  ;;  %v2445_v36 = vld [vmem:[#allocation8 + $0x450] sm:$0xff] }
 0x2e1   : > { %5831 = vmatprep.subr.bf16.mxu0 %v7509_v39  ;;  %v2449_v38 = vld [vmem:[#allocation8 + $0x470] sm:$0xff] }
 0x2e2   : > { %5741 = vmatmul.mubr.bf16.vlgmr.msra.gmra.mxu1 %v8646_v19  ;;  %v5537_v60 = vpop.f32.mrf.mxu0  ;;  %v2573_v39 = vld [vmem:[#allocation8 + $0x850] sm:$0xff]  ;;  %v7333_v49 = vcombine.high %v2445_v36, %v2449_v38 }
 0x2e3   : > { %5782 = vmatmul.mubr.bf16.vlgmr.msra.gmra.mxu0 %v8601_v7  ;;  %v8671_v58 = vadd.f32 %v5537_v60, %v8662_v37  ;;  %5791 = vmatpush1.bf16.msra.mxu1 %v7380_v45  ;;  %v7468_v45 = vcombine.low %v2581_v28, %v2585_v30  ;;  %v7461_v50 = vcombine.high %v2573_v39, %v2577_v40  ;;  %v2669_v23 = vld [vmem:[#allocation8 + $0xb50] sm:$0xff] }
 0x2e4   : > { %5822 = vmatprep.mubr.bf16.mxu1 %v8607_v43  ;;  %5832 = vmatpush1.bf16.msra.mxu0 %v7508_v52  ;;  %v5539_v59 = vpop.f32.mrf.mxu0  ;;  %v2437_v52 = vld [vmem:[#allocation8 + $0x410] sm:$0xff]  ;;  %v7332_v60 = vcombine.low %v2445_v36, %v2449_v38 }
 0x2e5   : > { %5863 = vmatprep.mubr.bf16.mxu0 %v8631_v12  ;;  %v8676_v24 = vadd.f32 %v5539_v59, %v8666_v10  ;;  %5792 = vmatprep.subr.bf16.mxu1 %v7373_v53  ;;  %v2465_v10 = vld [vmem:[#allocation8 + $0x4f0] sm:$0xff] }
 0x2e6   : > { %5833 = vmatprep.subr.bf16.mxu0 %v7501_v51  ;;  %v5541_v37 = vpop.f32.mrf.mxu0  ;;  %v7349_v46 = vcombine.high %v2461_v21, %v2465_v10  ;;  %v7348_v31 = vcombine.low %v2461_v21, %v2465_v10  ;;  %v2441_v53 = vld [vmem:[#allocation8 + $0x430] sm:$0xff]  ;;  %v7460_v51 = vcombine.low %v2573_v39, %v2577_v40 }
 0x2e7   : > { %5793 = vmatpush1.bf16.msra.mxu1 %v7372_v63  ;;  %v7325_v61 = vcombine.high %v2437_v52, %v2441_v53  ;;  %v2557_v63 = vld [vmem:[#allocation8 + $0x7d0] sm:$0xff] }
 0x2e8   : > { %5834 = vmatpush1.bf16.msra.mxu0 %v7500_v0  ;;  %v5542_v9 = vpop.f32.mrf.mxu0  ;;  %5794 = vmatprep.subr.bf16.mxu1 %v7365_v54  ;;  %v2561_v59 = vld [vmem:[#allocation8 + $0x7f0] sm:$0xff] }
 0x2e9   : > { %5835 = vmatprep.subr.bf16.mxu0 %v7493_v3  ;;  %v2685_v0 = vld [vmem:[#allocation8 + $0xbd0] sm:$0xff]  ;;  %v7324_v3 = vcombine.low %v2437_v52, %v2441_v53  ;;  %v7445_v5 = vcombine.high %v2557_v63, %v2561_v59 }
 0x2ea   : > { %v2689_v54 = vld [vmem:[#allocation8 + $0xbf0] sm:$0xff] }
 0x2eb   : > { %5795 = vmatpush1.bf16.msra.mxu1 %v7364_v8  ;;  %v7573_v37 = vcombine.high %v2685_v0, %v2689_v54  ;;  %v2677_v8 = vld [vmem:[#allocation8 + $0xb90] sm:$0xff] }
 0x2ec   : > { %5836 = vmatpush1.bf16.msra.mxu0 %v7492_v11  ;;  %5796 = vmatprep.subr.bf16.mxu1 %v7357_v13  ;;  %v2681_v9 = vld [vmem:[#allocation8 + $0xbb0] sm:$0xff]  ;;  %v7444_v11 = vcombine.low %v2557_v63, %v2561_v59  ;;  %v7572_v13 = vcombine.low %v2685_v0, %v2689_v54 }
 0x2ed   : > { %5837 = vmatprep.subr.bf16.mxu0 %v7485_v18  ;;  %v7437_v18 = vcombine.high %v2549_v41, %v2553_v6  ;;  %v7565_v21 = vcombine.high %v2677_v8, %v2681_v9  ;;  %v2541_v10 = vld [vmem:[#allocation8 + $0x750] sm:$0xff] }
 0x2ee   : > { %v2533_v27 = vld [vmem:[#allocation8 + $0x710] sm:$0xff] }
 0x2ef   : > { %5797 = vmatpush1.bf16.msra.mxu1 %v7356_v25  ;;  %v2673_v25 = vld [vmem:[#allocation8 + $0xb70] sm:$0xff] }
 0x2f0   : > { %5838 = vmatpush1.bf16.msra.mxu0 %v7484_v26  ;;  %5798 = vmatprep.subr.bf16.mxu1 %v7349_v46  ;;  %v7436_v26 = vcombine.low %v2549_v41, %v2553_v6  ;;  %v7564_v46 = vcombine.low %v2677_v8, %v2681_v9  ;;  %v7557_v57 = vcombine.high %v2669_v23, %v2673_v25  ;;  %v2537_v28 = vld [vmem:[#allocation8 + $0x730] sm:$0xff] }
 0x2f1   : > { %5839 = vmatprep.subr.bf16.mxu0 %v7477_v47  ;;  %v7429_v47 = vcombine.high %v2541_v10, %v2545_v22  ;;  %v2661_v30 = vld [vmem:[#allocation8 + $0xb10] sm:$0xff] }
 0x2f2   : > { %v2525_v38 = vld [vmem:[#allocation8 + $0x6d0] sm:$0xff] }
 0x2f3   : > { %5799 = vmatpush1.bf16.msra.mxu1 %v7348_v31  ;;  %v2665_v31 = vld [vmem:[#allocation8 + $0xb30] sm:$0xff] }
 0x2f4   : > { %5840 = vmatpush1.bf16.msra.mxu0 %v7476_v32  ;;  %5800 = vmatprep.subr.bf16.mxu1 %v7341_v33  ;;  %v7428_v32 = vcombine.low %v2541_v10, %v2545_v22  ;;  %v7556_v33 = vcombine.low %v2669_v23, %v2673_v25  ;;  %v7549_v36 = vcombine.high %v2661_v30, %v2665_v31  ;;  %v2529_v39 = vld [vmem:[#allocation8 + $0x6f0] sm:$0xff]  ;;  %v2366_v25 = vld [vmem:[#allocation8 + $0x1d8] sm:$0xff] }
 0x2f5   : > { %5841 = vmatprep.subr.bf16.mxu0 %v7469_v34  ;;  %v7421_v34 = vcombine.high %v2533_v27, %v2537_v28  ;;  %v2653_v40 = vld [vmem:[#allocation8 + $0xad0] sm:$0xff] }
 0x2f6   : > { %v2517_v53 = vld [vmem:[#allocation8 + $0x690] sm:$0xff] }
 0x2f7   : > { %5801 = vmatpush1.bf16.msra.mxu1 %v7340_v44  ;;  %v2657_v44 = vld [vmem:[#allocation8 + $0xaf0] sm:$0xff] }
 0x2f8   : > { %5842 = vmatpush1.bf16.msra.mxu0 %v7468_v45  ;;  %5802 = vmatprep.subr.bf16.mxu1 %v7333_v49  ;;  %v7420_v45 = vcombine.low %v2533_v27, %v2537_v28  ;;  %v7548_v49 = vcombine.low %v2661_v30, %v2665_v31  ;;  %v7541_v52 = vcombine.high %v2653_v40, %v2657_v44  ;;  %v2645_v56 = vld [vmem:[#allocation8 + $0xa90] sm:$0xff] }
 0x2f9   : > { %5843 = vmatprep.subr.bf16.mxu0 %v7461_v50  ;;  %v7413_v50 = vcombine.high %v2525_v38, %v2529_v39  ;;  %v2509_v59 = vld [vmem:[#allocation8 + $0x650] sm:$0xff] }
 0x2fa   : > { %v2513_v0 = vld [vmem:[#allocation8 + $0x670] sm:$0xff] }
 0x2fb   : > { %5803 = vmatpush1.bf16.msra.mxu1 %v7332_v60  ;;  %v2649_v60 = vld [vmem:[#allocation8 + $0xab0] sm:$0xff] }
 0x2fc   : > { %5844 = vmatpush1.bf16.msra.mxu0 %v7460_v51  ;;  %5804 = vmatprep.subr.bf16.mxu1 %v7325_v61  ;;  %v7412_v51 = vcombine.low %v2525_v38, %v2529_v39  ;;  %v7540_v61 = vcombine.low %v2653_v40, %v2657_v44  ;;  %v7533_v63 = vcombine.high %v2645_v56, %v2649_v60  ;;  %v2637_v54 = vld [vmem:[#allocation8 + $0xa50] sm:$0xff] }
 0x2fd   : > { %5845 = vmatprep.subr.bf16.mxu0 %v7453_v62  ;;  %v7405_v62 = vcombine.high %v2517_v53, %v2521_v55  ;;  %v2501_v6 = vld [vmem:[#allocation8 + $0x610] sm:$0xff] }
 0x2fe   : > { %v2505_v8 = vld [vmem:[#allocation8 + $0x630] sm:$0xff] }
 0x2ff   : > { %5805 = vmatpush1.bf16.msra.mxu1 %v7324_v3  ;;  %v2641_v3 = vld [vmem:[#allocation8 + $0xa70] sm:$0xff] }
 0x300   : > { %5846 = vmatpush1.bf16.msra.mxu0 %v7452_v4  ;;  %5806 = vmatprep.subr.bf16.mxu1 %v7445_v5  ;;  %v7404_v4 = vcombine.low %v2517_v53, %v2521_v55  ;;  %v7532_v5 = vcombine.low %v2645_v56, %v2649_v60  ;;  %v7525_v41 = vcombine.high %v2637_v54, %v2641_v3  ;;  %v2629_v9 = vld [vmem:[#allocation8 + $0xa10] sm:$0xff] }
 0x301   : > { %5847 = vmatprep.subr.bf16.mxu0 %v7573_v37  ;;  %v7397_v37 = vcombine.high %v2509_v59, %v2513_v0  ;;  %v2749_v22 = vld [vmem:[#allocation8 + $0xdd0] sm:$0xff] }
 0x302   : > { %v2753_v23 = vld [vmem:[#allocation8 + $0xdf0] sm:$0xff] }
 0x303   : > { %5807 = vmatpush2.bf16.msra.mxu1 %v7444_v11  ;;  %v2633_v11 = vld [vmem:[#allocation8 + $0xa30] sm:$0xff]  ;;  %v7636_v31 = vcombine.low %v2749_v22, %v2753_v23 }
 0x304   : > { %5848 = vmatpush2.bf16.msra.mxu0 %v7572_v13  ;;  %5808 = vmatprep.subr.bf16.mxu1 %v7437_v18  ;;  %v7396_v13 = vcombine.low %v2509_v59, %v2513_v0  ;;  %v7524_v18 = vcombine.low %v2637_v54, %v2641_v3  ;;  %v7517_v10 = vcombine.high %v2629_v9, %v2633_v11  ;;  %v2741_v28 = vld [vmem:[#allocation8 + $0xd90] sm:$0xff]  ;;  %v2342_v54 = vld [vmem:[#allocation8 + $0x118] sm:$0xff] }
 0x305   : > { %5849 = vmatprep.subr.bf16.mxu0 %v7565_v21  ;;  %v7389_v21 = vcombine.high %v2501_v6, %v2505_v8  ;;  %v2745_v30 = vld [vmem:[#allocation8 + $0xdb0] sm:$0xff]  ;;  %v2346_v3 = vld [vmem:[#allocation8 + $0x138] sm:$0xff] }
 0x306   : > { %v2733_v38 = vld [vmem:[#allocation8 + $0xd50] sm:$0xff]  ;;  %v7628_v53 = vcombine.low %v2741_v28, %v2745_v30 }
 0x307   : > { %5809 = vmatpush2.bf16.msra.mxu1 %v7436_v26  ;;  %v2370_v26 = vld [vmem:[#allocation8 + $0x1f8] sm:$0xff]  ;;  %v2737_v39 = vld [vmem:[#allocation8 + $0xd70] sm:$0xff] }
 0x308   : > { %5850 = vmatpush2.bf16.msra.mxu0 %v7564_v46  ;;  %5810 = vmatprep.subr.bf16.mxu1 %v7429_v47  ;;  %v7388_v46 = vcombine.low %v2501_v6, %v2505_v8  ;;  %v7516_v47 = vcombine.low %v2629_v9, %v2633_v11  ;;  %v7255_v27 = vcombine.high %v2366_v25, %v2370_v26  ;;  %v2717_v6 = vld [vmem:[#allocation8 + $0xcd0] sm:$0xff]  ;;  %v2334_v9 = vld [vmem:[#allocation8 + $0xd8] sm:$0xff] }
 0x309   : > { %5851 = vmatprep.subr.bf16.mxu0 %v7557_v57  ;;  %v7637_v57 = vcombine.high %v2749_v22, %v2753_v23  ;;  %v2721_v8 = vld [vmem:[#allocation8 + $0xcf0] sm:$0xff]  ;;  %v2338_v11 = vld [vmem:[#allocation8 + $0xf8] sm:$0xff] }
 0x30a   : > { %v2709_v22 = vld [vmem:[#allocation8 + $0xc90] sm:$0xff] }
 0x30b   : > { %5811 = vmatpush2.bf16.msra.mxu1 %v7428_v32  ;;  %v2358_v32 = vld [vmem:[#allocation8 + $0x198] sm:$0xff]  ;;  %v2713_v23 = vld [vmem:[#allocation8 + $0xcb0] sm:$0xff] }
 0x30c   : > { %5852 = vmatpush2.bf16.msra.mxu0 %v7556_v33  ;;  %5812 = vmatprep.subr.bf16.mxu1 %v7421_v34  ;;  %v2362_v33 = vld [vmem:[#allocation8 + $0x1b8] sm:$0xff]  ;;  %v7254_v34 = vcombine.low %v2366_v25, %v2370_v26 }
 0x30d   : > { %5853 = vmatprep.subr.bf16.mxu0 %v7549_v36  ;;  %v7629_v36 = vcombine.high %v2741_v28, %v2745_v30  ;;  %v7246_v60 = vcombine.low %v2358_v32, %v2362_v33  ;;  %v2326_v25 = vld [vmem:[#allocation8 + $0x98] sm:$0xff]  ;;  %v2701_v28 = vld [vmem:[#allocation8 + $0xc50] sm:$0xff] }
 0x30e   : > { %v2330_v26 = vld [vmem:[#allocation8 + $0xb8] sm:$0xff]  ;;  %v2705_v30 = vld [vmem:[#allocation8 + $0xc70] sm:$0xff] }
 0x30f   : > { %5813 = vmatpush2.bf16.msra.mxu1 %v7420_v45  ;;  %v7247_v45 = vcombine.high %v2358_v32, %v2362_v33  ;;  %v2322_v32 = vld [vmem:[#allocation8 + $0x78] sm:$0xff]  ;;  %v7596_v33 = vcombine.low %v2709_v22, %v2713_v23 }
 0x310   : > { %5854 = vmatpush2.bf16.msra.mxu0 %v7548_v49  ;;  %5814 = vmatprep.subr.bf16.mxu1 %v7413_v50  ;;  %v2350_v49 = vld [vmem:[#allocation8 + $0x158] sm:$0xff] }
 0x311   : > { %5855 = vmatprep.subr.bf16.mxu0 %v7541_v52  ;;  %v2354_v50 = vld [vmem:[#allocation8 + $0x178] sm:$0xff] }
 0x313   : > { %5815 = vmatpush2.bf16.msra.mxu1 %v7412_v51  ;;  %v7621_v51 = vcombine.high %v2733_v38, %v2737_v39 }
 0x314   : > { %5856 = vmatpush2.bf16.msra.mxu0 %v7540_v61  ;;  %5816 = vmatprep.subr.bf16.mxu1 %v7405_v62  ;;  %v7239_v62 = vcombine.high %v2350_v49, %v2354_v50 }
 0x315   : > { %5857 = vmatprep.subr.bf16.mxu0 %v7533_v63  ;;  %v2725_v63 = vld [vmem:[#allocation8 + $0xd10] sm:$0xff] }
 0x317   : > { %5817 = vmatpush2.bf16.msra.mxu1 %v7404_v4  ;;  %v7620_v4 = vcombine.low %v2733_v38, %v2737_v39  ;;  %v2693_v39 = vld [vmem:[#allocation8 + $0xc10] sm:$0xff] }
 0x318   : > { %5858 = vmatpush2.bf16.msra.mxu0 %v7532_v5  ;;  %5818 = vmatprep.subr.bf16.mxu1 %v7397_v37 }
 0x319   : > { %5859 = vmatprep.subr.bf16.mxu0 %v7525_v41  ;;  %v7238_v41 = vcombine.low %v2350_v49, %v2354_v50  ;;  %v2314_v49 = vld [vmem:[#allocation8 + $0x38] sm:$0xff]  ;;  %v7588_v50 = vcombine.low %v2701_v28, %v2705_v30 }
 0x31b   : > { %5819 = vmatpush2.bf16.msra.mxu1 %v7396_v13 }
 0x31c   : > { %5860 = vmatpush2.bf16.msra.mxu0 %v7524_v18  ;;  %5820 = vmatprep.subr.bf16.mxu1 %v7389_v21  ;;  %v7230_v18 = vcombine.low %v2342_v54, %v2346_v3  ;;  %v7605_v21 = vcombine.high %v2717_v6, %v2721_v8 }
 0x31d   : > { %5861 = vmatprep.subr.bf16.mxu0 %v7517_v10  ;;  %v7223_v10 = vcombine.high %v2334_v9, %v2338_v11 }
 0x31f   : > { %5821 = vmatpush2.bf16.msra.mxu1 %v7388_v46  ;;  %v7604_v46 = vcombine.low %v2717_v6, %v2721_v8 }
 0x320   : > { %5862 = vmatpush2.bf16.msra.mxu0 %v7516_v47  ;;  %5872 = vmatprep.subr.bf16.mxu1 %v7637_v57  ;;  %v7222_v47 = vcombine.low %v2334_v9, %v2338_v11  ;;  %v7597_v57 = vcombine.high %v2709_v22, %v2713_v23  ;;  %v2797_v9 = vld [vmem:[#allocation8 + $0xf50] sm:$0xff] }
 0x321   : > { %5913 = vmatprep.subr.bf16.mxu0 %v7255_v27  ;;  %v7215_v27 = vcombine.high %v2326_v25, %v2330_v26  ;;  %v2801_v11 = vld [vmem:[#allocation8 + $0xf70] sm:$0xff] }
 0x322   : > { %v8678_v40 = vpop.f32.mrf.mxu0  ;;  %5823 = vmatmul.mubr.bf16.vlgmr.msra.gmra.mxu1 %v8615_v48  ;;  %v5578_v44 = vpop.f32.mrf.mxu1  ;;  %v7685_v22 = vcombine.high %v2797_v9, %v2801_v11 }
 0x323   : > { %5864 = vmatmul.mubr.bf16.vlgmr.msra.gmra.mxu0 %v8633_v15  ;;  %v8683_v52 = vadd.f32 %v5578_v44, %v8671_v58  ;;  %5873 = vmatpush1.bf16.msra.mxu1 %v7636_v31  ;;  %v2729_v58 = vld [vmem:[#allocation8 + $0xd30] sm:$0xff]  ;;  %v2318_v31 = vld [vmem:[#allocation8 + $0x58] sm:$0xff] }
 0x324   : > { %5904 = vmatprep.mubr.bf16.mxu1 %v8644_v1  ;;  %5914 = vmatpush1.bf16.msra.mxu0 %v7254_v34  ;;  %v8686_v55 = vpop.f32.mrf.mxu0  ;;  %v5580_v56 = vpop.f32.mrf.mxu1  ;;  %v7612_v13 = vcombine.low %v2725_v63, %v2729_v58  ;;  %v7214_v34 = vcombine.low %v2326_v25, %v2330_v26  ;;  %v7207_v38 = vcombine.high %v2318_v31, %v2322_v32  ;;  %v2697_v44 = vld [vmem:[#allocation8 + $0xc30] sm:$0xff] }
 0x325   : > { %5945 = vmatprep.mubr.bf16.mxu0 %v8581_v14  ;;  %v8690_v61 = vadd.f32 %v5580_v56, %v8676_v24  ;;  %5874 = vmatprep.subr.bf16.mxu1 %v7629_v36  ;;  %v7613_v14 = vcombine.high %v2725_v63, %v2729_v58  ;;  %v7231_v24 = vcombine.high %v2342_v54, %v2346_v3  ;;  %v2430_v63 = vld [vmem:[#allocation8 + $0x3d8] sm:$0xff]  ;;  %v2789_v25 = vld [vmem:[#allocation8 + $0xf10] sm:$0xff] }
 0x326   : > { %v5623_v59 = vpop.f32.mrf.mxu0  ;;  %5915 = vmatprep.subr.bf16.mxu0 %v7247_v45  ;;  %v5582_v0 = vpop.f32.mrf.mxu1  ;;  %v7589_v36 = vcombine.high %v2701_v28, %v2705_v30  ;;  %v2310_v45 = vld [vmem:[#allocation8 + $0x18] sm:$0xff]  ;;  %v7581_v56 = vcombine.high %v2693_v39, %v2697_v44  ;;  %v2793_v26 = vld [vmem:[#allocation8 + $0xf30] sm:$0xff] }
 0x327   : > { %5875 = vmatpush1.bf16.msra.mxu1 %v7628_v53  ;;  %v7206_v53 = vcombine.low %v2318_v31, %v2322_v32  ;;  %v2434_v58 = vld [vmem:[#allocation8 + $0x3f8] sm:$0xff]  ;;  %v7580_v59 = vcombine.low %v2693_v39, %v2697_v44  ;;  %v7198_v0 = vcombine.low %v2310_v45, %v2314_v49  ;;  %v7677_v28 = vcombine.high %v2789_v25, %v2793_v26  ;;  %v2781_v31 = vld [vmem:[#allocation8 + $0xed0] sm:$0xff] }
 0x328   : > { %5916 = vmatpush1.bf16.msra.mxu0 %v7246_v60  ;;  %v5624_v5 = vpop.f32.mrf.mxu0  ;;  %v5583_v37 = vpop.f32.mrf.mxu1  ;;  %5876 = vmatprep.subr.bf16.mxu1 %v7621_v51  ;;  %v7199_v60 = vcombine.high %v2310_v45, %v2314_v49  ;;  %v2813_v51 = vld [vmem:[#allocation8 + $0xfd0] sm:$0xff]  ;;  %v7319_v3 = vcombine.high %v2430_v63, %v2434_v58 }
 0x329   : > { %5917 = vmatprep.subr.bf16.mxu0 %v7239_v62  ;;  %v2817_v62 = vld [vmem:[#allocation8 + $0xff0] sm:$0xff]  ;;  %v2422_v37 = vld [vmem:[#allocation8 + $0x398] sm:$0xff] }
 0x32a   : > { %v7701_v54 = vcombine.high %v2813_v51, %v2817_v62  ;;  %v2809_v5 = vld [vmem:[#allocation8 + $0xfb0] sm:$0xff] }
 0x32b   : > { %5877 = vmatpush1.bf16.msra.mxu1 %v7620_v4  ;;  %v2805_v4 = vld [vmem:[#allocation8 + $0xf90] sm:$0xff] }
 0x32c   : > { %5918 = vmatpush1.bf16.msra.mxu0 %v7238_v41  ;;  %5878 = vmatprep.subr.bf16.mxu1 %v7613_v14  ;;  %v2426_v41 = vld [vmem:[#allocation8 + $0x3b8] sm:$0xff]  ;;  %v7700_v14 = vcombine.low %v2813_v51, %v2817_v62  ;;  %v7693_v6 = vcombine.high %v2805_v4, %v2809_v5  ;;  %v2785_v32 = vld [vmem:[#allocation8 + $0xef0] sm:$0xff] }
 0x32d   : > { %5919 = vmatprep.subr.bf16.mxu0 %v7231_v24  ;;  %v7318_v24 = vcombine.low %v2430_v63, %v2434_v58  ;;  %v7311_v8 = vcombine.high %v2422_v37, %v2426_v41  ;;  %v7669_v39 = vcombine.high %v2781_v31, %v2785_v32  ;;  %v2773_v45 = vld [vmem:[#allocation8 + $0xe90] sm:$0xff] }
 0x32e   : > { %v2777_v49 = vld [vmem:[#allocation8 + $0xeb0] sm:$0xff] }
 0x32f   : > { %5879 = vmatpush1.bf16.msra.mxu1 %v7612_v13  ;;  %v2414_v13 = vld [vmem:[#allocation8 + $0x358] sm:$0xff]  ;;  %v7661_v51 = vcombine.high %v2773_v45, %v2777_v49  ;;  %v2765_v63 = vld [vmem:[#allocation8 + $0xe50] sm:$0xff] }
 0x330   : > { %5920 = vmatpush1.bf16.msra.mxu0 %v7230_v18  ;;  %5880 = vmatprep.subr.bf16.mxu1 %v7605_v21  ;;  %v2418_v18 = vld [vmem:[#allocation8 + $0x378] sm:$0xff]  ;;  %v7692_v21 = vcombine.low %v2805_v4, %v2809_v5  ;;  %v2769_v58 = vld [vmem:[#allocation8 + $0xe70] sm:$0xff] }
 0x331   : > { %5921 = vmatprep.subr.bf16.mxu0 %v7223_v10  ;;  %v7310_v10 = vcombine.low %v2422_v37, %v2426_v41  ;;  %v7303_v23 = vcombine.high %v2414_v13, %v2418_v18  ;;  %v7653_v4 = vcombine.high %v2765_v63, %v2769_v58  ;;  %v2757_v37 = vld [vmem:[#allocation8 + $0xe10] sm:$0xff] }
 0x332   : > { %v2761_v41 = vld [vmem:[#allocation8 + $0xe30] sm:$0xff] }
 0x333   : > { %5881 = vmatpush1.bf16.msra.mxu1 %v7604_v46  ;;  %v2406_v46 = vld [vmem:[#allocation8 + $0x318] sm:$0xff] }
 0x334   : > { %5922 = vmatpush1.bf16.msra.mxu0 %v7222_v47  ;;  %5882 = vmatprep.subr.bf16.mxu1 %v7597_v57  ;;  %v2410_v47 = vld [vmem:[#allocation8 + $0x338] sm:$0xff]  ;;  %v7684_v57 = vcombine.low %v2797_v9, %v2801_v11  ;;  %v7645_v9 = vcombine.high %v2757_v37, %v2761_v41 }
 0x335   : > { %5923 = vmatprep.subr.bf16.mxu0 %v7215_v27  ;;  %v7302_v27 = vcombine.low %v2414_v13, %v2418_v18  ;;  %v7295_v30 = vcombine.high %v2406_v46, %v2410_v47  ;;  %v2494_v13 = vld [vmem:[#allocation8 + $0x5d8] sm:$0xff] }
 0x336   : > { %v2498_v18 = vld [vmem:[#allocation8 + $0x5f8] sm:$0xff] }
 0x337   : > { %5883 = vmatpush1.bf16.msra.mxu1 %v7596_v33  ;;  %v2398_v33 = vld [vmem:[#allocation8 + $0x2d8] sm:$0xff] }
 0x338   : > { %5924 = vmatpush1.bf16.msra.mxu0 %v7214_v34  ;;  %5884 = vmatprep.subr.bf16.mxu1 %v7589_v36  ;;  %v2402_v34 = vld [vmem:[#allocation8 + $0x2f8] sm:$0xff]  ;;  %v7676_v36 = vcombine.low %v2789_v25, %v2793_v26  ;;  %v7383_v25 = vcombine.high %v2494_v13, %v2498_v18  ;;  %v8692_v26 = vld [vmem:[#allocation10] sm:$0xff] }
 0x339   : > { %5925 = vmatprep.subr.bf16.mxu0 %v7207_v38  ;;  %v7294_v38 = vcombine.low %v2406_v46, %v2410_v47  ;;  %v7287_v44 = vcombine.high %v2398_v33, %v2402_v34  ;;  %v2832_v46 = vrot.slane %v8692_v26, %v653_v16  ;;  %v2478_v16 = vld [vmem:[#allocation8 + $0x558] sm:$0xff] }
 0x33b   : > { %5885 = vmatpush1.bf16.msra.mxu1 %v7588_v50  ;;  %v2390_v50 = vld [vmem:[#allocation8 + $0x298] sm:$0xff] }
 0x33c   : > { %5926 = vmatpush1.bf16.msra.mxu0 %v7206_v53  ;;  %5886 = vmatprep.subr.bf16.mxu1 %v7581_v56  ;;  %v2394_v53 = vld [vmem:[#allocation8 + $0x2b8] sm:$0xff]  ;;  %v7668_v56 = vcombine.low %v2781_v31, %v2785_v32 }
 0x33d   : > { %5927 = vmatprep.subr.bf16.mxu0 %v7199_v60  ;;  %v7286_v60 = vcombine.low %v2398_v33, %v2402_v34  ;;  %v7279_v62 = vcombine.high %v2390_v50, %v2394_v53  ;;  %v2614_v31 = vld [vmem:[#allocation8 + $0x998] sm:$0xff]  ;;  %v5620_v34 = vadd.f32 %v8678_v40, %v2832_v46 }
 0x33e   : > { %v2618_v32 = vld [vmem:[#allocation8 + $0x9b8] sm:$0xff] }
 0x33f   : > { %5887 = vmatpush1.bf16.msra.mxu1 %v7580_v59  ;;  %v2382_v59 = vld [vmem:[#allocation8 + $0x258] sm:$0xff] }
 0x340   : > { %5928 = vmatpush1.bf16.msra.mxu0 %v7198_v0  ;;  %5888 = vmatprep.subr.bf16.mxu1 %v7701_v54  ;;  %v2386_v0 = vld [vmem:[#allocation8 + $0x278] sm:$0xff]  ;;  %v7660_v54 = vcombine.low %v2773_v45, %v2777_v49  ;;  %v7503_v45 = vcombine.high %v2614_v31, %v2618_v32 }
 0x341   : > { %5929 = vmatprep.subr.bf16.mxu0 %v7319_v3  ;;  %v7278_v3 = vcombine.low %v2390_v50, %v2394_v53  ;;  %v7271_v5 = vcombine.high %v2382_v59, %v2386_v0  ;;  %v2606_v49 = vld [vmem:[#allocation8 + $0x958] sm:$0xff] }
 0x342   : > { %v2586_v46 = vld [vmem:[#allocation8 + $0x8b8] sm:$0xff] }
 0x343   : > { %5889 = vmatpush2.bf16.msra.mxu1 %v7700_v14  ;;  %v2374_v14 = vld [vmem:[#allocation8 + $0x218] sm:$0xff] }
 0x344   : > { %5930 = vmatpush2.bf16.msra.mxu0 %v7318_v24  ;;  %5890 = vmatprep.subr.bf16.mxu1 %v7693_v6  ;;  %v2378_v24 = vld [vmem:[#allocation8 + $0x238] sm:$0xff]  ;;  %v7652_v6 = vcombine.low %v2765_v63, %v2769_v58 }
 0x345   : > { %5931 = vmatprep.subr.bf16.mxu0 %v7311_v8  ;;  %v7270_v8 = vcombine.low %v2382_v59, %v2386_v0  ;;  %v7263_v11 = vcombine.high %v2374_v14, %v2378_v24  ;;  %v2474_v0 = vld [vmem:[#allocation8 + $0x538] sm:$0xff] }
 0x347   : > { %5891 = vmatpush2.bf16.msra.mxu1 %v7692_v21  ;;  %v2622_v21 = vld [vmem:[#allocation8 + $0x9d8] sm:$0xff] }
 0x348   : > { %5932 = vmatpush2.bf16.msra.mxu0 %v7310_v10  ;;  %5892 = vmatprep.subr.bf16.mxu1 %v7685_v22  ;;  %v2626_v10 = vld [vmem:[#allocation8 + $0x9f8] sm:$0xff]  ;;  %v7644_v22 = vcombine.low %v2757_v37, %v2761_v41 }
 0x349   : > { %5933 = vmatprep.subr.bf16.mxu0 %v7303_v23  ;;  %v7262_v23 = vcombine.low %v2374_v14, %v2378_v24  ;;  %v7511_v47 = vcombine.high %v2622_v21, %v2626_v10  ;;  %v7510_v33 = vcombine.low %v2622_v21, %v2626_v10 }
 0x34b   : > { %5893 = vmatpush2.bf16.msra.mxu1 %v7684_v57  ;;  %v2486_v57 = vld [vmem:[#allocation8 + $0x598] sm:$0xff] }
 0x34c   : > { %5934 = vmatpush2.bf16.msra.mxu0 %v7302_v27  ;;  %5894 = vmatprep.subr.bf16.mxu1 %v7677_v28  ;;  %v2490_v27 = vld [vmem:[#allocation8 + $0x5b8] sm:$0xff]  ;;  %v2836_v28 = vrot.slane %v8692_v26, %v657_v2 }
 0x34d   : > { %5935 = vmatprep.subr.bf16.mxu0 %v7295_v30  ;;  %v7382_v30 = vcombine.low %v2494_v13, %v2498_v18  ;;  %v2610_v2 = vld [vmem:[#allocation8 + $0x978] sm:$0xff] }
 0x34e   : > { %v5622_v50 = vadd.f32 %v8686_v55, %v2836_v28  ;;  %v7495_v59 = vcombine.high %v2606_v49, %v2610_v2  ;;  %v2470_v55 = vld [vmem:[#allocation8 + $0x518] sm:$0xff]  ;;  %v7494_v14 = vcombine.low %v2606_v49, %v2610_v2 }
 0x34f   : > { %5895 = vmatpush2.bf16.msra.mxu1 %v7676_v36  ;;  %v7375_v36 = vcombine.high %v2486_v57, %v2490_v27  ;;  %v7358_v13 = vcombine.low %v2470_v55, %v2474_v0  ;;  %v2570_v49 = vld [vmem:[#allocation8 + $0x838] sm:$0xff] }
 0x350   : > { %5936 = vmatpush2.bf16.msra.mxu0 %v7294_v38  ;;  %5896 = vmatprep.subr.bf16.mxu1 %v7669_v39  ;;  %v2482_v38 = vld [vmem:[#allocation8 + $0x578] sm:$0xff] }
 0x351   : > { %5937 = vmatprep.subr.bf16.mxu0 %v7287_v44 }
 0x353   : > { %5897 = vmatpush2.bf16.msra.mxu1 %v7668_v56  ;;  %v7374_v56 = vcombine.low %v2486_v57, %v2490_v27 }
 0x354   : > { %5938 = vmatpush2.bf16.msra.mxu0 %v7286_v60  ;;  %5898 = vmatprep.subr.bf16.mxu1 %v7661_v51  ;;  %v7502_v51 = vcombine.low %v2614_v31, %v2618_v32  ;;  %v2450_v31 = vld [vmem:[#allocation8 + $0x478] sm:$0xff] }
 0x355   : > { %5939 = vmatprep.subr.bf16.mxu0 %v7279_v62  ;;  %v7367_v62 = vcombine.high %v2478_v16, %v2482_v38  ;;  %v2574_v32 = vld [vmem:[#allocation8 + $0x858] sm:$0xff] }
 0x357   : > { %5899 = vmatpush2.bf16.msra.mxu1 %v7660_v54 }
 0x358   : > { %5940 = vmatpush2.bf16.msra.mxu0 %v7278_v3  ;;  %5900 = vmatprep.subr.bf16.mxu1 %v7653_v4  ;;  %v2598_v3 = vld [vmem:[#allocation8 + $0x918] sm:$0xff] }
 0x359   : > { %5941 = vmatprep.subr.bf16.mxu0 %v7271_v5  ;;  %v2602_v4 = vld [vmem:[#allocation8 + $0x938] sm:$0xff]  ;;  %v7366_v5 = vcombine.low %v2478_v16, %v2482_v38 }
 0x35a   : > { %v7487_v24 = vcombine.high %v2598_v3, %v2602_v4  ;;  %v7486_v18 = vcombine.low %v2598_v3, %v2602_v4  ;;  %v2678_v3 = vld [vmem:[#allocation8 + $0xb98] sm:$0xff] }
 0x35b   : > { %5901 = vmatpush2.bf16.msra.mxu1 %v7652_v6  ;;  %v2462_v6 = vld [vmem:[#allocation8 + $0x4d8] sm:$0xff] }
 0x35c   : > { %5942 = vmatpush2.bf16.msra.mxu0 %v7270_v8  ;;  %5902 = vmatprep.subr.bf16.mxu1 %v7645_v9  ;;  %v2466_v8 = vld [vmem:[#allocation8 + $0x4f8] sm:$0xff] }
 0x35d   : > { %5943 = vmatprep.subr.bf16.mxu0 %v7263_v11  ;;  %v2590_v9 = vld [vmem:[#allocation8 + $0x8d8] sm:$0xff]  ;;  %v7351_v21 = vcombine.high %v2462_v6, %v2466_v8 }
 0x35e   : > { %v2594_v11 = vld [vmem:[#allocation8 + $0x8f8] sm:$0xff] }
 0x35f   : > { %5903 = vmatpush2.bf16.msra.mxu1 %v7644_v22  ;;  %v7479_v10 = vcombine.high %v2590_v9, %v2594_v11  ;;  %v2454_v22 = vld [vmem:[#allocation8 + $0x498] sm:$0xff]  ;;  %v7478_v57 = vcombine.low %v2590_v9, %v2594_v11 }
 0x360   : > { %5944 = vmatpush2.bf16.msra.mxu0 %v7262_v23  ;;  %5954 = vmatprep.subr.bf16.mxu1 %v7383_v25  ;;  %v2458_v23 = vld [vmem:[#allocation8 + $0x4b8] sm:$0xff] }
 0x361   : > { %5995 = vmatprep.subr.bf16.mxu0 %v7511_v47  ;;  %v2582_v25 = vld [vmem:[#allocation8 + $0x898] sm:$0xff]  ;;  %v7350_v47 = vcombine.low %v2462_v6, %v2466_v8  ;;  %v7343_v27 = vcombine.high %v2454_v22, %v2458_v23 }
 0x362   : > { %v5660_v39 = vpop.f32.mrf.mxu1  ;;  %v5701_v44 = vpop.f32.mrf.mxu0  ;;  %5905 = vmatmul.mubr.bf16.vlgmr.msra.gmra.mxu1 %v8646_v19  ;;  %v7471_v28 = vcombine.high %v2582_v25, %v2586_v46  ;;  %v2682_v4 = vld [vmem:[#allocation8 + $0xbb8] sm:$0xff] }
 0x363   : > { %v5661_v53 = vadd.f32 %v5660_v39, %v5620_v34  ;;  %5946 = vmatmul.mubr.bf16.vlgmr.msra.gmra.mxu0 %v8601_v7  ;;  %5955 = vmatpush1.bf16.msra.mxu1 %v7382_v30  ;;  %v2446_v30 = vld [vmem:[#allocation8 + $0x458] sm:$0xff]  ;;  %v7342_v34 = vcombine.low %v2454_v22, %v2458_v23  ;;  %v7566_v11 = vcombine.low %v2678_v3, %v2682_v4 }
 0x364   : > { %5986 = vmatprep.mubr.bf16.mxu1 %v8607_v43  ;;  %5996 = vmatpush1.bf16.msra.mxu0 %v7510_v33  ;;  %v5662_v40 = vpop.f32.mrf.mxu1  ;;  %v5703_v60 = vpop.f32.mrf.mxu0  ;;  %v2578_v33 = vld [vmem:[#allocation8 + $0x878] sm:$0xff]  ;;  %v7335_v16 = vcombine.high %v2446_v30, %v2450_v31  ;;  %v7334_v2 = vcombine.low %v2446_v30, %v2450_v31 }
 0x365   : > { %v8705_v63 = vadd.f32 %v5701_v44, %v5661_v53  ;;  %6027 = vmatprep.mubr.bf16.mxu0 %v8631_v12  ;;  %v5663_v58 = vadd.f32 %v5662_v40, %v5622_v50  ;;  %5956 = vmatprep.subr.bf16.mxu1 %v7375_v36  ;;  %v7359_v12 = vcombine.high %v2470_v55, %v2474_v0  ;;  %v2438_v39 = vld [vmem:[#allocation8 + $0x418] sm:$0xff] }
 0x366   : > { %v5664_v54 = vpop.f32.mrf.mxu1  ;;  %v5705_v7 = vpop.f32.mrf.mxu0  ;;  %5997 = vmatprep.subr.bf16.mxu0 %v7503_v45  ;;  %v7470_v36 = vcombine.low %v2582_v25, %v2586_v46  ;;  %v7463_v38 = vcombine.high %v2574_v32, %v2578_v33  ;;  %v2442_v44 = vld [vmem:[#allocation8 + $0x438] sm:$0xff]  ;;  %v7462_v50 = vcombine.low %v2574_v32, %v2578_v33 }
 0x367   : > { %v8708_v43 = vadd.f32 %v5703_v60, %v5663_v58  ;;  %5957 = vmatpush1.bf16.msra.mxu1 %v7374_v56  ;;  %v2566_v45 = vld [vmem:[#allocation8 + $0x818] sm:$0xff]  ;;  %v7327_v53 = vcombine.high %v2438_v39, %v2442_v44  ;;  %v7326_v58 = vcombine.low %v2438_v39, %v2442_v44 }
 0x368   : > { %5998 = vmatpush1.bf16.msra.mxu0 %v7502_v51  ;;  %v5665_v37 = vpop.f32.mrf.mxu1  ;;  %v5706_v41 = vpop.f32.mrf.mxu0  ;;  %5958 = vmatprep.subr.bf16.mxu1 %v7367_v62  ;;  %v7455_v56 = vcombine.high %v2566_v45, %v2570_v49  ;;  %v2558_v40 = vld [vmem:[#allocation8 + $0x7d8] sm:$0xff] }
 0x369   : > { %5999 = vmatprep.subr.bf16.mxu0 %v7495_v59  ;;  %v2562_v60 = vld [vmem:[#allocation8 + $0x7f8] sm:$0xff]  ;;  %v7454_v59 = vcombine.low %v2566_v45, %v2570_v49 }
 0x36a   : > { %v2686_v51 = vld [vmem:[#allocation8 + $0xbd8] sm:$0xff]  ;;  %v7447_v55 = vcombine.high %v2558_v40, %v2562_v60 }
 0x36b   : > { %5959 = vmatpush1.bf16.msra.mxu1 %v7366_v5  ;;  %v2690_v62 = vld [vmem:[#allocation8 + $0xbf8] sm:$0xff]  ;;  %v7446_v5 = vcombine.low %v2558_v40, %v2562_v60 }
 0x36c   : > { %6000 = vmatpush1.bf16.msra.mxu0 %v7494_v14  ;;  %5960 = vmatprep.subr.bf16.mxu1 %v7359_v12  ;;  %v7575_v0 = vcombine.high %v2686_v51, %v2690_v62  ;;  %v2550_v54 = vld [vmem:[#allocation8 + $0x798] sm:$0xff]  ;;  %v7574_v37 = vcombine.low %v2686_v51, %v2690_v62  ;;  %v7567_v14 = vcombine.high %v2678_v3, %v2682_v4 }
 0x36d   : > { %6001 = vmatprep.subr.bf16.mxu0 %v7487_v24  ;;  %v2554_v7 = vld [vmem:[#allocation8 + $0x7b8] sm:$0xff] }
 0x36e   : > { %v7439_v41 = vcombine.high %v2550_v54, %v2554_v7  ;;  %v2542_v12 = vld [vmem:[#allocation8 + $0x758] sm:$0xff]  ;;  %v7438_v9 = vcombine.low %v2550_v54, %v2554_v7 }
 0x36f   : > { %5961 = vmatpush1.bf16.msra.mxu1 %v7358_v13  ;;  %v2546_v24 = vld [vmem:[#allocation8 + $0x778] sm:$0xff] }
 0x370   : > { %6002 = vmatpush1.bf16.msra.mxu0 %v7486_v18  ;;  %5962 = vmatprep.subr.bf16.mxu1 %v7351_v21  ;;  %v2670_v6 = vld [vmem:[#allocation8 + $0xb58] sm:$0xff]  ;;  %v7431_v13 = vcombine.high %v2542_v12, %v2546_v24  ;;  %v7430_v25 = vcombine.low %v2542_v12, %v2546_v24 }
 0x371   : > { %6003 = vmatprep.subr.bf16.mxu0 %v7479_v10  ;;  %v2674_v8 = vld [vmem:[#allocation8 + $0xb78] sm:$0xff] }
 0x372   : > { %v7559_v18 = vcombine.high %v2670_v6, %v2674_v8  ;;  %v2534_v21 = vld [vmem:[#allocation8 + $0x718] sm:$0xff]  ;;  %v7558_v46 = vcombine.low %v2670_v6, %v2674_v8  ;;  %v7973_v8 = vld [vmem:[#allocation11 + $0x78] sm:$0xff]  }
 0x373   : > { %5963 = vmatpush1.bf16.msra.mxu1 %v7350_v47  ;;  %v2538_v10 = vld [vmem:[#allocation8 + $0x738] sm:$0xff] }
 0x374   : > { %6004 = vmatpush1.bf16.msra.mxu0 %v7478_v57  ;;  %5964 = vmatprep.subr.bf16.mxu1 %v7343_v27  ;;  %v2662_v22 = vld [vmem:[#allocation8 + $0xb18] sm:$0xff]  ;;  %v7423_v47 = vcombine.high %v2534_v21, %v2538_v10  ;;  %v7422_v32 = vcombine.low %v2534_v21, %v2538_v10  ;;  %v7974_v21 = vld [vmem:[#allocation11 + $0x38] sm:$0xff]  }
 0x375   : > { %6005 = vmatprep.subr.bf16.mxu0 %v7471_v28  ;;  %v2666_v23 = vld [vmem:[#allocation8 + $0xb38] sm:$0xff] }
 0x376   : > { %v7551_v57 = vcombine.high %v2662_v22, %v2666_v23  ;;  %v2526_v27 = vld [vmem:[#allocation8 + $0x6d8] sm:$0xff]  ;;  %v7550_v33 = vcombine.low %v2662_v22, %v2666_v23 }
 0x377   : > { %5965 = vmatpush1.bf16.msra.mxu1 %v7342_v34  ;;  %v2530_v28 = vld [vmem:[#allocation8 + $0x6f8] sm:$0xff] }
 0x378   : > { %6006 = vmatpush1.bf16.msra.mxu0 %v7470_v36  ;;  %5966 = vmatprep.subr.bf16.mxu1 %v7335_v16  ;;  %v2654_v30 = vld [vmem:[#allocation8 + $0xad8] sm:$0xff]  ;;  %v7415_v34 = vcombine.high %v2526_v27, %v2530_v28  ;;  %v7414_v45 = vcombine.low %v2526_v27, %v2530_v28 }
 0x379   : > { %6007 = vmatprep.subr.bf16.mxu0 %v7463_v38  ;;  %v2658_v31 = vld [vmem:[#allocation8 + $0xaf8] sm:$0xff] }
 0x37a   : > { %v7543_v36 = vcombine.high %v2654_v30, %v2658_v31  ;;  %v2518_v16 = vld [vmem:[#allocation8 + $0x698] sm:$0xff]  ;;  %v7542_v49 = vcombine.low %v2654_v30, %v2658_v31 }
 0x37b   : > { %5967 = vmatpush1.bf16.msra.mxu1 %v7334_v2  ;;  %v2522_v38 = vld [vmem:[#allocation8 + $0x6b8] sm:$0xff] }
 0x37c   : > { %6008 = vmatpush1.bf16.msra.mxu0 %v7462_v50  ;;  %5968 = vmatprep.subr.bf16.mxu1 %v7327_v53  ;;  %v2646_v39 = vld [vmem:[#allocation8 + $0xa98] sm:$0xff]  ;;  %v7407_v2 = vcombine.high %v2518_v16, %v2522_v38  ;;  %v7406_v51 = vcombine.low %v2518_v16, %v2522_v38 }
 0x37d   : > { %6009 = vmatprep.subr.bf16.mxu0 %v7455_v56  ;;  %v2650_v44 = vld [vmem:[#allocation8 + $0xab8] sm:$0xff] }
 0x37e   : > { %v7535_v50 = vcombine.high %v2646_v39, %v2650_v44  ;;  %v2510_v53 = vld [vmem:[#allocation8 + $0x658] sm:$0xff]  ;;  %v7534_v62 = vcombine.low %v2646_v39, %v2650_v44  ;;  %v7979_v44 = vld [vmem:[#allocation11 + $0x60] sm:$0xff]  }
 0x37f   : > { %5969 = vmatpush1.bf16.msra.mxu1 %v7326_v58  ;;  %v2514_v56 = vld [vmem:[#allocation8 + $0x678] sm:$0xff] }
 0x380   : > { %6010 = vmatpush1.bf16.msra.mxu0 %v7454_v59  ;;  %5970 = vmatprep.subr.bf16.mxu1 %v7447_v55  ;;  %v2638_v40 = vld [vmem:[#allocation8 + $0xa58] sm:$0xff]  ;;  %v7399_v58 = vcombine.high %v2510_v53, %v2514_v56  ;;  %v7398_v3 = vcombine.low %v2510_v53, %v2514_v56  ;;  %v7981_v56 = vld [vmem:[#allocation11 + $0x58] sm:$0xff]  }
 0x381   : > { %6011 = vmatprep.subr.bf16.mxu0 %v7575_v0  ;;  %v2642_v60 = vld [vmem:[#allocation8 + $0xa78] sm:$0xff] }
 0x382   : > { %v7527_v59 = vcombine.high %v2638_v40, %v2642_v60  ;;  %v2502_v55 = vld [vmem:[#allocation8 + $0x618] sm:$0xff]  ;;  %v7526_v4 = vcombine.low %v2638_v40, %v2642_v60 }
 0x383   : > { %5971 = vmatpush2.bf16.msra.mxu1 %v7446_v5  ;;  %v2506_v0 = vld [vmem:[#allocation8 + $0x638] sm:$0xff] }
 0x384   : > { %6012 = vmatpush2.bf16.msra.mxu0 %v7574_v37  ;;  %5972 = vmatprep.subr.bf16.mxu1 %v7439_v41  ;;  %v2630_v54 = vld [vmem:[#allocation8 + $0xa18] sm:$0xff]  ;;  %v7391_v5 = vcombine.high %v2502_v55, %v2506_v0  ;;  %v7390_v12 = vcombine.low %v2502_v55, %v2506_v0 }
 0x385   : > { %6013 = vmatprep.subr.bf16.mxu0 %v7567_v14  ;;  %v2634_v7 = vld [vmem:[#allocation8 + $0xa38] sm:$0xff] }
 0x386   : > { %v7519_v37 = vcombine.high %v2630_v54, %v2634_v7  ;;  %v2750_v41 = vld [vmem:[#allocation8 + $0xdd8] sm:$0xff]  ;;  %v7518_v24 = vcombine.low %v2630_v54, %v2634_v7 }
 0x387   : > { %5973 = vmatpush2.bf16.msra.mxu1 %v7438_v9  ;;  %v2754_v14 = vld [vmem:[#allocation8 + $0xdf8] sm:$0xff] }
 0x388   : > { %6014 = vmatpush2.bf16.msra.mxu0 %v7566_v11  ;;  %5974 = vmatprep.subr.bf16.mxu1 %v7431_v13  ;;  %v7639_v6 = vcombine.high %v2750_v41, %v2754_v14  ;;  %v2742_v9 = vld [vmem:[#allocation8 + $0xd98] sm:$0xff]  ;;  %v6078_v13 = vmax.f32 %v8690_v61, 0.0 }
 0x389   : > { %6015 = vmatprep.subr.bf16.mxu0 %v7559_v18  ;;  %v2746_v11 = vld [vmem:[#allocation8 + $0xdb8] sm:$0xff]  ;;  %v7638_v18 = vcombine.low %v2750_v41, %v2754_v14  ;;  %v7986_v14 = vld [vmem:[#allocation11 + $0x8] sm:$0xff]  }
 0x38a   : > { %v7631_v10 = vcombine.high %v2742_v9, %v2746_v11  ;;  %v2734_v22 = vld [vmem:[#allocation8 + $0xd58] sm:$0xff]  ;;  %v7630_v61 = vcombine.low %v2742_v9, %v2746_v11  ;;  %v7988_v11 = vld [vmem:[#allocation11] sm:$0xff]  }
 0x38b   : > { %5975 = vmatpush2.bf16.msra.mxu1 %v7430_v25  ;;  %v2738_v23 = vld [vmem:[#allocation8 + $0xd78] sm:$0xff] }
 0x38c   : > { %6016 = vmatpush2.bf16.msra.mxu0 %v7558_v46  ;;  %5976 = vmatprep.subr.bf16.mxu1 %v7423_v47  ;;  %v7975_v46 = vld [vmem:[#allocation11 + $0x70] sm:$0xff]   ;;  %v6086_v47 = vpack.c.bf16 %v6078_v13, %v6078_v13  ;;  %v7623_v31 = vcombine.high %v2734_v22, %v2738_v23 }
 0x38d   : > { %6017 = vmatprep.subr.bf16.mxu0 %v7551_v57  ;;  %v7976_v30 = vld [vmem:[#allocation11 + $0x30] sm:$0xff]  }
 0x38e   : > { %v2710_v40 = vld [vmem:[#allocation8 + $0xc98] sm:$0xff] }
 0x38f   : > { %5977 = vmatpush2.bf16.msra.mxu1 %v7422_v32  ;;  %v7977_v32 = vld [vmem:[#allocation11 + $0x68] sm:$0xff]   ;;  %v2714_v60 = vld [vmem:[#allocation8 + $0xcb8] sm:$0xff] }
 0x390   : > { %6018 = vmatpush2.bf16.msra.mxu0 %v7550_v33  ;;  %5978 = vmatprep.subr.bf16.mxu1 %v7415_v34  ;;  %v2730_v33 = vld [vmem:[#allocation8 + $0xd38] sm:$0xff]  ;;  %v7598_v54 = vcombine.low %v2710_v40, %v2714_v60 }
 0x391   : > { %6019 = vmatprep.subr.bf16.mxu0 %v7543_v36  ;;  %v2702_v55 = vld [vmem:[#allocation8 + $0xc58] sm:$0xff] }
 0x392   : > { %v2706_v0 = vld [vmem:[#allocation8 + $0xc78] sm:$0xff] }
 0x393   : > { %5979 = vmatpush2.bf16.msra.mxu1 %v7414_v45  ;;  %v2718_v45 = vld [vmem:[#allocation8 + $0xcd8] sm:$0xff]  ;;  %v7590_v41 = vcombine.low %v2702_v55, %v2706_v0 }
 0x394   : > { %6020 = vmatpush2.bf16.msra.mxu0 %v7542_v49  ;;  %5980 = vmatprep.subr.bf16.mxu1 %v7407_v2  ;;  %v2722_v49 = vld [vmem:[#allocation8 + $0xcf8] sm:$0xff] }
 0x395   : > { %6021 = vmatprep.subr.bf16.mxu0 %v7535_v50  ;;  %v7980_v50 = vld [vmem:[#allocation11 + $0x20] sm:$0xff]   ;;  %v7607_v53 = vcombine.high %v2718_v45, %v2722_v49  ;;  %v7984_v7 = vld [vmem:[#allocation11 + $0x10] sm:$0xff]  }
 0x397   : > { %5981 = vmatpush2.bf16.msra.mxu1 %v7406_v51  ;;  %v7606_v51 = vcombine.low %v2718_v45, %v2722_v49 }
 0x398   : > { %6022 = vmatpush2.bf16.msra.mxu0 %v7534_v62  ;;  %5982 = vmatprep.subr.bf16.mxu1 %v7399_v58  ;;  %v7982_v62 = vld [vmem:[#allocation11 + $0x18] sm:$0xff]   ;;  %v7599_v58 = vcombine.high %v2710_v40, %v2714_v60 }
 0x399   : > { %6023 = vmatprep.subr.bf16.mxu0 %v7527_v59  ;;  %v7983_v59 = vld [vmem:[#allocation11 + $0x50] sm:$0xff]  }
 0x39b   : > { %5983 = vmatpush2.bf16.msra.mxu1 %v7398_v3  ;;  %v7591_v3 = vcombine.high %v2702_v55, %v2706_v0 }
 0x39c   : > { %6024 = vmatpush2.bf16.msra.mxu0 %v7526_v4  ;;  %5984 = vmatprep.subr.bf16.mxu1 %v7391_v5  ;;  %v7985_v4 = vld [vmem:[#allocation11 + $0x48] sm:$0xff]   ;;  %v2694_v5 = vld [vmem:[#allocation8 + $0xc18] sm:$0xff] }
 0x39d   : > { %6025 = vmatprep.subr.bf16.mxu0 %v7519_v37  ;;  %v2698_v37 = vld [vmem:[#allocation8 + $0xc38] sm:$0xff] }
 0x39e   : > { %v7582_v9 = vcombine.low %v2694_v5, %v2698_v37 }
 0x39f   : > { %5985 = vmatpush2.bf16.msra.mxu1 %v7390_v12  ;;  %v7583_v12 = vcombine.high %v2694_v5, %v2698_v37 }
 0x3a0   : > { %6026 = vmatpush2.bf16.msra.mxu0 %v7518_v24  ;;  %6036 = vmatprep.subr.bf16.mxu1 %v7639_v6  ;;  %v7987_v24 = vld [vmem:[#allocation11 + $0x40] sm:$0xff]   ;;  %v2814_v6 = vld [vmem:[#allocation8 + $0xfd8] sm:$0xff] }
 0x3a1   : > { %7774 = vmatprep.subr.bf16.mxu0 %v7973_v8  ;;  %v2818_v8 = vld [vmem:[#allocation8 + $0xff8] sm:$0xff] }
 0x3a2   : > { %v5742_v25 = vpop.f32.mrf.mxu1  ;;  %5987 = vmatmul.mubr.bf16.vlgmr.msra.gmra.mxu1 %v8615_v48  ;;  %v7703_v13 = vcombine.high %v2814_v6, %v2818_v8 }
 0x3a3   : > { %v8713_v57 = vadd.f32 %v5742_v25, %v8705_v63  ;;  %v8715_v27 = vpop.f32.mrf.mxu0  ;;  %6028 = vmatmul.mubr.bf16.vlgmr.msra.gmra.mxu0 %v8633_v15  ;;  %6037 = vmatpush1.bf16.msra.mxu1 %v7638_v18  ;;  %v2726_v63 = vld [vmem:[#allocation8 + $0xd18] sm:$0xff]  ;;  %v7622_v15 = vcombine.low %v2734_v22, %v2738_v23  ;;  %v6077_v18 = vmax.f32 %v8683_v52, 0.0  ;;  %v8005_v22 = vld [vmem:[#allocation11 + $0x178] sm:$0xff]   ;;  %v7702_v23 = vcombine.low %v2814_v6, %v2818_v8  ;;  %v8020_v8 = vld [vmem:[#allocation11 + $0x100] sm:$0xff]  }
 0x3a4   : > { %6068 = vmatprep.mubr.bf16.mxu1 %v8644_v1  ;;  %7775 = vmatpush3.bf16.msra.mxu0 %v7974_v21  ;;  %v8719_v28 = vpop.f32.mrf.mxu1  ;;  %v7978_v1 = vld [vmem:[#allocation11 + $0x28] sm:$0xff]   ;;  %v7615_v38 = vcombine.high %v2726_v63, %v2730_v33  ;;  %v7614_v2 = vcombine.low %v2726_v63, %v2730_v33  ;;  %v2806_v21 = vld [vmem:[#allocation8 + $0xf98] sm:$0xff]  ;;  %v7989_v6 = vld [vmem:[#allocation11 + $0xf8] sm:$0xff]  }
 0x3a5   : > { %6644 = vmatprep.mubr.bf16.mxu0 %v6086_v47  ;;  %v8721_v48 = vpop.f32.mrf.mxu0  ;;  %6038 = vmatprep.subr.bf16.mxu1 %v7631_v10  ;;  %v2810_v10 = vld [vmem:[#allocation8 + $0xfb8] sm:$0xff]  ;;  %v6085_v47 = vpack.c.bf16 %v6077_v18, %v6077_v18 }
 0x3a6   : > { %v5746_v34 = vpop.f32.mrf.mxu1  ;;  %7776 = vmatprep.subr.bf16.mxu0 %v7975_v46  ;;  %v7695_v25 = vcombine.high %v2806_v21, %v2810_v10  ;;  %v8006_v46 = vld [vmem:[#allocation11 + $0x138] sm:$0xff]   ;;  %v8008_v63 = vld [vmem:[#allocation11 + $0x130] sm:$0xff]  }
 0x3a7   : > { %v5787_v36 = vpop.f32.mrf.mxu0  ;;  %6039 = vmatpush1.bf16.msra.mxu1 %v7630_v61  ;;  %v2798_v61 = vld [vmem:[#allocation8 + $0xf58] sm:$0xff] }
 0x3a8   : > { %7777 = vmatpush3.bf16.msra.mxu0 %v7976_v30  ;;  %v5747_v16 = vpop.f32.mrf.mxu1  ;;  %6040 = vmatprep.subr.bf16.mxu1 %v7623_v31  ;;  %v2802_v30 = vld [vmem:[#allocation8 + $0xf78] sm:$0xff]  ;;  %v8009_v36 = vld [vmem:[#allocation11 + $0x168] sm:$0xff]  }
 0x3a9   : > { %v5788_v39 = vpop.f32.mrf.mxu0  ;;  %7778 = vmatprep.subr.bf16.mxu0 %v7977_v32  ;;  %v8007_v31 = vld [vmem:[#allocation11 + $0x170] sm:$0xff]   ;;  %v7694_v32 = vcombine.low %v2806_v21, %v2810_v10  ;;  %v7687_v52 = vcombine.high %v2798_v61, %v2802_v30 }
 0x3aa   : > { %v2790_v33 = vld [vmem:[#allocation8 + $0xf18] sm:$0xff] }
 0x3ab   : > { %6041 = vmatpush1.bf16.msra.mxu1 %v7622_v15  ;;  %v2794_v34 = vld [vmem:[#allocation8 + $0xf38] sm:$0xff]  ;;  %v7686_v15 = vcombine.low %v2798_v61, %v2802_v30 }
 0x3ac   : > { %7779 = vmatpush3.bf16.msra.mxu0 %v7978_v1  ;;  %6042 = vmatprep.subr.bf16.mxu1 %v7615_v38  ;;  %v7679_v16 = vcombine.high %v2790_v33, %v2794_v34  ;;  %v8010_v1 = vld [vmem:[#allocation11 + $0x128] sm:$0xff]   ;;  %v2782_v38 = vld [vmem:[#allocation8 + $0xed8] sm:$0xff]  ;;  %v7678_v45 = vcombine.low %v2790_v33, %v2794_v34  ;;  %v7998_v33 = vld [vmem:[#allocation11 + $0x98] sm:$0xff]  }
 0x3ad   : > { %7780 = vmatprep.subr.bf16.mxu0 %v7979_v44  ;;  %v2786_v39 = vld [vmem:[#allocation8 + $0xef8] sm:$0xff]  ;;  %v8011_v44 = vld [vmem:[#allocation11 + $0x160] sm:$0xff]  }
 0x3ae   : > { %v7671_v49 = vcombine.high %v2782_v38, %v2786_v39  ;;  %v7670_v40 = vcombine.low %v2782_v38, %v2786_v39  ;;  %v7991_v18 = vld [vmem:[#allocation11 + $0xf0] sm:$0xff]   ;;  %v8004_v38 = vld [vmem:[#allocation11 + $0x80] sm:$0xff]   ;;  %v6079_v39 = vmax.f32 %v8713_v57, 0.0  ;;  %v8029_v57 = vld [vmem:[#allocation11 + $0x1d8] sm:$0xff]  }
 0x3af   : > { %6043 = vmatpush1.bf16.msra.mxu1 %v7614_v2  ;;  %v8012_v2 = vld [vmem:[#allocation11 + $0x120] sm:$0xff]   ;;  %v7999_v34 = vld [vmem:[#allocation11 + $0xd0] sm:$0xff]  }
 0x3b0   : > { %7781 = vmatpush3.bf16.msra.mxu0 %v7980_v50  ;;  %6044 = vmatprep.subr.bf16.mxu1 %v7607_v53  ;;  %v2774_v50 = vld [vmem:[#allocation8 + $0xe98] sm:$0xff] }
 0x3b1   : > { %7782 = vmatprep.subr.bf16.mxu0 %v7981_v56  ;;  %v2778_v53 = vld [vmem:[#allocation8 + $0xeb8] sm:$0xff]  ;;  %v8013_v56 = vld [vmem:[#allocation11 + $0x158] sm:$0xff]  }
 0x3b2   : > { %v7663_v60 = vcombine.high %v2774_v50, %v2778_v53  ;;  %v7662_v55 = vcombine.low %v2774_v50, %v2778_v53  ;;  %v8024_v50 = vld [vmem:[#allocation11 + $0x1b0] sm:$0xff]   ;;  %v8025_v53 = vld [vmem:[#allocation11 + $0x1e8] sm:$0xff]  }
 0x3b3   : > { %6045 = vmatpush1.bf16.msra.mxu1 %v7606_v51  ;;  %v8014_v51 = vld [vmem:[#allocation11 + $0x118] sm:$0xff]  }
 0x3b4   : > { %7783 = vmatpush3.bf16.msra.mxu0 %v7982_v62  ;;  %6046 = vmatprep.subr.bf16.mxu1 %v7599_v58  ;;  %v2766_v62 = vld [vmem:[#allocation8 + $0xe58] sm:$0xff] }
 0x3b5   : > { %7784 = vmatprep.subr.bf16.mxu0 %v7983_v59  ;;  %v2770_v58 = vld [vmem:[#allocation8 + $0xe78] sm:$0xff] }
 0x3b6   : > { %v8015_v59 = vld [vmem:[#allocation11 + $0x150] sm:$0xff]   ;;  %v7655_v0 = vcombine.high %v2766_v62, %v2770_v58  ;;  %v7654_v5 = vcombine.low %v2766_v62, %v2770_v58  ;;  %v2844_v62 = vrot.slane %v8692_v26, %v665_v42 }
 0x3b7   : > { %6047 = vmatpush1.bf16.msra.mxu1 %v7598_v54  ;;  %v8016_v54 = vld [vmem:[#allocation11 + $0x110] sm:$0xff]  }
 0x3b8   : > { %7785 = vmatpush3.bf16.msra.mxu0 %v7984_v7  ;;  %6048 = vmatprep.subr.bf16.mxu1 %v7591_v3  ;;  %v2758_v7 = vld [vmem:[#allocation8 + $0xe18] sm:$0xff] }
 0x3b9   : > { %7786 = vmatprep.subr.bf16.mxu0 %v7985_v4  ;;  %v2762_v3 = vld [vmem:[#allocation8 + $0xe38] sm:$0xff]  ;;  %v8017_v4 = vld [vmem:[#allocation11 + $0x148] sm:$0xff]  }
 0x3ba   : > { %v7647_v37 = vcombine.high %v2758_v7, %v2762_v3  ;;  %v8031_v58 = vld [vmem:[#allocation11 + $0x1d0] sm:$0xff]  }
 0x3bb   : > { %6049 = vmatpush1.bf16.msra.mxu1 %v7590_v41  ;;  %v8018_v41 = vld [vmem:[#allocation11 + $0x108] sm:$0xff]  }
 0x3bc   : > { %7787 = vmatpush3.bf16.msra.mxu0 %v7986_v14  ;;  %6050 = vmatprep.subr.bf16.mxu1 %v7583_v12  ;;  %v5745_v14 = vadd.f32 %v8719_v28, %v8708_v43  ;;  %v8019_v12 = vld [vmem:[#allocation11 + $0x140] sm:$0xff]  }
 0x3bd   : > { %7788 = vmatprep.subr.bf16.mxu0 %v7987_v24  ;;  %v7646_v24 = vcombine.low %v2758_v7, %v2762_v3 }
 0x3bf   : > { %6051 = vmatpush1.bf16.msra.mxu1 %v7582_v9  ;;  %v2840_v9 = vrot.slane %v8692_v26, %v661_v35  ;;  %v7993_v35 = vld [vmem:[#allocation11 + $0xe8] sm:$0xff]  }
 0x3c0   : > { %7789 = vmatpush3.bf16.msra.mxu0 %v7988_v11  ;;  %6052 = vmatprep.subr.bf16.mxu1 %v7703_v13  ;;  %v6080_v11 = vmax.f32 %v5745_v14, 0.0  ;;  %v7990_v13 = vld [vmem:[#allocation11 + $0xb8] sm:$0xff]  }
 0x3c1   : > { %7818 = vmatprep.subr.bf16.mxu0 %v8005_v22  ;;  %v5784_v43 = vadd.f32 %v8715_v27, %v2840_v9  ;;  %v7995_v27 = vld [vmem:[#allocation11 + $0xe0] sm:$0xff]  }
 0x3c2   : > { %v6088_v28 = vpack.c.bf16 %v6080_v11, %v6080_v11 }
 0x3c3   : > { %6645 = vmatmul.mubr.bf16.vlgmr.msra.gmra.mxu0 %v6085_v47  ;;  %6053 = vmatpush2.bf16.msra.mxu1 %v7702_v23  ;;  %v7992_v23 = vld [vmem:[#allocation11 + $0xb0] sm:$0xff]  }
 0x3c4   : > { %6054 = vmatprep.subr.bf16.mxu1 %v7695_v25  ;;  %7819 = vmatpush3.bf16.msra.mxu0 %v8006_v46 }
 0x3c5   : > { %7820 = vmatprep.subr.bf16.mxu0 %v8007_v31  ;;  %v7994_v31 = vld [vmem:[#allocation11 + $0xa8] sm:$0xff]  }
 0x3c7   : > { %6055 = vmatpush2.bf16.msra.mxu1 %v7694_v32 }
 0x3c8   : > { %6056 = vmatprep.subr.bf16.mxu1 %v7687_v52  ;;  %7821 = vmatpush3.bf16.msra.mxu0 %v8008_v63  ;;  %v7997_v63 = vld [vmem:[#allocation11 + $0xd8] sm:$0xff]  }
 0x3c9   : > { %7822 = vmatprep.subr.bf16.mxu0 %v8009_v36  ;;  %v8000_v36 = vld [vmem:[#allocation11 + $0x90] sm:$0xff]  }
 0x3cb   : > { %6057 = vmatpush2.bf16.msra.mxu1 %v7686_v15  ;;  %v8001_v15 = vld [vmem:[#allocation11 + $0xc8] sm:$0xff]  }
 0x3cc   : > { %6058 = vmatprep.subr.bf16.mxu1 %v7679_v16  ;;  %7823 = vmatpush3.bf16.msra.mxu0 %v8010_v1  ;;  %v8002_v16 = vld [vmem:[#allocation11 + $0x88] sm:$0xff]   ;;  %v8003_v1 = vld [vmem:[#allocation11 + $0xc0] sm:$0xff]  }
 0x3cd   : > { %7824 = vmatprep.subr.bf16.mxu0 %v8011_v44  ;;  %v6087_v44 = vpack.c.bf16 %v6079_v39, %v6079_v39 }
 0x3cf   : > { %6059 = vmatpush2.bf16.msra.mxu1 %v7678_v45  ;;  %v8021_v45 = vld [vmem:[#allocation11 + $0x1f8] sm:$0xff]  }
 0x3d0   : > { %6060 = vmatprep.subr.bf16.mxu1 %v7671_v49  ;;  %7825 = vmatpush3.bf16.msra.mxu0 %v8012_v2  ;;  %v8022_v49 = vld [vmem:[#allocation11 + $0x1b8] sm:$0xff]   ;;  %v8023_v2 = vld [vmem:[#allocation11 + $0x1f0] sm:$0xff]  }
 0x3d1   : > { %7826 = vmatprep.subr.bf16.mxu0 %v8013_v56  ;;  %v8026_v56 = vld [vmem:[#allocation11 + $0x1a8] sm:$0xff]  }
 0x3d3   : > { %6061 = vmatpush2.bf16.msra.mxu1 %v7670_v40  ;;  %v8027_v40 = vld [vmem:[#allocation11 + $0x1e0] sm:$0xff]  }
 0x3d4   : > { %6062 = vmatprep.subr.bf16.mxu1 %v7663_v60  ;;  %7827 = vmatpush3.bf16.msra.mxu0 %v8014_v51  ;;  %v8028_v60 = vld [vmem:[#allocation11 + $0x1a0] sm:$0xff]   ;;  %v8030_v51 = vld [vmem:[#allocation11 + $0x198] sm:$0xff]  }
 0x3d5   : > { %7828 = vmatprep.subr.bf16.mxu0 %v8015_v59  ;;  %v8032_v59 = vld [vmem:[#allocation11 + $0x190] sm:$0xff]  }
 0x3d7   : > { %6063 = vmatpush2.bf16.msra.mxu1 %v7662_v55  ;;  %v5786_v55 = vadd.f32 %v8721_v48, %v2844_v62  ;;  %v8035_v48 = vld [vmem:[#allocation11 + $0x1c0] sm:$0xff]  }
 0x3d8   : > { %6064 = vmatprep.subr.bf16.mxu1 %v7655_v0  ;;  %7829 = vmatpush3.bf16.msra.mxu0 %v8016_v54 }
 0x3d9   : > { %7830 = vmatprep.subr.bf16.mxu0 %v8017_v4 }
 0x3db   : > { %6065 = vmatpush2.bf16.msra.mxu1 %v7654_v5 }
 0x3dc   : > { %6066 = vmatprep.subr.bf16.mxu1 %v7647_v37  ;;  %7831 = vmatpush3.bf16.msra.mxu0 %v8018_v41  ;;  %v8033_v37 = vld [vmem:[#allocation11 + $0x1c8] sm:$0xff]  }
 0x3dd   : > { %7832 = vmatprep.subr.bf16.mxu0 %v8019_v12  ;;  %v8034_v12 = vld [vmem:[#allocation11 + $0x188] sm:$0xff]  }
 0x3df   : > { %6067 = vmatpush2.bf16.msra.mxu1 %v7646_v24 }
 0x3e0   : > { %7796 = vmatprep.subr.bf16.mxu1 %v7989_v6  ;;  %7833 = vmatpush3.bf16.msra.mxu0 %v8020_v8 }
 0x3e2   : > { %v5824_v21 = vpop.f32.mrf.mxu1  ;;  %6069 = vmatmul.mubr.bf16.vlgmr.msra.gmra.mxu1 %v8646_v19  ;;  %v7996_v19 = vld [vmem:[#allocation11 + $0xa0] sm:$0xff]  }
 0x3e3   : > { %v5825_v10 = vadd.f32 %v5824_v21, %v5784_v43  ;;  %v5865_v22 = vpop.f32.mrf.mxu0  ;;  %7797 = vmatpush3.bf16.msra.mxu1 %v7990_v13  ;;  %6684 = vmatprep.mubr.bf16.mxu1 %v6088_v28  ;;  %v2848_v28 = vrot.slane %v8692_v26, %v669_v17  ;;  %v2852_v17 = vrot.slane %v8692_v26, %v673_v20 }
 0x3e4   : > { %v5826_v25 = vpop.f32.mrf.mxu1  ;;  %7798 = vmatprep.subr.bf16.mxu1 %v7991_v18  ;;  %v8036_v18 = vld [vmem:[#allocation11 + $0x180] sm:$0xff]  }
 0x3e5   : > { %v5866_v46 = vadd.f32 %v5865_v22, %v5825_v10  ;;  %v5867_v47 = vpop.f32.mrf.mxu0  ;;  %v5827_v0 = vadd.f32 %v5826_v25, %v5786_v55 }
 0x3e6   : > { %v5828_v61 = vpop.f32.mrf.mxu1 }
 0x3e7   : > { %v5869_v30 = vpop.f32.mrf.mxu0  ;;  %7799 = vmatpush3.bf16.msra.mxu1 %v7992_v23  ;;  %v5868_v7 = vadd.f32 %v5867_v47, %v5827_v0 }
 0x3e8   : > { %v5829_v32 = vpop.f32.mrf.mxu1  ;;  %7800 = vmatprep.subr.bf16.mxu1 %v7993_v35 }
 0x3e9   : > { %v5870_v52 = vpop.f32.mrf.mxu0 }
 0x3eb   : > { %7801 = vmatpush3.bf16.msra.mxu1 %v7994_v31 }
 0x3ec   : > { %7802 = vmatprep.subr.bf16.mxu1 %v7995_v27 }
 0x3ef   : > { %7803 = vmatpush3.bf16.msra.mxu1 %v7996_v19 }
 0x3f0   : > { %7804 = vmatprep.subr.bf16.mxu1 %v7997_v63 }
 0x3f3   : > { %7805 = vmatpush3.bf16.msra.mxu1 %v7998_v33 }
 0x3f4   : > { %7806 = vmatprep.subr.bf16.mxu1 %v7999_v34 }
 0x3f7   : > { %7807 = vmatpush3.bf16.msra.mxu1 %v8000_v36 }
 0x3f8   : > { %7808 = vmatprep.subr.bf16.mxu1 %v8001_v15 }
 0x3fb   : > { %7809 = vmatpush3.bf16.msra.mxu1 %v8002_v16 }
 0x3fc   : > { %7810 = vmatprep.subr.bf16.mxu1 %v8003_v1 }
 0x3ff   : > { %7811 = vmatpush3.bf16.msra.mxu1 %v8004_v38 }
 0x400   : > { %7840 = vmatprep.subr.bf16.mxu1 %v8021_v45 }
 0x402   : > { %6685 = vmatmul.mubr.bf16.vlgmr.msra.gmra.mxu1 %v6087_v44 }
 0x403   : > { %7841 = vmatpush3.bf16.msra.mxu1 %v8022_v49 }
 0x404   : > { %7842 = vmatprep.subr.bf16.mxu1 %v8023_v2 }
 0x407   : > { %7843 = vmatpush3.bf16.msra.mxu1 %v8024_v50 }
 0x408   : > { %7844 = vmatprep.subr.bf16.mxu1 %v8025_v53  ;;  %v7704_v53 = vld [vmem:[#allocation13] ss:$0 sm:$0xff] }
 0x40b   : > { %7845 = vmatpush3.bf16.msra.mxu1 %v8026_v56 }
 0x40c   : > { %7846 = vmatprep.subr.bf16.mxu1 %v8027_v40 }
 0x40f   : > { %7847 = vmatpush3.bf16.msra.mxu1 %v8028_v60 }
 0x410   : > { %7848 = vmatprep.subr.bf16.mxu1 %v8029_v57 }
 0x413   : > { %7849 = vmatpush3.bf16.msra.mxu1 %v8030_v51 }
 0x414   : > { %7850 = vmatprep.subr.bf16.mxu1 %v8031_v58 }
 0x417   : > { %7851 = vmatpush3.bf16.msra.mxu1 %v8032_v59 }
 0x418   : > { %7852 = vmatprep.subr.bf16.mxu1 %v8033_v37 }
 0x41b   : > { %7853 = vmatpush3.bf16.msra.mxu1 %v8034_v12 }
 0x41c   : > { %7854 = vmatprep.subr.bf16.mxu1 %v8035_v48 }
 0x41f   : > { %7855 = vmatpush3.bf16.msra.mxu1 %v8036_v18 }
 0x422   : > { %v5906_v54 = vpop.f32.mrf.mxu1 }
 0x423   : > { %v5907_v3 = vadd.f32 %v5906_v54, %v5866_v46  ;;  %v5947_v4 = vpop.f32.mrf.mxu0 }
 0x424   : > { %v5908_v5 = vpop.f32.mrf.mxu1  ;;  %v5948_v21 = vadd.f32 %v5947_v4, %v2848_v28 }
 0x425   : > { %v5909_v41 = vadd.f32 %v5908_v5, %v5868_v7  ;;  %v5949_v14 = vpop.f32.mrf.mxu0  ;;  %v6081_v24 = vmax.f32 %v5907_v3, 0.0 }
 0x426   : > { %v5910_v42 = vpop.f32.mrf.mxu1  ;;  %v5950_v33 = vadd.f32 %v5949_v14, %v2852_v17 }
 0x427   : > { %v6082_v6 = vmax.f32 %v5909_v41, 0.0  ;;  %v5951_v8 = vpop.f32.mrf.mxu0  ;;  %v6089_v43 = vpack.c.bf16 %v6081_v24, %v6081_v24 }
 0x428   : > { %v5911_v9 = vpop.f32.mrf.mxu1 }
 0x429   : > { %v6090_v11 = vpack.c.bf16 %v6082_v6, %v6082_v6  ;;  %v5952_v13 = vpop.f32.mrf.mxu0 }
 0x42b   : > { %6724 = vmatprep.mubr.bf16.mxu0 %v6090_v11 }
 0x42c   : > { %6725 = vmatmul.mubr.bf16.vlgmr.msra.gmra.mxu0 %v6089_v43 }
 0x462   : > { %v5988_v10 = vpop.f32.mrf.mxu1 }
 0x463   : > { %v5989_v22 = vadd.f32 %v5988_v10, %v5948_v21  ;;  %v6029_v23 = vpop.f32.mrf.mxu0 }
 0x464   : > { %v5990_v25 = vpop.f32.mrf.mxu1 }
 0x465   : > { %v6030_v35 = vadd.f32 %v6029_v23, %v5989_v22  ;;  %v6031_v46 = vpop.f32.mrf.mxu0  ;;  %v5991_v34 = vadd.f32 %v5990_v25, %v5950_v33 }
 0x466   : > { %v5992_v47 = vpop.f32.mrf.mxu1 }
 0x467   : > { %v6033_v61 = vpop.f32.mrf.mxu0  ;;  %v6032_v15 = vadd.f32 %v6031_v46, %v5991_v34 }
 0x468   : > { %v5993_v30 = vpop.f32.mrf.mxu1 }
 0x469   : > { %v6034_v31 = vpop.f32.mrf.mxu0 }
 0x483   : > { %v7790_v32 = vpop.f32.mrf.mxu0 }
 0x485   : > { %v7791_v27 = vpop.f32.mrf.mxu0 }
 0x486   : > { %v7792_v52 = vadd.f32 %v7791_v27, %v7790_v32 }
 0x487   : > { %v7793_v19 = vpop.f32.mrf.mxu0 }
 0x488   : > { %v6647_v20 = vadd.f32 %v7792_v52, %v7704_v53 }
 0x489   : > { %v7794_v63 = vpop.f32.mrf.mxu0 }
 0x4a2   : > { %v6070_v36 = vpop.f32.mrf.mxu1 }
 0x4a3   : > { %v6071_v16 = vadd.f32 %v6070_v36, %v6030_v35 }
 0x4a4   : > { %v6072_v1 = vpop.f32.mrf.mxu1 }
 0x4a5   : > { %v6073_v38 = vadd.f32 %v6072_v1, %v6032_v15  ;;  %v6083_v39 = vmax.f32 %v6071_v16, 0.0 }
 0x4a6   : > { %v6074_v44 = vpop.f32.mrf.mxu1 }
 0x4a7   : > { %v6084_v45 = vmax.f32 %v6073_v38, 0.0  ;;  %v6091_v50 = vpack.c.bf16 %v6083_v39, %v6083_v39 }
 0x4a8   : > { %v6075_v49 = vpop.f32.mrf.mxu1 }
 0x4a9   : > { %v6092_v2 = vpack.c.bf16 %v6084_v45, %v6084_v45 }
 0x4ab   : > { %6764 = vmatprep.mubr.bf16.mxu1 %v6092_v2 }
 0x4ac   : > { %6765 = vmatmul.mubr.bf16.vlgmr.msra.gmra.mxu1 %v6091_v50 }
 0x4c2   : > { %v7812_v29 = vpop.f32.mrf.mxu1 }
 0x4c4   : > { %v7813_v56 = vpop.f32.mrf.mxu1 }
 0x4c5   : > { %v7814_v26 = vadd.f32 %v7813_v56, %v7812_v29 }
 0x4c6   : > { %v7815_v40 = vpop.f32.mrf.mxu1 }
 0x4c7   : > { %v6687_v60 = vadd.f32 %v7814_v26, %v6647_v20 }
 0x4c8   : > { %v7816_v57 = vpop.f32.mrf.mxu1 }
 0x4ec   : > { %v7834_v51 = vpop.f32.mrf.mxu0 }
 0x4ee   : > { %v7835_v62 = vpop.f32.mrf.mxu0 }
 0x4ef   : > { %v7836_v58 = vadd.f32 %v7835_v62, %v7834_v51 }
 0x4f0   : > { %v7837_v59 = vpop.f32.mrf.mxu0 }
 0x4f1   : > { %v6727_v55 = vadd.f32 %v7836_v58, %v6687_v60 }
 0x4f2   : > { %v7838_v0 = vpop.f32.mrf.mxu0 }
 0x56c   : > { %v7856_v54 = vpop.f32.mrf.mxu1 }
 0x56e   : > { %v7857_v7 = vpop.f32.mrf.mxu1 }
 0x56f   : > { %v7858_v3 = vadd.f32 %v7857_v7, %v7856_v54 }
 0x570   : > { %v7859_v4 = vpop.f32.mrf.mxu1 }
 0x571   : > { %v6767_v5 = vadd.f32 %v7858_v3, %v6727_v55 }
 0x572   : > { %v7860_v37 = vpop.f32.mrf.mxu1 }
 0x573   : > { %v6772_v41 = vmax.f32 %v6767_v5, 0.0 }
 0x575   : > { %6773 = vst [vmem:[%s375_s19] sm:$0xff] %v6772_v41 }
 0x576   : > { %8236 = shalt.err (!%p8233_p4)
}
 0x577   : > { %s8237_s20 = scalar_lea.hbm %s6786_s15, 128  ;;  %s8241_s28 = scalar_lea.hbm %s8785_s7, 256 }
 0x578   : > { %p8238_p6 = scmp.ne.s32.totalorder %s6786_s15, %s8237_s20  ;;  %p8242_p1 = scmp.lt.s32.totalorder %s6786_s15, %s8785_s7 }
 0x579   : > { %p8243_p10 = scmp.lt.s32.totalorder %s8241_s28, %s8237_s20 }
 0x57a   : > { %p8239_p5 = pnand %p8238_p6, %p8811_p13 }
 0x57b   : > { %p8244_p11 = por %p8243_p10, %p8242_p1 }
 0x57c   : > { %p8240_p8 = pneg %p8239_p5 }
 0x57e   : > { %p8245_p12 = pnand %p8244_p11, %p8240_p8 }
 0x580   : > { %8248 = shalt.err (!%p8245_p12)
}
 0x581   : > { %7888 = dma.vmem_to_hbm [thread:$0]  (%p8811_p13), %s6789_s9, 128, %s6786_s15, %s6775_s29  }
 0x582 PF: > { %s6800_s8 = sand.u32 1, %s8287_s24   ;;  %p8812_p0 = scmp.ne.s32.totalorder %s8801_s21, 0 }
 0x583   : > { %p8813_p2 = scmp.ge.s32.totalorder %s8299_s27, 2  ;;  %s6801_s19 = scalar_lea.sflag [#allocation4], %s6800_s8 }
 0x585   : > { %p7914_p3 = pnand %p8813_p2, %p8812_p0 }
 0x587   : > { %p7915_p7 = pneg %p7914_p3 }
 0x589   : > { %8282 = dma.done.wait (%p7915_p7), %s6801_s19, 128  }
 0x58a   : > { %8284 = vsyncadd (%p7915_p7), %s6801_s19, 4294967168  ;;  %p23_p9 = scmp.ge.s32.totalorder %s8456_s11, 4   ;;  %s8814_s24 = smov %s8291_s25 }
 0x58b   : > { %s8815_s25 = smov %s8295_s26  ;;  %s8816_s26 = smov %s8467_s17 }
 0x58c   : > { %s8817_s27 = smov %s8456_s11  ;;  %25 = sbr.rel (!%p23_p9) target bundleno = 11 (0xb), region = 117 }
 0x591   :  { %6806 = vsyncpa [#allocation3], 1 }
 0x592   :  { %6808 = vsyncpa [#allocation3 + $0x1], 1 }
 0x593   :  { %6809 = vsyncpa [#allocation6], 1 }
 0x594   :  { %6810 = vsyncpa [#allocation9], 1 }
 0x595   :  { %6811 = vsyncpa [#allocation12], 1 }
 0x596   :  { %6812 = vsyncpa [#allocation4], 1 }
 0x597   :  { %6814 = vsyncpa [#allocation4 + $0x1], 1 }

</bundles_post_ra>
